<compile_context>
chip_gen: v7x
topology: tpu7x:2x2x1
jax: 0.10.0
libtpu: 0.0.40
codegen_flags: <defaults>
</compile_context>

<pallas_src>
import functools
import math

import jax
import jax.numpy as jnp
from jax import lax
from jax.experimental import pallas as pl
from jax.experimental.pallas import tpu as pltpu


# ---------------------------------------------------------------------------
# Kernel 1: fused QKV projection + RoPE (scale folded into qw in the wrapper).
# ---------------------------------------------------------------------------
def _qkv_rope_kernel(x_ref, qw_ref, kw_ref, vw_ref, cos_ref, sin_ref,
                     q_out, k_out, v_out, *, n_heads):
    x = x_ref[0]                                    # (ts, D) bf16
    D = x.shape[-1]
    nd = D // n_heads
    half = nd // 2

    # Full-width projections: contraction dim = D, output width = D -> MXU
    # is fully utilised (bf16 operands, f32 accumulation).
    qf = jnp.dot(x, qw_ref[...], preferred_element_type=jnp.float32)   # (ts, D)
    kf = jnp.dot(x, kw_ref[...], preferred_element_type=jnp.float32)
    vf = jnp.dot(x, vw_ref[...], preferred_element_type=jnp.float32)

    c = cos_ref[...]                                # (ts, nd//2) f32
    s = sin_ref[...]

    # qw/kw columns were de-interleaved per head in the wrapper, so within a
    # head the layout is [even pair elems | odd pair elems] and the RoPE
    # rotation is a plain half-swap with a sign -> pure VPU work, no MXU.
    for h in range(n_heads):
        base = h * nd
        qa = qf[:, base:base + half]
        qb = qf[:, base + half:base + nd]
        ka = kf[:, base:base + half]
        kb = kf[:, base + half:base + nd]
        q_out[0, h] = jnp.concatenate(
            [qa * c - qb * s, qb * c + qa * s], axis=-1).astype(q_out.dtype)
        k_out[0, h] = jnp.concatenate(
            [ka * c - kb * s, kb * c + ka * s], axis=-1).astype(k_out.dtype)
        v_out[0, h] = vf[:, base:base + nd].astype(v_out.dtype)


# ---------------------------------------------------------------------------
# Kernel 2: flash attention + per-head output-projection accumulation.
# grid = (B, q_tiles, H, kv_tiles); kv innermost, head next (both "arbitrary").
# ---------------------------------------------------------------------------
def _flash_attn_kernel(q_ref, k_ref, v_ref, ow_ref, o_ref,
                       m_sc, l_sc, acc_sc, out_acc,
                       *, causal, q_blk, kv_blk):
    qi = pl.program_id(1)
    h = pl.program_id(2)
    ki = pl.program_id(3)
    n_heads = pl.num_programs(2)
    n_kv = pl.num_programs(3)

    # Zero the (q_blk, D) output accumulator once per (b, q-tile).
    @pl.when(jnp.logical_and(h == 0, ki == 0))
    def _init_out():
        out_acc[...] = jnp.zeros_like(out_acc)

    # Reset online-softmax state at the start of every head's kv sweep.
    @pl.when(ki == 0)
    def _init_state():
        m_sc[...] = jnp.full_like(m_sc, -jnp.inf)
        l_sc[...] = jnp.zeros_like(l_sc)
        acc_sc[...] = jnp.zeros_like(acc_sc)

    def _compute_tile():
        q = q_ref[0, 0]                             # (q_blk, nd) bf16 (RoPE'd, pre-scaled)
        k = k_ref[0, 0]                             # (kv_blk, nd) bf16
        v = v_ref[0, 0]                             # (kv_blk, nd) bf16
        s = lax.dot_general(q, k, (((1,), (1,)), ((), ())),
                            preferred_element_type=jnp.float32)   # (q_blk, kv_blk) f32
        if causal:
            row = qi * q_blk + lax.broadcasted_iota(jnp.int32, s.shape, 0)
            col = ki * kv_blk + lax.broadcasted_iota(jnp.int32, s.shape, 1)
            s = jnp.where(row >= col, s, jnp.float32(-1e10))
        m_prev = m_sc[...]                                          # (q_blk, 1)
        m_new = jnp.maximum(m_prev, jnp.max(s, axis=-1, keepdims=True))
        alpha = jnp.exp(m_prev - m_new)
        p = jnp.exp(s - m_new)                                      # f32 probs
        l_sc[...] = alpha * l_sc[...] + jnp.sum(p, axis=-1, keepdims=True)
        acc_sc[...] = alpha * acc_sc[...] + jnp.dot(
            p.astype(v.dtype), v, preferred_element_type=jnp.float32)
        m_sc[...] = m_new

    if causal:
        # Skip kv tiles that lie entirely above the diagonal (≈2x fewer tiles).
        @pl.when(ki * kv_blk < (qi + 1) * q_blk)
        def _():
            _compute_tile()
    else:
        _compute_tile()

    # Per-head finalize: normalize and fold this head's context through its
    # (nd, D) slice of the output projection -> accumulate into (q_blk, D).
    @pl.when(ki == n_kv - 1)
    def _finalize_head():
        inv_l = pl.reciprocal(l_sc[...], approx=True)               # EUP vrcp
        ctx = (acc_sc[...] * inv_l).astype(jnp.bfloat16)            # (q_blk, nd)
        out_acc[...] += jnp.dot(ctx, ow_ref[...],
                                preferred_element_type=jnp.float32)  # (q_blk, D)

    # Single lane-dense store of the finished (q_blk, D) output block.
    @pl.when(jnp.logical_and(ki == n_kv - 1, h == n_heads - 1))
    def _write_out():
        o_ref[0] = out_acc[...].astype(o_ref.dtype)


# ---------------------------------------------------------------------------
# Wrapper helpers.
# ---------------------------------------------------------------------------
def _pick_block(dim, target):
    """Largest block <= target that divides `dim` (multiples of 8), else dim."""
    if dim <= target:
        return dim
    for cand in (target, 512, 256, 128, 64, 32, 16, 8):
        if cand <= target and dim % cand == 0:
            return cand
    return dim


def _split_rope_perm(n_heads, nd):
    """Per-head column permutation: interleaved pairs -> [evens | odds]."""
    perm = []
    for h in range(n_heads):
        perm.extend(h * nd + j for j in range(0, nd, 2))
        perm.extend(h * nd + j for j in range(1, nd, 2))
    return jnp.asarray(perm, dtype=jnp.int32)


def get_freqs(seq_len, n_dim):
    """Standard RoPE angles; cos/sin of shape (S, n_dim // 2), f32."""
    inv_freq = 1.0 / (10000.0 ** (jnp.arange(0, n_dim, 2, dtype=jnp.float32) / n_dim))
    t = jnp.arange(seq_len, dtype=jnp.float32)
    angles = jnp.outer(t, inv_freq)
    return jnp.cos(angles), jnp.sin(angles)


def mh_attention(x, qw, kw, vw, ow, n_heads, causal_mask=False,
                 q_block=256, kv_block=256, proj_block=256):
    """Forward pass of MhAttention.  x: (B, S, D); weights: (D, D)."""
    B, S, D = x.shape
    assert D % n_heads == 0, "d_model must be divisible by n_heads"
    nd = D // n_heads
    assert nd % 2 == 0, "RoPE requires an even head dimension"

    # Generation note: v6e (128 MiB VMEM) tolerates q/kv blocks of 512;
    # v7x (64 MiB) and v5e are happier at 128-256.  Blocks must divide S.
    tq = _pick_block(S, q_block)
    tk = _pick_block(S, kv_block)
    ts = _pick_block(S, proj_block)

    # ---- one-time wrapper-side weight prep (plain JAX) ---------------------
    perm = _split_rope_perm(n_heads, nd)
    scale = 1.0 / math.sqrt(D)                       # module scales by 1/sqrt(d_model)
    qw_r = (qw * scale)[:, perm].astype(jnp.bfloat16)   # scale folded into Q projection
    kw_r = kw[:, perm].astype(jnp.bfloat16)
    vw_b = vw.astype(jnp.bfloat16)
    ow_b = ow.astype(jnp.bfloat16)
    x_b = x.astype(jnp.bfloat16)
    cos, sin = get_freqs(S, nd)                      # (S, nd//2) f32

    vmem_limit = 32 * 1024 * 1024   # safe on v5e/v6e/v7x; raise on v6e if desired

    # ---- kernel 1: QKV projection + RoPE, outputs (B, H, S, nd) bf16 -------
    qkv_kernel = functools.partial(_qkv_rope_kernel, n_heads=n_heads)
    head_shape = jax.ShapeDtypeStruct((B, n_heads, S, nd), jnp.bfloat16)
    head_spec = pl.BlockSpec((1, n_heads, ts, nd), lambda b, si: (b, 0, si, 0))
    q_h, k_h, v_h = pl.pallas_call(
        qkv_kernel,
        out_shape=(head_shape, head_shape, head_shape),
        grid_spec=pltpu.PrefetchScalarGridSpec(
            num_scalar_prefetch=0,
            grid=(B, S // ts),
            in_specs=[
                pl.BlockSpec((1, ts, D), lambda b, si: (b, si, 0)),     # x
                pl.BlockSpec((D, D), lambda b, si: (0, 0)),             # qw (scaled, split)
                pl.BlockSpec((D, D), lambda b, si: (0, 0)),             # kw (split)
                pl.BlockSpec((D, D), lambda b, si: (0, 0)),             # vw
                pl.BlockSpec((ts, nd // 2), lambda b, si: (si, 0)),     # cos
                pl.BlockSpec((ts, nd // 2), lambda b, si: (si, 0)),     # sin
            ],
            out_specs=(head_spec, head_spec, head_spec),
        ),
        compiler_params=pltpu.CompilerParams(
            dimension_semantics=("parallel", "parallel"),
            vmem_limit_bytes=vmem_limit),
    )(x_b, qw_r, kw_r, vw_b, cos, sin)

    # ---- kernel 2: flash attention + per-head output projection ------------
    flash_kernel = functools.partial(_flash_attn_kernel, causal=causal_mask,
                                     q_blk=tq, kv_blk=tk)
    out = pl.pallas_call(
        flash_kernel,
        out_shape=jax.ShapeDtypeStruct((B, S, D), x.dtype),
        grid_spec=pltpu.PrefetchScalarGridSpec(
            num_scalar_prefetch=0,
            grid=(B, S // tq, n_heads, S // tk),
            in_specs=[
                pl.BlockSpec((1, 1, tq, nd), lambda b, qi, h, ki: (b, h, qi, 0)),  # Q
                pl.BlockSpec((1, 1, tk, nd), lambda b, qi, h, ki: (b, h, ki, 0)),  # K
                pl.BlockSpec((1, 1, tk, nd), lambda b, qi, h, ki: (b, h, ki, 0)),  # V
                pl.BlockSpec((nd, D), lambda b, qi, h, ki: (h, 0)),                # ow rows
            ],
            out_specs=pl.BlockSpec((1, tq, D), lambda b, qi, h, ki: (b, qi, 0)),
            scratch_shapes=[
                pltpu.VMEM((tq, 1), jnp.float32),    # running max
                pltpu.VMEM((tq, 1), jnp.float32),    # running sum
                pltpu.VMEM((tq, nd), jnp.float32),   # per-head context accumulator
                pltpu.VMEM((tq, D), jnp.float32),    # merged output accumulator
            ],
        ),
        compiler_params=pltpu.CompilerParams(
            dimension_semantics=("parallel", "parallel", "arbitrary", "arbitrary"),
            vmem_limit_bytes=vmem_limit),
    )(q_h, k_h, v_h, ow_b)
    return out


# ---------------------------------------------------------------------------
# Pure-JAX f32 reference mirroring the PyTorch forward (interleaved RoPE).
# ---------------------------------------------------------------------------
def mh_attention_ref(x, qw, kw, vw, ow, n_heads, causal_mask=False):
    B, S, D = x.shape
    nd = D // n_heads
    Q = (x @ qw).reshape(B, S, n_heads, nd)
    K = (x @ kw).reshape(B, S, n_heads, nd)
    V = (x @ vw).reshape(B, S, n_heads, nd)
    cos, sin = get_freqs(S, nd)                      # (S, nd//2)

    def rope(t):
        tp = t.reshape(B, S, n_heads, nd // 2, 2)
        a, b = tp[..., 0], tp[..., 1]
        c = cos[None, :, None, :]
        s = sin[None, :, None, :]
        return jnp.stack([a * c - b * s, b * c + a * s], axis=-1
                         ).reshape(B, S, n_heads, nd)

    Qh = rope(Q).transpose(0, 2, 1, 3)               # (B, H, S, nd)
    Kh = rope(K).transpose(0, 2, 1, 3)
    Vh = V.transpose(0, 2, 1, 3)
    scores = jnp.einsum("bhqd,bhkd->bhqk", Qh, Kh) / jnp.sqrt(jnp.float32(D))
    if causal_mask:
        tri = jnp.tril(jnp.ones((S, S), dtype=bool))
        scores = jnp.where(tri[None, None], scores, jnp.float32(-1e10))
    w = jax.nn.softmax(scores, axis=-1)
    attn = jnp.einsum("bhqk,bhkd->bhqd", w, Vh)
    merged = attn.transpose(0, 2, 1, 3).reshape(B, S, D)
    return merged @ ow


if __name__ == "__main__":
    B, S, D, H = 2, 128, 32, 4

    key = jax.random.PRNGKey(0)
    kx, kq, kk, kv, ko = jax.random.split(key, 5)
    x = jax.random.normal(kx, (B, S, D), dtype=jnp.float32)
    # Moderate weight scale keeps the softmax well-conditioned so the bf16
    # kernel can be checked against the f32 reference with a tight tolerance.
    wsc = 0.25
    qw = wsc * jax.random.normal(kq, (D, D), dtype=jnp.float32)
    kw = wsc * jax.random.normal(kk, (D, D), dtype=jnp.float32)
    vw = wsc * jax.random.normal(kv, (D, D), dtype=jnp.float32)
    ow = wsc * jax.random.normal(ko, (D, D), dtype=jnp.float32)

    # Blocks of 64 on S=128 exercise multi-tile online softmax, the causal
    # kv-tile skip, and the per-head output accumulation across grid steps.
    for causal in (True, False):
        out = mh_attention(x, qw, kw, vw, ow, n_heads=H, causal_mask=causal,
                           q_block=64, kv_block=64, proj_block=64)
        out = jax.block_until_ready(out)
        ref = mh_attention_ref(x, qw, kw, vw, ow, n_heads=H, causal_mask=causal)
        assert out.shape == (B, S, D)
        assert jnp.allclose(out, ref, atol=1e-1, rtol=5e-2), (
            f"mismatch (causal={causal}): max abs err "
            f"{jnp.max(jnp.abs(out - ref))}")

    print("KERNEL_OK")
</pallas_src>

<mosaic_0001>
module attributes {stable_mosaic.version = 11 : i64} {
  func.func @_qkv_rope_kernel(%arg0: i32, %arg1: i32, %arg2: memref<1x64x32xbf16, #tpu.memory_space<vmem>>, %arg3: memref<32x32xbf16, #tpu.memory_space<vmem>>, %arg4: memref<32x32xbf16, #tpu.memory_space<vmem>>, %arg5: memref<32x32xbf16, #tpu.memory_space<vmem>>, %arg6: memref<64x4xf32, #tpu.memory_space<vmem>>, %arg7: memref<64x4xf32, #tpu.memory_space<vmem>>, %arg8: memref<1x4x64x8xbf16, #tpu.memory_space<vmem>>, %arg9: memref<1x4x64x8xbf16, #tpu.memory_space<vmem>>, %arg10: memref<1x4x64x8xbf16, #tpu.memory_space<vmem>>) attributes {dimension_semantics = [#tpu.dimension_semantics<parallel>, #tpu.dimension_semantics<parallel>], iteration_bounds = array<i64: 2, 2>, scalar_prefetch = 0 : i64, scratch_operands = 0 : i64, tpu.core_type = #tpu.core_type<tc>, window_params = [{transform_indices = @transform_0, window_bounds = array<i64: 1, 64, 32>}, {pipeline_mode = #tpu.pipeline_mode<synchronous>, transform_indices = @transform_1, window_bounds = array<i64: 32, 32>}, {pipeline_mode = #tpu.pipeline_mode<synchronous>, transform_indices = @transform_2, window_bounds = array<i64: 32, 32>}, {pipeline_mode = #tpu.pipeline_mode<synchronous>, transform_indices = @transform_3, window_bounds = array<i64: 32, 32>}, {transform_indices = @transform_4, window_bounds = array<i64: 64, 4>}, {transform_indices = @transform_5, window_bounds = array<i64: 64, 4>}, {transform_indices = @transform_6, window_bounds = array<i64: 1, 4, 64, 8>}, {transform_indices = @transform_7, window_bounds = array<i64: 1, 4, 64, 8>}, {transform_indices = @transform_8, window_bounds = array<i64: 1, 4, 64, 8>}]} {
    %c0 = arith.constant 0 : index
    %c0_0 = arith.constant 0 : index
    %c0_1 = arith.constant 0 : index
    %0 = vector.load %arg2[%c0, %c0_0, %c0_1] : memref<1x64x32xbf16, #tpu.memory_space<vmem>>, vector<1x64x32xbf16>
    %1 = vector.shape_cast %0 : vector<1x64x32xbf16> to vector<64x32xbf16>
    %c0_2 = arith.constant 0 : index
    %c0_3 = arith.constant 0 : index
    %2 = vector.load %arg3[%c0_2, %c0_3] : memref<32x32xbf16, #tpu.memory_space<vmem>>, vector<32x32xbf16>
    %cst = arith.constant dense<0.000000e+00> : vector<64x32xf32>
    %3 = tpu.matmul %1, %2, %cst {dimension_numbers = #tpu.dot_dimension_numbers<[1], [0], [0], [1], [0, 0, 1, 1], [], []>} : vector<64x32xbf16>, vector<32x32xbf16>, vector<64x32xf32> -> vector<64x32xf32>
    %c0_4 = arith.constant 0 : index
    %c0_5 = arith.constant 0 : index
    %4 = vector.load %arg4[%c0_4, %c0_5] : memref<32x32xbf16, #tpu.memory_space<vmem>>, vector<32x32xbf16>
    %cst_6 = arith.constant dense<0.000000e+00> : vector<64x32xf32>
    %5 = tpu.matmul %1, %4, %cst_6 {dimension_numbers = #tpu.dot_dimension_numbers<[1], [0], [0], [1], [0, 0, 1, 1], [], []>} : vector<64x32xbf16>, vector<32x32xbf16>, vector<64x32xf32> -> vector<64x32xf32>
    %c0_7 = arith.constant 0 : index
    %c0_8 = arith.constant 0 : index
    %6 = vector.load %arg5[%c0_7, %c0_8] : memref<32x32xbf16, #tpu.memory_space<vmem>>, vector<32x32xbf16>
    %cst_9 = arith.constant dense<0.000000e+00> : vector<64x32xf32>
    %7 = tpu.matmul %1, %6, %cst_9 {dimension_numbers = #tpu.dot_dimension_numbers<[1], [0], [0], [1], [0, 0, 1, 1], [], []>} : vector<64x32xbf16>, vector<32x32xbf16>, vector<64x32xf32> -> vector<64x32xf32>
    %c0_10 = arith.constant 0 : index
    %c0_11 = arith.constant 0 : index
    %8 = vector.load %arg6[%c0_10, %c0_11] : memref<64x4xf32, #tpu.memory_space<vmem>>, vector<64x4xf32>
    %c0_12 = arith.constant 0 : index
    %c0_13 = arith.constant 0 : index
    %9 = vector.load %arg7[%c0_12, %c0_13] : memref<64x4xf32, #tpu.memory_space<vmem>>, vector<64x4xf32>
    %10 = vector.extract_strided_slice %3 {offsets = [0, 0], sizes = [64, 4], strides = [1, 1]} : vector<64x32xf32> to vector<64x4xf32>
    %11 = vector.extract_strided_slice %3 {offsets = [0, 4], sizes = [64, 4], strides = [1, 1]} : vector<64x32xf32> to vector<64x4xf32>
    %12 = vector.extract_strided_slice %5 {offsets = [0, 0], sizes = [64, 4], strides = [1, 1]} : vector<64x32xf32> to vector<64x4xf32>
    %13 = vector.extract_strided_slice %5 {offsets = [0, 4], sizes = [64, 4], strides = [1, 1]} : vector<64x32xf32> to vector<64x4xf32>
    %14 = arith.mulf %10, %8 : vector<64x4xf32>
    %15 = arith.mulf %11, %9 : vector<64x4xf32>
    %16 = arith.subf %14, %15 : vector<64x4xf32>
    %17 = arith.mulf %11, %8 : vector<64x4xf32>
    %18 = arith.mulf %10, %9 : vector<64x4xf32>
    %19 = arith.addf %17, %18 : vector<64x4xf32>
    %20 = tpu.concatenate %16, %19 in 1 : vector<64x4xf32>, vector<64x4xf32> -> vector<64x8xf32>
    %21 = arith.truncf %20 : vector<64x8xf32> to vector<64x8xbf16>
    %c0_14 = arith.constant 0 : index
    %c0_15 = arith.constant 0 : index
    %c0_16 = arith.constant 0 : index
    %c0_17 = arith.constant 0 : index
    %22 = vector.load %arg8[%c0_14, %c0_15, %c0_16, %c0_17] : memref<1x4x64x8xbf16, #tpu.memory_space<vmem>>, vector<1x1x64x8xbf16>
    %23 = vector.shape_cast %22 : vector<1x1x64x8xbf16> to vector<64x8xbf16>
    %24 = vector.shape_cast %21 : vector<64x8xbf16> to vector<1x1x64x8xbf16>
    tpu.vector_store %arg8[%c0_14, %c0_15, %c0_16, %c0_17], %24 {strides = array<i32>} : memref<1x4x64x8xbf16, #tpu.memory_space<vmem>>, vector<1x1x64x8xbf16>,
    %25 = arith.mulf %12, %8 : vector<64x4xf32>
    %26 = arith.mulf %13, %9 : vector<64x4xf32>
    %27 = arith.subf %25, %26 : vector<64x4xf32>
    %28 = arith.mulf %13, %8 : vector<64x4xf32>
    %29 = arith.mulf %12, %9 : vector<64x4xf32>
    %30 = arith.addf %28, %29 : vector<64x4xf32>
    %31 = tpu.concatenate %27, %30 in 1 : vector<64x4xf32>, vector<64x4xf32> -> vector<64x8xf32>
    %32 = arith.truncf %31 : vector<64x8xf32> to vector<64x8xbf16>
    %c0_18 = arith.constant 0 : index
    %c0_19 = arith.constant 0 : index
    %c0_20 = arith.constant 0 : index
    %c0_21 = arith.constant 0 : index
    %33 = vector.load %arg9[%c0_18, %c0_19, %c0_20, %c0_21] : memref<1x4x64x8xbf16, #tpu.memory_space<vmem>>, vector<1x1x64x8xbf16>
    %34 = vector.shape_cast %33 : vector<1x1x64x8xbf16> to vector<64x8xbf16>
    %35 = vector.shape_cast %32 : vector<64x8xbf16> to vector<1x1x64x8xbf16>
    tpu.vector_store %arg9[%c0_18, %c0_19, %c0_20, %c0_21], %35 {strides = array<i32>} : memref<1x4x64x8xbf16, #tpu.memory_space<vmem>>, vector<1x1x64x8xbf16>,
    %36 = vector.extract_strided_slice %7 {offsets = [0, 0], sizes = [64, 8], strides = [1, 1]} : vector<64x32xf32> to vector<64x8xf32>
    %37 = arith.truncf %36 : vector<64x8xf32> to vector<64x8xbf16>
    %c0_22 = arith.constant 0 : index
    %c0_23 = arith.constant 0 : index
    %c0_24 = arith.constant 0 : index
    %c0_25 = arith.constant 0 : index
    %38 = vector.load %arg10[%c0_22, %c0_23, %c0_24, %c0_25] : memref<1x4x64x8xbf16, #tpu.memory_space<vmem>>, vector<1x1x64x8xbf16>
    %39 = vector.shape_cast %38 : vector<1x1x64x8xbf16> to vector<64x8xbf16>
    %40 = vector.shape_cast %37 : vector<64x8xbf16> to vector<1x1x64x8xbf16>
    tpu.vector_store %arg10[%c0_22, %c0_23, %c0_24, %c0_25], %40 {strides = array<i32>} : memref<1x4x64x8xbf16, #tpu.memory_space<vmem>>, vector<1x1x64x8xbf16>,
    %41 = vector.extract_strided_slice %3 {offsets = [0, 8], sizes = [64, 4], strides = [1, 1]} : vector<64x32xf32> to vector<64x4xf32>
    %42 = vector.extract_strided_slice %3 {offsets = [0, 12], sizes = [64, 4], strides = [1, 1]} : vector<64x32xf32> to vector<64x4xf32>
    %43 = vector.extract_strided_slice %5 {offsets = [0, 8], sizes = [64, 4], strides = [1, 1]} : vector<64x32xf32> to vector<64x4xf32>
    %44 = vector.extract_strided_slice %5 {offsets = [0, 12], sizes = [64, 4], strides = [1, 1]} : vector<64x32xf32> to vector<64x4xf32>
    %45 = arith.mulf %41, %8 : vector<64x4xf32>
    %46 = arith.mulf %42, %9 : vector<64x4xf32>
    %47 = arith.subf %45, %46 : vector<64x4xf32>
    %48 = arith.mulf %42, %8 : vector<64x4xf32>
    %49 = arith.mulf %41, %9 : vector<64x4xf32>
    %50 = arith.addf %48, %49 : vector<64x4xf32>
    %51 = tpu.concatenate %47, %50 in 1 : vector<64x4xf32>, vector<64x4xf32> -> vector<64x8xf32>
    %52 = arith.truncf %51 : vector<64x8xf32> to vector<64x8xbf16>
    %c0_26 = arith.constant 0 : index
    %c1 = arith.constant 1 : index
    %c0_27 = arith.constant 0 : index
    %c0_28 = arith.constant 0 : index
    %53 = vector.load %arg8[%c0_26, %c1, %c0_27, %c0_28] : memref<1x4x64x8xbf16, #tpu.memory_space<vmem>>, vector<1x1x64x8xbf16>
    %54 = vector.shape_cast %53 : vector<1x1x64x8xbf16> to vector<64x8xbf16>
    %55 = vector.shape_cast %52 : vector<64x8xbf16> to vector<1x1x64x8xbf16>
    tpu.vector_store %arg8[%c0_26, %c1, %c0_27, %c0_28], %55 {strides = array<i32>} : memref<1x4x64x8xbf16, #tpu.memory_space<vmem>>, vector<1x1x64x8xbf16>,
    %56 = arith.mulf %43, %8 : vector<64x4xf32>
    %57 = arith.mulf %44, %9 : vector<64x4xf32>
    %58 = arith.subf %56, %57 : vector<64x4xf32>
    %59 = arith.mulf %44, %8 : vector<64x4xf32>
    %60 = arith.mulf %43, %9 : vector<64x4xf32>
    %61 = arith.addf %59, %60 : vector<64x4xf32>
    %62 = tpu.concatenate %58, %61 in 1 : vector<64x4xf32>, vector<64x4xf32> -> vector<64x8xf32>
    %63 = arith.truncf %62 : vector<64x8xf32> to vector<64x8xbf16>
    %c0_29 = arith.constant 0 : index
    %c1_30 = arith.constant 1 : index
    %c0_31 = arith.constant 0 : index
    %c0_32 = arith.constant 0 : index
    %64 = vector.load %arg9[%c0_29, %c1_30, %c0_31, %c0_32] : memref<1x4x64x8xbf16, #tpu.memory_space<vmem>>, vector<1x1x64x8xbf16>
    %65 = vector.shape_cast %64 : vector<1x1x64x8xbf16> to vector<64x8xbf16>
    %66 = vector.shape_cast %63 : vector<64x8xbf16> to vector<1x1x64x8xbf16>
    tpu.vector_store %arg9[%c0_29, %c1_30, %c0_31, %c0_32], %66 {strides = array<i32>} : memref<1x4x64x8xbf16, #tpu.memory_space<vmem>>, vector<1x1x64x8xbf16>,
    %67 = vector.extract_strided_slice %7 {offsets = [0, 8], sizes = [64, 8], strides = [1, 1]} : vector<64x32xf32> to vector<64x8xf32>
    %68 = arith.truncf %67 : vector<64x8xf32> to vector<64x8xbf16>
    %c0_33 = arith.constant 0 : index
    %c1_34 = arith.constant 1 : index
    %c0_35 = arith.constant 0 : index
    %c0_36 = arith.constant 0 : index
    %69 = vector.load %arg10[%c0_33, %c1_34, %c0_35, %c0_36] : memref<1x4x64x8xbf16, #tpu.memory_space<vmem>>, vector<1x1x64x8xbf16>
    %70 = vector.shape_cast %69 : vector<1x1x64x8xbf16> to vector<64x8xbf16>
    %71 = vector.shape_cast %68 : vector<64x8xbf16> to vector<1x1x64x8xbf16>
    tpu.vector_store %arg10[%c0_33, %c1_34, %c0_35, %c0_36], %71 {strides = array<i32>} : memref<1x4x64x8xbf16, #tpu.memory_space<vmem>>, vector<1x1x64x8xbf16>,
    %72 = vector.extract_strided_slice %3 {offsets = [0, 16], sizes = [64, 4], strides = [1, 1]} : vector<64x32xf32> to vector<64x4xf32>
    %73 = vector.extract_strided_slice %3 {offsets = [0, 20], sizes = [64, 4], strides = [1, 1]} : vector<64x32xf32> to vector<64x4xf32>
    %74 = vector.extract_strided_slice %5 {offsets = [0, 16], sizes = [64, 4], strides = [1, 1]} : vector<64x32xf32> to vector<64x4xf32>
    %75 = vector.extract_strided_slice %5 {offsets = [0, 20], sizes = [64, 4], strides = [1, 1]} : vector<64x32xf32> to vector<64x4xf32>
    %76 = arith.mulf %72, %8 : vector<64x4xf32>
    %77 = arith.mulf %73, %9 : vector<64x4xf32>
    %78 = arith.subf %76, %77 : vector<64x4xf32>
    %79 = arith.mulf %73, %8 : vector<64x4xf32>
    %80 = arith.mulf %72, %9 : vector<64x4xf32>
    %81 = arith.addf %79, %80 : vector<64x4xf32>
    %82 = tpu.concatenate %78, %81 in 1 : vector<64x4xf32>, vector<64x4xf32> -> vector<64x8xf32>
    %83 = arith.truncf %82 : vector<64x8xf32> to vector<64x8xbf16>
    %c0_37 = arith.constant 0 : index
    %c2 = arith.constant 2 : index
    %c0_38 = arith.constant 0 : index
    %c0_39 = arith.constant 0 : index
    %84 = vector.load %arg8[%c0_37, %c2, %c0_38, %c0_39] : memref<1x4x64x8xbf16, #tpu.memory_space<vmem>>, vector<1x1x64x8xbf16>
    %85 = vector.shape_cast %84 : vector<1x1x64x8xbf16> to vector<64x8xbf16>
    %86 = vector.shape_cast %83 : vector<64x8xbf16> to vector<1x1x64x8xbf16>
    tpu.vector_store %arg8[%c0_37, %c2, %c0_38, %c0_39], %86 {strides = array<i32>} : memref<1x4x64x8xbf16, #tpu.memory_space<vmem>>, vector<1x1x64x8xbf16>,
    %87 = arith.mulf %74, %8 : vector<64x4xf32>
    %88 = arith.mulf %75, %9 : vector<64x4xf32>
    %89 = arith.subf %87, %88 : vector<64x4xf32>
    %90 = arith.mulf %75, %8 : vector<64x4xf32>
    %91 = arith.mulf %74, %9 : vector<64x4xf32>
    %92 = arith.addf %90, %91 : vector<64x4xf32>
    %93 = tpu.concatenate %89, %92 in 1 : vector<64x4xf32>, vector<64x4xf32> -> vector<64x8xf32>
    %94 = arith.truncf %93 : vector<64x8xf32> to vector<64x8xbf16>
    %c0_40 = arith.constant 0 : index
    %c2_41 = arith.constant 2 : index
    %c0_42 = arith.constant 0 : index
    %c0_43 = arith.constant 0 : index
    %95 = vector.load %arg9[%c0_40, %c2_41, %c0_42, %c0_43] : memref<1x4x64x8xbf16, #tpu.memory_space<vmem>>, vector<1x1x64x8xbf16>
    %96 = vector.shape_cast %95 : vector<1x1x64x8xbf16> to vector<64x8xbf16>
    %97 = vector.shape_cast %94 : vector<64x8xbf16> to vector<1x1x64x8xbf16>
    tpu.vector_store %arg9[%c0_40, %c2_41, %c0_42, %c0_43], %97 {strides = array<i32>} : memref<1x4x64x8xbf16, #tpu.memory_space<vmem>>, vector<1x1x64x8xbf16>,
    %98 = vector.extract_strided_slice %7 {offsets = [0, 16], sizes = [64, 8], strides = [1, 1]} : vector<64x32xf32> to vector<64x8xf32>
    %99 = arith.truncf %98 : vector<64x8xf32> to vector<64x8xbf16>
    %c0_44 = arith.constant 0 : index
    %c2_45 = arith.constant 2 : index
    %c0_46 = arith.constant 0 : index
    %c0_47 = arith.constant 0 : index
    %100 = vector.load %arg10[%c0_44, %c2_45, %c0_46, %c0_47] : memref<1x4x64x8xbf16, #tpu.memory_space<vmem>>, vector<1x1x64x8xbf16>
    %101 = vector.shape_cast %100 : vector<1x1x64x8xbf16> to vector<64x8xbf16>
    %102 = vector.shape_cast %99 : vector<64x8xbf16> to vector<1x1x64x8xbf16>
    tpu.vector_store %arg10[%c0_44, %c2_45, %c0_46, %c0_47], %102 {strides = array<i32>} : memref<1x4x64x8xbf16, #tpu.memory_space<vmem>>, vector<1x1x64x8xbf16>,
    %103 = vector.extract_strided_slice %3 {offsets = [0, 24], sizes = [64, 4], strides = [1, 1]} : vector<64x32xf32> to vector<64x4xf32>
    %104 = vector.extract_strided_slice %3 {offsets = [0, 28], sizes = [64, 4], strides = [1, 1]} : vector<64x32xf32> to vector<64x4xf32>
    %105 = vector.extract_strided_slice %5 {offsets = [0, 24], sizes = [64, 4], strides = [1, 1]} : vector<64x32xf32> to vector<64x4xf32>
    %106 = vector.extract_strided_slice %5 {offsets = [0, 28], sizes = [64, 4], strides = [1, 1]} : vector<64x32xf32> to vector<64x4xf32>
    %107 = arith.mulf %103, %8 : vector<64x4xf32>
    %108 = arith.mulf %104, %9 : vector<64x4xf32>
    %109 = arith.subf %107, %108 : vector<64x4xf32>
    %110 = arith.mulf %104, %8 : vector<64x4xf32>
    %111 = arith.mulf %103, %9 : vector<64x4xf32>
    %112 = arith.addf %110, %111 : vector<64x4xf32>
    %113 = tpu.concatenate %109, %112 in 1 : vector<64x4xf32>, vector<64x4xf32> -> vector<64x8xf32>
    %114 = arith.truncf %113 : vector<64x8xf32> to vector<64x8xbf16>
    %c0_48 = arith.constant 0 : index
    %c3 = arith.constant 3 : index
    %c0_49 = arith.constant 0 : index
    %c0_50 = arith.constant 0 : index
    %115 = vector.load %arg8[%c0_48, %c3, %c0_49, %c0_50] : memref<1x4x64x8xbf16, #tpu.memory_space<vmem>>, vector<1x1x64x8xbf16>
    %116 = vector.shape_cast %115 : vector<1x1x64x8xbf16> to vector<64x8xbf16>
    %117 = vector.shape_cast %114 : vector<64x8xbf16> to vector<1x1x64x8xbf16>
    tpu.vector_store %arg8[%c0_48, %c3, %c0_49, %c0_50], %117 {strides = array<i32>} : memref<1x4x64x8xbf16, #tpu.memory_space<vmem>>, vector<1x1x64x8xbf16>,
    %118 = arith.mulf %105, %8 : vector<64x4xf32>
    %119 = arith.mulf %106, %9 : vector<64x4xf32>
    %120 = arith.subf %118, %119 : vector<64x4xf32>
    %121 = arith.mulf %106, %8 : vector<64x4xf32>
    %122 = arith.mulf %105, %9 : vector<64x4xf32>
    %123 = arith.addf %121, %122 : vector<64x4xf32>
    %124 = tpu.concatenate %120, %123 in 1 : vector<64x4xf32>, vector<64x4xf32> -> vector<64x8xf32>
    %125 = arith.truncf %124 : vector<64x8xf32> to vector<64x8xbf16>
    %c0_51 = arith.constant 0 : index
    %c3_52 = arith.constant 3 : index
    %c0_53 = arith.constant 0 : index
    %c0_54 = arith.constant 0 : index
    %126 = vector.load %arg9[%c0_51, %c3_52, %c0_53, %c0_54] : memref<1x4x64x8xbf16, #tpu.memory_space<vmem>>, vector<1x1x64x8xbf16>
    %127 = vector.shape_cast %126 : vector<1x1x64x8xbf16> to vector<64x8xbf16>
    %128 = vector.shape_cast %125 : vector<64x8xbf16> to vector<1x1x64x8xbf16>
    tpu.vector_store %arg9[%c0_51, %c3_52, %c0_53, %c0_54], %128 {strides = array<i32>} : memref<1x4x64x8xbf16, #tpu.memory_space<vmem>>, vector<1x1x64x8xbf16>,
    %129 = vector.extract_strided_slice %7 {offsets = [0, 24], sizes = [64, 8], strides = [1, 1]} : vector<64x32xf32> to vector<64x8xf32>
    %130 = arith.truncf %129 : vector<64x8xf32> to vector<64x8xbf16>
    %c0_55 = arith.constant 0 : index
    %c3_56 = arith.constant 3 : index
    %c0_57 = arith.constant 0 : index
    %c0_58 = arith.constant 0 : index
    %131 = vector.load %arg10[%c0_55, %c3_56, %c0_57, %c0_58] : memref<1x4x64x8xbf16, #tpu.memory_space<vmem>>, vector<1x1x64x8xbf16>
    %132 = vector.shape_cast %131 : vector<1x1x64x8xbf16> to vector<64x8xbf16>
    %133 = vector.shape_cast %130 : vector<64x8xbf16> to vector<1x1x64x8xbf16>
    tpu.vector_store %arg10[%c0_55, %c3_56, %c0_57, %c0_58], %133 {strides = array<i32>} : memref<1x4x64x8xbf16, #tpu.memory_space<vmem>>, vector<1x1x64x8xbf16>,
    return
  }
  func.func @transform_0(%arg0: i32, %arg1: i32) -> (i32, i32, i32) {
    %c0_i32 = arith.constant 0 : i32
    %c0_i32_0 = arith.constant 0 : i32
    return %arg0, %arg1, %c0_i32 : i32, i32, i32
  }
  func.func @transform_1(%arg0: i32, %arg1: i32) -> (i32, i32) {
    %c0_i32 = arith.constant 0 : i32
    %c0_i32_0 = arith.constant 0 : i32
    %c0_i32_1 = arith.constant 0 : i32
    return %c0_i32, %c0_i32_0 : i32, i32
  }
  func.func @transform_2(%arg0: i32, %arg1: i32) -> (i32, i32) {
    %c0_i32 = arith.constant 0 : i32
    %c0_i32_0 = arith.constant 0 : i32
    %c0_i32_1 = arith.constant 0 : i32
    return %c0_i32, %c0_i32_0 : i32, i32
  }
  func.func @transform_3(%arg0: i32, %arg1: i32) -> (i32, i32) {
    %c0_i32 = arith.constant 0 : i32
    %c0_i32_0 = arith.constant 0 : i32
    %c0_i32_1 = arith.constant 0 : i32
    return %c0_i32, %c0_i32_0 : i32, i32
  }
  func.func @transform_4(%arg0: i32, %arg1: i32) -> (i32, i32) {
    %c0_i32 = arith.constant 0 : i32
    %c0_i32_0 = arith.constant 0 : i32
    return %arg1, %c0_i32 : i32, i32
  }
  func.func @transform_5(%arg0: i32, %arg1: i32) -> (i32, i32) {
    %c0_i32 = arith.constant 0 : i32
    %c0_i32_0 = arith.constant 0 : i32
    return %arg1, %c0_i32 : i32, i32
  }
  func.func @transform_6(%arg0: i32, %arg1: i32) -> (i32, i32, i32, i32) {
    %c0_i32 = arith.constant 0 : i32
    %c0_i32_0 = arith.constant 0 : i32
    %c0_i32_1 = arith.constant 0 : i32
    return %arg0, %c0_i32, %arg1, %c0_i32_0 : i32, i32, i32, i32
  }
  func.func @transform_7(%arg0: i32, %arg1: i32) -> (i32, i32, i32, i32) {
    %c0_i32 = arith.constant 0 : i32
    %c0_i32_0 = arith.constant 0 : i32
    %c0_i32_1 = arith.constant 0 : i32
    return %arg0, %c0_i32, %arg1, %c0_i32_0 : i32, i32, i32, i32
  }
  func.func @transform_8(%arg0: i32, %arg1: i32) -> (i32, i32, i32, i32) {
    %c0_i32 = arith.constant 0 : i32
    %c0_i32_0 = arith.constant 0 : i32
    %c0_i32_1 = arith.constant 0 : i32
    return %arg0, %c0_i32, %arg1, %c0_i32_0 : i32, i32, i32, i32
  }
}

</mosaic_0001>

<bundles_post_ra>
// kernel: tpu_custom_call.1
= control target key start
LH: loop header
LB: loop body
LE: loop exit
PB: predicated region body
PF: predicated region fallthrough
CT: control target
= control target key end

     0   :  { %s6157_s0 = inlined_call_operand.vmem [shape: bf16[2,128,32], index: 0, kind: input, shape index: {}]   ;;  %s6158_s1 = inlined_call_operand.vmem [shape: bf16[32,32], index: 1, kind: input, shape index: {}]   ;;  %s6159_s2 = inlined_call_operand.vmem [shape: bf16[32,32], index: 2, kind: input, shape index: {}]   ;;  %s6160_s3 = inlined_call_operand.vmem [shape: bf16[32,32], index: 3, kind: input, shape index: {}]   ;;  %s6161_s4 = inlined_call_operand.vmem [shape: f32[128,4], index: 4, kind: input, shape index: {}]   ;;  %s6162_s5 = inlined_call_operand.vmem [shape: f32[128,4], index: 5, kind: input, shape index: {}]   ;;  %s6163_s6 = inlined_call_operand.vmem [shape: bf16[2,4,128,8], index: 6, kind: output, shape index: {0}]   ;;  %s6164_s7 = inlined_call_operand.vmem [shape: bf16[2,4,128,8], index: 7, kind: output, shape index: {1}]   ;;  %s6165_s8 = inlined_call_operand.vmem [shape: bf16[2,4,128,8], index: 8, kind: output, shape index: {2}]  }
   0x1   :  { %6255 = sst [smem:[#allocation50_spill]] %s6158_s1 }
   0x2   :  { %s4318_s27 = smov 0   ;;  %s4320_s28 = smov 0  }
   0x3   :  { %s4322_s29 = smov 0   ;;  %s4324_s30 = smov 0  }
   0x4   :  { %s4326_s9 = smov 0   ;;  %s4328_s10 = smov 0  }
   0x5   :  { %s4330_s11 = smov 0  }
   0x6 LB: > { %s28_s12 = sadd.s32 1, %s4252_s9  ;;  %s31_s13 = sadd.s32 1, %s4256_s10  ;;  %s4260_s11 = sphi %s4330_s11, %s19_s11   ;;  %s4256_s10 = sphi %s4328_s10, %s6418_s10   ;;  %s4252_s9 = sphi %s4326_s9, %s6417_s9   ;;  %s4248_s30 = sphi %s4324_s30, %s6416_s30   ;;  %s4244_s29 = sphi %s4322_s29, %s6415_s29   ;;  %s4240_s28 = sphi %s4320_s28, %s6414_s28   ;;  %s4236_s27 = sphi %s4318_s27, %s6413_s27  }
   0x7   : > { %p29_p0 = scmp.ge.s32.totalorder %s28_s12, 2  ;;  %s3540_s14 = sadd.s32 4294967295, %s4260_s11  }
   0x8   : > { %p193_p1 = scmp.ne.s32.totalorder %s4240_s28, %s4236_s27  ;;  %p194_p2 = scmp.eq.s32.totalorder %s3540_s14, 3 }
   0x9   : > { %s6420_s12 = smov (%p29_p0, %s28_s12), 0  ;;  %s6422_s13 = smov (!%p29_p0, %s31_s13), %s4256_s10 }
   0xa   : > { %s179_s15 = ssub.s32 %s4252_s9, %s6420_s12  ;;  %p33_p3 = scmp.ge.s32.totalorder %s6422_s13, 2 }
   0xb   : > { %p3544_p4 = scmp.ge.s32.totalorder %s4260_s11, 1  ;;  %p4362_p5 = por %p194_p2, %p193_p1 }
   0xc   : > { %p314_p6 = scmp.lt.s32.totalorder %s4260_s11, 5  ;;  %s6424_s13 = smov (%p33_p3, %s6422_s13), 0 }
   0xd   : > { %6257 = sst [smem:[#allocation5_spill]] %s6424_s13  ;;  %s178_s17 = ssub.s32 %s4256_s10, %s6424_s13 }
   0xe   : > { %p315_p7 = pnand %p3544_p4, %p314_p6  ;;  %s180_s18 = sor.u32 %s179_s15, %s178_s17 }
   0xf   : > { %s183_s19 = sadd.s32 1, %s4240_s28  ;;  %p181_p8 = scmp.eq.s32.totalorder %s180_s18, 0 }
  0x10   : > { %318 = sbr.rel (%p315_p7) target bundleno = 1494 (0x5d6), region = 44 }
  0x11   : > { %s4373_s20 = scalar_select %p181_p8, %s4240_s28, %s183_s19  }
  0x17   : > { %s6258_s1 = sld [smem:[#allocation50_spill]]  ;;  %s4378_s23 = sshll.u32 %s4244_s29, 3  ;;  %v4178_v2 = vld [vmem:[%s6159_s2] sm:$0xff]   ;;  %vm439_vm0 = vcmask 261120   ;;  %v4179_v6 = vld [vmem:[%s6159_s2 + $0x8] sm:$0xff]   ;;  %vm912_vm1 = vcmask 60416  }
  0x18   : > { %p370_p9 = scmp.lt.s32.totalorder %s4248_s30, 1  ;;  %p372_p10 = scmp.lt.s32.totalorder %s4378_s23, 15  ;;  %v4180_v3 = vld [vmem:[%s6160_s3] sm:$0xff]   ;;  %v4181_v11 = vld [vmem:[%s6160_s3 + $0x8] sm:$0xff]   ;;  %vm871_vm2 = vcmask 31744  }
  0x19   : > { %s4265_s15 = smov 16   ;;  %s4267_s19 = smov 120  }
  0x1a   : > { %s371_s26 = scalar_select %p370_p9, %s4248_s30, 1 }
  0x1b   : > { %s4387_s14 = scalar_select %p372_p10, %s4378_s23, 15 }
  0x1c   : > { %s3549_s17 = sshll.u32 %s371_s26, 4  ;;  %s4266_s26 = smov 124  }
  0x1d   : > { %v4172_v0 = vld [vmem:[%s6258_s1] sm:$0xff]   ;;  %v4173_v1 = vld [vmem:[%s6258_s1 + $0x8] sm:$0xff]   ;;  %s375_s21 = sadd.s32 %s3549_s17, %s4387_s14  ;;  %s3552_s24 = sshll.u32 %s4387_s14, 3 }
  0x1e   : > { %3825 = vmatprep.subr.bf16.mxu0 %v4172_v0  ;;  %3861 = vmatprep.subr.bf16.mxu1 %v4172_v0  ;;  %s3550_s22 = sshll.u32 %s375_s21, 2  ;;  %s4405_s29 = scalar_lea.vmem %s6162_s5, %s3552_s24 }
  0x1f   : > { %3826 = vmatpush3.bf16.msra.mxu0 %v4172_v0  ;;  %3863 = vmatpush3.bf16.msra.mxu1 %v4172_v0  ;;  %s377_s13 = scalar_lea.vmem %s6157_s0, %s3550_s22  ;;  %v4414_v9 = vld [vmem:[%s4405_s29] sm:$0xff]  ;;  %v4417_v10 = vld [vmem:[%s4405_s29 + $0x10] sm:$0xff]  ;;  %s4262_s1 = smov 4   ;;  %v4428_v12 = vld [vmem:[%s4405_s29 + $0x8] sm:$0xff] }
  0x20   : > { %3827 = vmatprep.subr.bf16.mxu0 %v4173_v1  ;;  %3862 = vmatprep.subr.bf16.mxu1 %v4173_v1  ;;  %v4174_v4 = vld [vmem:[%s377_s13] sm:$0xff]   ;;  %v4175_v5 = vld [vmem:[%s377_s13 + $0x10] sm:$0xff]   ;;  %v4176_v7 = vld [vmem:[%s377_s13 + $0x8] sm:$0xff]   ;;  %s4459_s25 = scalar_lea.vmem %s6161_s4, %s3552_s24  ;;  %s4263_s14 = smov 8  }
  0x21   : > { %3829 = vmatprep.mubr.msk.bf16.mxu0 %vm439_vm0, %v4174_v4  ;;  %3833 = vmatprep.mubr.msk.bf16.mxu1 %vm439_vm0, %v4175_v5  ;;  %v4177_v8 = vld [vmem:[%s377_s13 + $0x18] sm:$0xff]   ;;  %v4440_v14 = vld [vmem:[%s4405_s29 + $0x20] sm:$0xff]  ;;  %v4443_v15 = vld [vmem:[%s4405_s29 + $0x28] sm:$0xff]  ;;  %s4264_s24 = smov 12   ;;  %s354_s17 = sand.u32 1, %s4236_s27  }
  0x22   : > { %711 = vrot.lane.b32.xlu0 %v4414_v9, %s4262_s1  ;;  %715 = vrot.lane.b32.xlu1 %v4417_v10, %s4262_s1  ;;  %v4432_v13 = vld [vmem:[%s4405_s29 + $0x18] sm:$0xff]  ;;  %v4451_v16 = vld [vmem:[%s4405_s29 + $0x30] sm:$0xff]  ;;  %s4672_s18 = sshll.u32 %s354_s17, 7  ;;  %s4268_s13 = smov 20  }
  0x23   : > { %3828 = vmatpush3.bf16.msra.mxu0 %v4173_v1  ;;  %3864 = vmatpush3.bf16.msra.mxu1 %v4173_v1  ;;  %v4462_v17 = vld [vmem:[%s4405_s29 + $0x38] sm:$0xff]  ;;  %v4471_v18 = vld [vmem:[%s4459_s25] sm:$0xff]  ;;  %v4474_v19 = vld [vmem:[%s4459_s25 + $0x8] sm:$0xff]  ;;  %s4700_s27 = scalar_lea.vmem [#allocation4], %s4672_s18  ;;  %s4948_s21 = scalar_lea.vmem [#allocation2], %s4672_s18 }
  0x24   : > { %3837 = vmatprep.subr.bf16.mxu1 %v4178_v2  ;;  %3849 = vmatprep.subr.bf16.mxu0 %v4180_v3  ;;  %6259 = vst [vmem:[#allocation6_spill] sm:$0xff] %v4471_v18  ;;  %6260 = vst [vmem:[#allocation7_spill] sm:$0xff] %v4474_v19  ;;  %v4482_v20 = vld [vmem:[%s4459_s25 + $0x10] sm:$0xff]  ;;  %v4485_v21 = vld [vmem:[%s4459_s25 + $0x18] sm:$0xff]  ;;  %s5116_s22 = scalar_lea.vmem [#allocation3], %s4672_s18 }
  0x25   : > { %v4493_v22 = vld [vmem:[%s4459_s25 + $0x20] sm:$0xff]  ;;  %v4496_v23 = vld [vmem:[%s4459_s25 + $0x28] sm:$0xff]  ;;  %v4503_v24 = vld [vmem:[%s4459_s25 + $0x30] sm:$0xff] }
  0x26   : > { %3830 = vmatmul.mubr.msk.bf16.vlgmr.msra.gmra.mrb[0].mxu0 %vm439_vm0, %v4176_v7  ;;  %3834 = vmatmul.mubr.msk.bf16.vlgmr.msra.gmra.mrb[0].mxu1 %vm439_vm0, %v4177_v8  ;;  %6261 = vst [vmem:[#allocation8_spill] sm:$0xff] %v4493_v22  ;;  %6262 = vst [vmem:[#allocation9_spill] sm:$0xff] %v4496_v23  ;;  %v4506_v25 = vld [vmem:[%s4459_s25 + $0x38] sm:$0xff] }
  0x27   : > { %3838 = vmatpush3.bf16.msra.mxu1 %v4178_v2  ;;  %3841 = vmatprep.mubr.msk.bf16.mxu1 %vm439_vm0, %v4174_v4 }
  0x28   : > { %3839 = vmatprep.subr.bf16.mxu1 %v4179_v6  ;;  %3850 = vmatpush3.bf16.msra.mxu0 %v4180_v3 }
  0x29   : > { %3853 = vmatprep.mubr.msk.bf16.mxu0 %vm439_vm0, %v4174_v4  ;;  %713 = vrot.lane.b32.xlu0 %v4428_v12, %s4262_s1 }
  0x2a   : > { %3851 = vmatprep.subr.bf16.mxu0 %v4181_v11  ;;  %717 = vrot.lane.b32.xlu1 %v4432_v13, %s4262_s1 }
  0x2b   : > { %3840 = vmatpush3.bf16.msra.mxu1 %v4179_v6 }
  0x2c   : > { %3852 = vmatpush3.bf16.msra.mxu0 %v4181_v11 }
  0x2d   : > { %719 = vrot.lane.b32.xlu0 %v4440_v14, %s4262_s1 }
  0x2e   : > { %3842 = vmatmul.mubr.msk.bf16.vlgmr.msra.gmra.mrb[4].mxu1 %vm439_vm0, %v4176_v7  ;;  %721 = vrot.lane.b32.xlu1 %v4443_v15, %s4262_s1 }
  0x2f   : > { %3845 = vmatprep.mubr.msk.bf16.mxu1 %vm439_vm0, %v4175_v5  ;;  %3854 = vmatmul.mubr.msk.bf16.vlgmr.msra.gmra.mrb[4].mxu0 %vm439_vm0, %v4176_v7 }
  0x30   : > { %3857 = vmatprep.mubr.msk.bf16.mxu0 %vm439_vm0, %v4175_v5 }
  0x31   : > { %723 = vrot.lane.b32.xlu0 %v4451_v16, %s4262_s1 }
  0x32   : > { %725 = vrot.lane.b32.xlu1 %v4462_v17, %s4262_s1 }
  0x35   : > { %791 = vrot.lane.b32.xlu0 %v4471_v18, %s4262_s1 }
  0x36   : > { %3846 = vmatmul.mubr.msk.bf16.gmra.mrb[8].mxu1 %vm439_vm0, %v4177_v8  ;;  %793 = vrot.lane.b32.xlu1 %v4474_v19, %s4262_s1 }
  0x37   : > { %3858 = vmatmul.mubr.msk.bf16.gmra.mrb[8].mxu0 %vm439_vm0, %v4177_v8 }
  0x39   : > { %795 = vrot.lane.b32.xlu0 %v4482_v20, %s4262_s1 }
  0x3a   : > { %797 = vrot.lane.b32.xlu1 %v4485_v21, %s4262_s1 }
  0x3d   : > { %799 = vrot.lane.b32.xlu0 %v4493_v22, %s4262_s1 }
  0x3e   : > { %801 = vrot.lane.b32.xlu1 %v4496_v23, %s4262_s1 }
  0x41   : > { %803 = vrot.lane.b32.xlu0 %v4503_v24, %s4262_s1 }
  0x42   : > { %805 = vrot.lane.b32.xlu1 %v4506_v25, %s4262_s1 }
  0x45   : > { %1121 = vrot.lane.b32.xlu0 %v4471_v18, %s4263_s14 }
  0x46   : > { %1123 = vrot.lane.b32.xlu1 %v4474_v19, %s4263_s14 }
  0x49   : > { %1125 = vrot.lane.b32.xlu0 %v4482_v20, %s4263_s14 }
  0x4a   : > { %1127 = vrot.lane.b32.xlu1 %v4485_v21, %s4263_s14 }
  0x4d   : > { %1129 = vrot.lane.b32.xlu0 %v4493_v22, %s4263_s14 }
  0x4e   : > { %1131 = vrot.lane.b32.xlu1 %v4496_v23, %s4263_s14 }
  0x51   : > { %1133 = vrot.lane.b32.xlu0 %v4503_v24, %s4263_s14 }
  0x52   : > { %1135 = vrot.lane.b32.xlu1 %v4506_v25, %s4263_s14 }
  0x55   : > { %1153 = vrot.lane.b32.xlu0 %v4414_v9, %s4264_s24 }
  0x56   : > { %1155 = vrot.lane.b32.xlu1 %v4428_v12, %s4264_s24 }
  0x59   : > { %1157 = vrot.lane.b32.xlu0 %v4417_v10, %s4264_s24 }
  0x5a   : > { %1159 = vrot.lane.b32.xlu1 %v4432_v13, %s4264_s24 }
  0x5d   : > { %1161 = vrot.lane.b32.xlu0 %v4440_v14, %s4264_s24 }
  0x5e   : > { %1163 = vrot.lane.b32.xlu1 %v4443_v15, %s4264_s24 }
  0x61   : > { %1165 = vrot.lane.b32.xlu0 %v4451_v16, %s4264_s24 }
  0x62   : > { %1167 = vrot.lane.b32.xlu1 %v4462_v17, %s4264_s24 }
  0x65   : > { %1225 = vrot.lane.b32.xlu0 %v4471_v18, %s4264_s24 }
  0x66   : > { %1227 = vrot.lane.b32.xlu1 %v4474_v19, %s4264_s24 }
  0x69   : > { %1229 = vrot.lane.b32.xlu0 %v4482_v20, %s4264_s24 }
  0x6a   : > { %1231 = vrot.lane.b32.xlu1 %v4485_v21, %s4264_s24 }
  0x6d   : > { %1233 = vrot.lane.b32.xlu0 %v4493_v22, %s4264_s24 }
  0x6e   : > { %1235 = vrot.lane.b32.xlu1 %v4496_v23, %s4264_s24 }
  0x71   : > { %1237 = vrot.lane.b32.xlu0 %v4503_v24, %s4264_s24 }
  0x72   : > { %1239 = vrot.lane.b32.xlu1 %v4506_v25, %s4264_s24  ;;  %s4271_s24 = smov 28  }
  0x75   : > { %1257 = vrot.lane.b32.xlu0 %v4414_v9, %s4263_s14 }
  0x76   : > { %1259 = vrot.lane.b32.xlu1 %v4428_v12, %s4263_s14 }
  0x79   : > { %1261 = vrot.lane.b32.xlu0 %v4417_v10, %s4263_s14 }
  0x7a   : > { %1263 = vrot.lane.b32.xlu1 %v4432_v13, %s4263_s14 }
  0x7d   : > { %1265 = vrot.lane.b32.xlu0 %v4440_v14, %s4263_s14 }
  0x7e   : > { %1267 = vrot.lane.b32.xlu1 %v4443_v15, %s4263_s14 }
  0x81   : > { %1269 = vrot.lane.b32.xlu0 %v4451_v16, %s4263_s14 }
  0x82   : > { %1271 = vrot.lane.b32.xlu1 %v4462_v17, %s4263_s14  ;;  %s4270_s14 = smov 24  }
  0x85   : > { %1700 = vrot.lane.b32.xlu0 %v4471_v18, %s4265_s15 }
  0x86   : > { %1702 = vrot.lane.b32.xlu1 %v4474_v19, %s4265_s15 }
  0x94   : > { %v4564_v26 = vpop.permute.xlu0 %711  ;;  %v4566_v27 = vpop.permute.xlu1 %715 }
  0x9b   : > { %v4568_v28 = vpop.permute.xlu0 %713 }
  0x9c   : > { %v4570_v29 = vpop.permute.xlu1 %717 }
  0x9f   : > { %v4572_v30 = vpop.permute.xlu0 %719 }
  0xa0   : > { %v4574_v31 = vpop.permute.xlu1 %721 }
  0xa3   : > { %v4576_v32 = vpop.permute.xlu0 %723 }
  0xa4   : > { %v4578_v33 = vpop.permute.xlu1 %725 }
  0xa7   : > { %v4580_v34 = vpop.permute.xlu0 %791 }
  0xa8   : > { %6263 = vst [vmem:[#allocation10_spill] sm:$0xff] %v4580_v34  ;;  %v4582_v35 = vpop.permute.xlu1 %793 }
  0xa9   : > { %6264 = vst [vmem:[#allocation11_spill] sm:$0xff] %v4582_v35 }
  0xab   : > { %v4584_v36 = vpop.permute.xlu0 %795 }
  0xac   : > { %v4586_v37 = vpop.permute.xlu1 %797 }
  0xaf   : > { %v4588_v38 = vpop.permute.xlu0 %799 }
  0xb0   : > { %6265 = vst [vmem:[#allocation12_spill] sm:$0xff] %v4588_v38  ;;  %v4590_v39 = vpop.permute.xlu1 %801 }
  0xb1   : > { %6266 = vst [vmem:[#allocation13_spill] sm:$0xff] %v4590_v39 }
  0xb3   : > { %v4592_v40 = vpop.permute.xlu0 %803 }
  0xb4   : > { %v4594_v41 = vpop.permute.xlu1 %805 }
  0xb5   : > { %6267 = vst [vmem:[#allocation14_spill] sm:$0xff] %v4594_v41 }
  0xb7   : > { %v4596_v42 = vpop.permute.xlu0 %1121 }
  0xb8   : > { %6268 = vst [vmem:[#allocation15_spill] sm:$0xff] %v4596_v42  ;;  %v4598_v43 = vpop.permute.xlu1 %1123 }
  0xb9   : > { %6269 = vst [vmem:[#allocation16_spill] sm:$0xff] %v4598_v43 }
  0xbb   : > { %v4600_v44 = vpop.permute.xlu0 %1125 }
  0xbc   : > { %6270 = vst [vmem:[#allocation17_spill] sm:$0xff] %v4600_v44  ;;  %v4602_v45 = vpop.permute.xlu1 %1127 }
  0xbd   : > { %6271 = vst [vmem:[#allocation18_spill] sm:$0xff] %v4602_v45 }
  0xbf   : > { %v4604_v46 = vpop.permute.xlu0 %1129 }
  0xc0   : > { %6272 = vst [vmem:[#allocation19_spill] sm:$0xff] %v4604_v46  ;;  %v4606_v47 = vpop.permute.xlu1 %1131 }
  0xc1   : > { %6273 = vst [vmem:[#allocation20_spill] sm:$0xff] %v4606_v47 }
  0xc3   : > { %v4608_v48 = vpop.permute.xlu0 %1133 }
  0xc4   : > { %6274 = vst [vmem:[#allocation21_spill] sm:$0xff] %v4608_v48  ;;  %v4610_v49 = vpop.permute.xlu1 %1135 }
  0xc5   : > { %6275 = vst [vmem:[#allocation22_spill] sm:$0xff] %v4610_v49 }
  0xc7   : > { %v4612_v50 = vpop.permute.xlu0 %1153 }
  0xc8   : > { %v4614_v51 = vpop.permute.xlu1 %1155 }
  0xcb   : > { %v4616_v52 = vpop.permute.xlu0 %1157 }
  0xcc   : > { %v4618_v53 = vpop.permute.xlu1 %1159 }
  0xcf   : > { %v4620_v54 = vpop.permute.xlu0 %1161 }
  0xd0   : > { %v4622_v55 = vpop.permute.xlu1 %1163 }
  0xd3   : > { %v4624_v56 = vpop.permute.xlu0 %1165 }
  0xd4   : > { %v4626_v57 = vpop.permute.xlu1 %1167 }
  0xd7   : > { %v4628_v58 = vpop.permute.xlu0 %1225 }
  0xd8   : > { %6276 = vst [vmem:[#allocation23_spill] sm:$0xff] %v4628_v58  ;;  %v4630_v59 = vpop.permute.xlu1 %1227 }
  0xd9   : > { %6277 = vst [vmem:[#allocation24_spill] sm:$0xff] %v4630_v59 }
  0xdb   : > { %v4632_v60 = vpop.permute.xlu0 %1229 }
  0xdc   : > { %6278 = vst [vmem:[#allocation25_spill] sm:$0xff] %v4632_v60  ;;  %v4634_v61 = vpop.permute.xlu1 %1231 }
  0xdd   : > { %6279 = vst [vmem:[#allocation26_spill] sm:$0xff] %v4634_v61 }
  0xdf   : > { %v4636_v62 = vpop.permute.xlu0 %1233 }
  0xe0   : > { %6280 = vst [vmem:[#allocation27_spill] sm:$0xff] %v4636_v62  ;;  %v4638_v63 = vpop.permute.xlu1 %1235 }
  0xe1   : > { %6281 = vst [vmem:[#allocation28_spill] sm:$0xff] %v4638_v63 }
  0xe3   : > { %v4640_v0 = vpop.permute.xlu0 %1237 }
  0xe4   : > { %6282 = vst [vmem:[#allocation29_spill] sm:$0xff] %v4640_v0  ;;  %v4654_v7 = vpop.permute.xlu1 %1239 }
  0xe5   : > { %6283 = vst [vmem:[#allocation30_spill] sm:$0xff] %v4654_v7 }
  0xe8   : > { %v4681_v46 = vpop.permute.xlu1 %1259 }
  0xf9   : > { %v4642_v1 = vpop.f32.mrb[0].mxu0  ;;  %v4644_v2 = vpop.f32.mrb[0].mxu1 }
  0xfa   : > { %v4646_v3 = vpop.f32.mrb[1].mxu0  ;;  %v737_v4 = vmul.f32 %v4642_v1, %v4566_v27  ;;  %v4650_v5 = vpop.f32.mrb[1].mxu1  ;;  %v741_v59 = vmul.f32 %v4644_v2, %v4576_v32  ;;  %v829_v19 = vmul.f32 %v4644_v2, %v4451_v16  ;;  %v1183_v48 = vmul.f32 %v4644_v2, %v4624_v56 }
  0xfb   : > { %v4652_v6 = vpop.f32.mrb[2].mxu0  ;;  %v4656_v8 = vpop.f32.mrb[2].mxu1 }
  0xfc   : > { %755 = vrot.lane.b32.xlu0 %v737_v4, %s4266_s26  ;;  %v738_v11 = vmul.f32 %v4652_v6, %v4570_v29  ;;  %v4661_v63 = vpop.f32.mrb[3].mxu1  ;;  %v4663_v62 = vpop.f32.mrb[3].mxu0  ;;  %v742_v58 = vmul.f32 %v4656_v8, %v4578_v33  ;;  %v826_v42 = vmul.f32 %v4652_v6, %v4432_v13  ;;  %v1180_v0 = vmul.f32 %v4652_v6, %v4618_v53 }
  0xfd   : > { %v4674_v4 = vpop.permute.xlu0 %1257 }
  0xfe   : > { %757 = vrot.lane.b32.xlu1 %v738_v11, %s4266_s26  ;;  %v825_v11 = vmul.f32 %v4642_v1, %v4417_v10 }
 0x100   : > { %763 = vrot.lane.b32.xlu0 %v741_v59, %s4266_s26 }
 0x101   : > { %v4676_v47 = vpop.f32.mrb[4].mxu1  ;;  %v4715_v23 = vpop.permute.xlu0 %1261 }
 0x102   : > { %765 = vrot.lane.b32.xlu1 %v742_v58, %s4266_s26  ;;  %v4683_v43 = vpop.f32.mrb[5].mxu1  ;;  %v3855_v39 = vpop.f32.mrb[4].mxu0 }
 0x103   : > { %v4685_v59 = vpop.f32.mrb[6].mxu1  ;;  %v4692_v58 = vpack.c.bf16 %v3855_v39, %v3855_v39  ;;  %v648_v35 = vpop.f32.mrb[5].mxu0 }
 0x104   : > { %843 = vrot.lane.b32.xlu0 %v825_v11, %s4262_s1  ;;  %v4690_v38 = vpop.f32.mrb[7].mxu1  ;;  %v4697_v34 = vpack.c.bf16 %v648_v35, %v648_v35  ;;  %v3856_v18 = vpop.f32.mrb[6].mxu0 }
 0x105   : > { %6284 = vst [vmem:[#allocation31_spill] sm:$0xff] %v4692_v58  ;;  %1115 = vst.msk [vmem:[%s4700_s27 + $0x8] sm:$0xf] %vm912_vm1, %v4692_v58  ;;  %v4705_v39 = vpack.c.bf16 %v3856_v18, %v3856_v18  ;;  %v651_v11 = vpop.f32.mrb[7].mxu0  ;;  %v1179_v18 = vmul.f32 %v4642_v1, %v4616_v52  ;;  %v4746_v44 = vpop.permute.xlu0 %1265 }
 0x106   : > { %845 = vrot.lane.b32.xlu1 %v826_v42, %s4262_s1  ;;  %6285 = vst [vmem:[#allocation32_spill] sm:$0xff] %v4697_v34  ;;  %v830_v42 = vmul.f32 %v4656_v8, %v4462_v17  ;;  %1113 = vst.msk [vmem:[%s4700_s27] sm:$0xf] %vm912_vm1, %v4697_v34  ;;  %v4713_v35 = vpack.c.bf16 %v651_v11, %v651_v11 }
 0x107   : > { %6286 = vst [vmem:[#allocation33_spill] sm:$0xff] %v4705_v39  ;;  %1116 = vst.msk [vmem:[%s4700_s27 + $0xc] sm:$0xf] %vm912_vm1, %v4705_v39 }
 0x108   : > { %851 = vrot.lane.b32.xlu0 %v829_v19, %s4262_s1  ;;  %6287 = vst [vmem:[#allocation34_spill] sm:$0xff] %v4713_v35  ;;  %1114 = vst.msk [vmem:[%s4700_s27 + $0x4] sm:$0xf] %vm912_vm1, %v4713_v35  ;;  %v4728_v19 = vpop.permute.xlu1 %1263 }
 0x109   : > { %v4720_v22 = vpop.f32.mrb[8].mxu1 }
 0x10a   : > { %853 = vrot.lane.b32.xlu1 %v830_v42, %s4262_s1  ;;  %v4730_v11 = vpop.f32.mrb[9].mxu1  ;;  %v3859_v42 = vpop.f32.mrb[8].mxu0 }
 0x10b   : > { %v4732_v7 = vpop.f32.mrb[10].mxu1  ;;  %v4739_v60 = vpack.c.bf16 %v3859_v42, %v3859_v42  ;;  %v664_v49 = vpop.f32.mrb[9].mxu0 }
 0x10c   : > { %1197 = vrot.lane.b32.xlu0 %v1179_v18, %s4266_s26  ;;  %v4737_v61 = vpop.f32.mrb[11].mxu1  ;;  %v4744_v45 = vpack.c.bf16 %v664_v49, %v664_v49  ;;  %v3860_v18 = vpop.f32.mrb[10].mxu0 }
 0x10d   : > { %6288 = vst [vmem:[#allocation35_spill] sm:$0xff] %v4737_v61  ;;  %6289 = vst [vmem:[#allocation36_spill] sm:$0xff] %v4739_v60  ;;  %v4751_v41 = vpack.c.bf16 %v3860_v18, %v3860_v18  ;;  %v667_v61 = vpop.f32.mrb[11].mxu0  ;;  %v4761_v49 = vpop.permute.xlu1 %1267  ;;  %v1283_v18 = vmul.f32 %v4642_v1, %v4715_v23 }
 0x10e   : > { %1199 = vrot.lane.b32.xlu1 %v1180_v0, %s4266_s26  ;;  %6290 = vst [vmem:[#allocation37_spill] sm:$0xff] %v4744_v45  ;;  %1119 = vst.msk [vmem:[%s4700_s27 + $0x18] sm:$0xf] %vm912_vm1, %v4739_v60  ;;  %v1184_v0 = vmul.f32 %v4656_v8, %v4626_v57  ;;  %v4759_v42 = vpack.c.bf16 %v667_v61, %v667_v61  ;;  %v4775_v61 = vpop.permute.xlu0 %1269 }
 0x10f   : > { %6291 = vst [vmem:[#allocation38_spill] sm:$0xff] %v4751_v41  ;;  %1117 = vst.msk [vmem:[%s4700_s27 + $0x10] sm:$0xf] %vm912_vm1, %v4744_v45  ;;  %v1287_v45 = vmul.f32 %v4644_v2, %v4775_v61 }
 0x110   : > { %1205 = vrot.lane.b32.xlu0 %v1183_v48, %s4266_s26  ;;  %6292 = vst [vmem:[#allocation39_spill] sm:$0xff] %v4759_v42  ;;  %1120 = vst.msk [vmem:[%s4700_s27 + $0x1c] sm:$0xf] %vm912_vm1, %v4751_v41  ;;  %v1284_v48 = vmul.f32 %v4652_v6, %v4728_v19 }
 0x111   : > { %1118 = vst.msk [vmem:[%s4700_s27 + $0x14] sm:$0xf] %vm912_vm1, %v4759_v42  ;;  %v4780_v41 = vpop.permute.xlu1 %1271  ;;  %v739_v42 = vmul.f32 %v4572_v30, %v4650_v5 }
 0x112   : > { %1207 = vrot.lane.b32.xlu1 %v1184_v0, %s4266_s26  ;;  %v1288_v0 = vmul.f32 %v4656_v8, %v4780_v41 }
 0x114   : > { %1301 = vrot.lane.b32.xlu0 %v1283_v18, %s4262_s1  ;;  %v735_v18 = vmul.f32 %v4564_v26, %v4646_v3 }
 0x116   : > { %1303 = vrot.lane.b32.xlu1 %v1284_v48, %s4262_s1  ;;  %v736_v48 = vmul.f32 %v4568_v28, %v4663_v62 }
 0x118   : > { %1309 = vrot.lane.b32.xlu0 %v1287_v45, %s4262_s1  ;;  %v740_v45 = vmul.f32 %v4574_v31, %v4661_v63 }
 0x11a   : > { %1311 = vrot.lane.b32.xlu1 %v1288_v0, %s4262_s1  ;;  %v823_v0 = vmul.f32 %v4414_v9, %v4646_v3 }
 0x11c   : > { %751 = vrot.lane.b32.xlu0 %v735_v18, %s4266_s26  ;;  %v824_v18 = vmul.f32 %v4428_v12, %v4663_v62 }
 0x11e   : > { %753 = vrot.lane.b32.xlu1 %v736_v48, %s4266_s26  ;;  %v827_v48 = vmul.f32 %v4440_v14, %v4650_v5 }
 0x120   : > { %759 = vrot.lane.b32.xlu0 %v739_v42, %s4266_s26  ;;  %v828_v42 = vmul.f32 %v4443_v15, %v4661_v63 }
 0x122   : > { %761 = vrot.lane.b32.xlu1 %v740_v45, %s4266_s26  ;;  %v1177_v45 = vmul.f32 %v4612_v50, %v4646_v3 }
 0x124   : > { %839 = vrot.lane.b32.xlu0 %v823_v0, %s4262_s1  ;;  %v1178_v0 = vmul.f32 %v4614_v51, %v4663_v62 }
 0x126   : > { %841 = vrot.lane.b32.xlu1 %v824_v18, %s4262_s1  ;;  %v1181_v18 = vmul.f32 %v4620_v54, %v4650_v5 }
 0x128   : > { %847 = vrot.lane.b32.xlu0 %v827_v48, %s4262_s1  ;;  %v1182_v48 = vmul.f32 %v4622_v55, %v4661_v63 }
 0x12a   : > { %849 = vrot.lane.b32.xlu1 %v828_v42, %s4262_s1  ;;  %v1281_v42 = vmul.f32 %v4674_v4, %v4646_v3 }
 0x12c   : > { %1193 = vrot.lane.b32.xlu0 %v1177_v45, %s4266_s26  ;;  %v1282_v45 = vmul.f32 %v4681_v46, %v4663_v62 }
 0x12e   : > { %1195 = vrot.lane.b32.xlu1 %v1178_v0, %s4266_s26  ;;  %v1285_v0 = vmul.f32 %v4746_v44, %v4650_v5 }
 0x130   : > { %1201 = vrot.lane.b32.xlu0 %v1181_v18, %s4266_s26  ;;  %v1286_v18 = vmul.f32 %v4761_v49, %v4661_v63 }
 0x132   : > { %1203 = vrot.lane.b32.xlu1 %v1182_v48, %s4266_s26  ;;  %v931_v48 = vmul.f32 %v4676_v47, %v4566_v27  ;;  %v1452_v27 = vmul.f32 %v4676_v47, %v4616_v52  ;;  %v929_v52 = vmul.f32 %v4564_v26, %v4683_v43  ;;  %v1450_v26 = vmul.f32 %v4612_v50, %v4683_v43 }
 0x133   : > { %v935_v50 = vmul.f32 %v4720_v22, %v4576_v32  ;;  %v1456_v32 = vmul.f32 %v4720_v22, %v4624_v56 }
 0x134   : > { %1297 = vrot.lane.b32.xlu0 %v1281_v42, %s4262_s1  ;;  %v932_v42 = vmul.f32 %v4685_v59, %v4570_v29  ;;  %v1453_v29 = vmul.f32 %v4685_v59, %v4618_v53  ;;  %v985_v53 = vmul.f32 %v4414_v9, %v4683_v43 }
 0x136   : > { %1299 = vrot.lane.b32.xlu1 %v1282_v45, %s4262_s1  ;;  %v987_v45 = vmul.f32 %v4676_v47, %v4417_v10 }
 0x138   : > { %1305 = vrot.lane.b32.xlu0 %v1285_v0, %s4262_s1  ;;  %v988_v0 = vmul.f32 %v4685_v59, %v4432_v13 }
 0x13a   : > { %1307 = vrot.lane.b32.xlu1 %v1286_v18, %s4262_s1  ;;  %v1508_v18 = vmul.f32 %v4676_v47, %v4715_v23  ;;  %v930_v23 = vmul.f32 %v4568_v28, %v4690_v38  ;;  %v1451_v28 = vmul.f32 %v4614_v51, %v4690_v38  ;;  %v991_v51 = vmul.f32 %v4720_v22, %v4451_v16 }
 0x13c   : > { %949 = vrot.lane.b32.xlu0 %v931_v48, %s4266_s26  ;;  %v1509_v48 = vmul.f32 %v4685_v59, %v4728_v19  ;;  %v986_v19 = vmul.f32 %v4428_v12, %v4690_v38 }
 0x13e   : > { %951 = vrot.lane.b32.xlu1 %v932_v42, %s4266_s26  ;;  %v1506_v42 = vmul.f32 %v4674_v4, %v4683_v43  ;;  %v4900_v4 = vpop.permute.xlu0 %1700 }
 0x13f   : > { %6293 = vst [vmem:[#allocation40_spill] sm:$0xff] %v4900_v4 }
 0x140   : > { %1005 = vrot.lane.b32.xlu0 %v987_v45, %s4262_s1  ;;  %v1507_v45 = vmul.f32 %v4681_v46, %v4690_v38  ;;  %v936_v46 = vmul.f32 %v4732_v7, %v4578_v33  ;;  %v1512_v33 = vmul.f32 %v4720_v22, %v4775_v61  ;;  %v817_v61 = vmul.f32 %v4642_v1, %v4584_v36 }
 0x142   : > { %1007 = vrot.lane.b32.xlu1 %v988_v0, %s4262_s1  ;;  %v4905_v0 = vpop.permute.xlu1 %1702 }
 0x143   : > { %6294 = vst [vmem:[#allocation41_spill] sm:$0xff] %v4905_v0 }
 0x144   : > { %1470 = vrot.lane.b32.xlu0 %v1452_v27, %s4266_s26  ;;  %v992_v27 = vmul.f32 %v4732_v7, %v4462_v17 }
 0x146   : > { %1472 = vrot.lane.b32.xlu1 %v1453_v29, %s4266_s26 }
 0x148   : > { %1526 = vrot.lane.b32.xlu0 %v1508_v18, %s4262_s1 }
 0x14a   : > { %1528 = vrot.lane.b32.xlu1 %v1509_v48, %s4262_s1  ;;  %v1457_v48 = vmul.f32 %v4732_v7, %v4626_v57  ;;  %v933_v57 = vmul.f32 %v4572_v30, %v4730_v11  ;;  %v821_v30 = vmul.f32 %v4644_v2, %v4592_v40 }
 0x14c   : > { %1671 = vrot.lane.b32.xlu0 %v4692_v58, %s4267_s19 }
 0x14e   : > { %1673 = vrot.lane.b32.xlu1 %v4705_v39, %s4267_s19 }
 0x150   : > { %945 = vrot.lane.b32.xlu0 %v929_v52, %s4266_s26 }
 0x152   : > { %947 = vrot.lane.b32.xlu1 %v930_v23, %s4266_s26  ;;  %v1513_v23 = vmul.f32 %v4732_v7, %v4780_v41  ;;  %v818_v41 = vmul.f32 %v4652_v6, %v4586_v37 }
 0x154   : > { %1001 = vrot.lane.b32.xlu0 %v985_v53, %s4262_s1  ;;  %v697_v53 = vmul.f32 %v4642_v1, %v4482_v20 }
 0x156   : > { %1003 = vrot.lane.b32.xlu1 %v986_v19, %s4262_s1 }
 0x158   : > { %1466 = vrot.lane.b32.xlu0 %v1450_v26, %s4266_s26 }
 0x15a   : > { %1468 = vrot.lane.b32.xlu1 %v1451_v28, %s4266_s26  ;;  %v698_v28 = vmul.f32 %v4652_v6, %v4485_v21 }
 0x15c   : > { %1522 = vrot.lane.b32.xlu0 %v1506_v42, %s4262_s1 }
 0x15e   : > { %1524 = vrot.lane.b32.xlu1 %v1507_v45, %s4262_s1  ;;  %v701_v45 = vmul.f32 %v4644_v2, %v4503_v24 }
 0x160   : > { %1667 = vrot.lane.b32.xlu0 %v4697_v34, %s4267_s19  ;;  %v6319_v34 = vld [vmem:[#allocation11_spill] sm:$0xff] }
 0x162   : > { %1669 = vrot.lane.b32.xlu1 %v4713_v35, %s4267_s19 }
 0x164   : > { %957 = vrot.lane.b32.xlu0 %v935_v50, %s4266_s26 }
 0x166   : > { %1706 = vrot.lane.b32.xlu1 %v4485_v21, %s4265_s15 }
 0x168   : > { %1013 = vrot.lane.b32.xlu0 %v991_v51, %s4262_s1 }
 0x16a   : > { %959 = vrot.lane.b32.xlu1 %v936_v46, %s4266_s26 }
 0x16c   : > { %1478 = vrot.lane.b32.xlu0 %v1456_v32, %s4266_s26 }
 0x16e   : > { %v756_v29 = vpop.permute.xlu0 %755  ;;  %1015 = vrot.lane.b32.xlu1 %v992_v27, %s4262_s1  ;;  %v702_v27 = vmul.f32 %v4656_v8, %v4506_v25 }
 0x16f   : > { %v777_v26 = vsub.f32 %v697_v53, %v756_v29 }
 0x170   : > { %v758_v18 = vpop.permute.xlu1 %757  ;;  %1534 = vrot.lane.b32.xlu0 %v1512_v33, %s4262_s1 }
 0x171   : > { %v778_v51 = vsub.f32 %v698_v28, %v758_v18 }
 0x172   : > { %v764_v56 = vpop.permute.xlu0 %763  ;;  %1480 = vrot.lane.b32.xlu1 %v1457_v48, %s4266_s26  ;;  %v6295_v48 = vld [vmem:[#allocation38_spill] sm:$0xff] }
 0x173   : > { %v781_v53 = vsub.f32 %v701_v45, %v764_v56 }
 0x174   : > { %v766_v52 = vpop.permute.xlu1 %765  ;;  %1679 = vrot.lane.b32.xlu0 %v4739_v60, %s4267_s19  ;;  %v6315_v60 = vld [vmem:[#allocation9_spill] sm:$0xff] }
 0x176   : > { %v844_v19 = vpop.permute.xlu0 %843  ;;  %1536 = vrot.lane.b32.xlu1 %v1513_v23, %s4262_s1  ;;  %v989_v23 = vmul.f32 %v4440_v14, %v4730_v11 }
 0x177   : > { %v865_v42 = vadd.f32 %v844_v19, %v817_v61  ;;  %v6296_v19 = vld [vmem:[#allocation14_spill] sm:$0xff] }
 0x178   : > { %v846_v50 = vpop.permute.xlu1 %845  ;;  %953 = vrot.lane.b32.xlu0 %v933_v57, %s4266_s26  ;;  %v822_v57 = vmul.f32 %v4656_v8, %v6296_v19 }
 0x179   : > { %v874_v46 = vsel %vm871_vm2, %v777_v26, %v865_v42  ;;  %v866_v32 = vadd.f32 %v846_v50, %v818_v41  ;;  %v6297_v42 = vld [vmem:[#allocation35_spill] sm:$0xff]  ;;  %v782_v41 = vsub.f32 %v702_v27, %v766_v52 }
 0x17a   : > { %v3737_v29 = vpack.c.bf16 %v874_v46, %v874_v46  ;;  %v852_v33 = vpop.permute.xlu0 %851  ;;  %1681 = vrot.lane.b32.xlu1 %v6295_v48, %s4267_s19  ;;  %v934_v56 = vmul.f32 %v4574_v31, %v6297_v42  ;;  %v6299_v31 = vld [vmem:[#allocation18_spill] sm:$0xff] }
 0x17b   : > { %v875_v18 = vsel %vm871_vm2, %v778_v51, %v866_v32  ;;  %v869_v61 = vadd.f32 %v852_v33, %v821_v30  ;;  %v1454_v32 = vmul.f32 %v4620_v54, %v4730_v11  ;;  %v1148_v52 = vmul.f32 %v4652_v6, %v6299_v31 }
 0x17c   : > { %915 = vst.msk [vmem:[%s4948_s21 + $0x8] sm:$0xf] %vm912_vm1, %v3737_v29  ;;  %v3738_v26 = vpack.c.bf16 %v875_v18, %v875_v18  ;;  %v854_v28 = vpop.permute.xlu1 %853  ;;  %1009 = vrot.lane.b32.xlu0 %v989_v23, %s4262_s1  ;;  %v6298_v29 = vld [vmem:[#allocation17_spill] sm:$0xff] }
 0x17d   : > { %v878_v45 = vsel %vm871_vm2, %v781_v53, %v869_v61  ;;  %v870_v50 = vadd.f32 %v854_v28, %v822_v57  ;;  %v1147_v33 = vmul.f32 %v4642_v1, %v6298_v29  ;;  %v990_v53 = vmul.f32 %v4443_v15, %v6297_v42  ;;  %v6301_v28 = vld [vmem:[#allocation21_spill] sm:$0xff] }
 0x17e   : > { %916 = vst.msk [vmem:[%s4948_s21 + $0xc] sm:$0xf] %vm912_vm1, %v3738_v26  ;;  %v3741_v51 = vpack.c.bf16 %v878_v45, %v878_v45  ;;  %v1198_v46 = vpop.permute.xlu0 %1197  ;;  %955 = vrot.lane.b32.xlu1 %v934_v56, %s4266_s26  ;;  %v1510_v57 = vmul.f32 %v4746_v44, %v4730_v11  ;;  %v1151_v56 = vmul.f32 %v4644_v2, %v6301_v28 }
 0x17f   : > { %v879_v30 = vsel %vm871_vm2, %v782_v41, %v870_v50  ;;  %v1219_v18 = vsub.f32 %v1147_v33, %v1198_v46  ;;  %v6302_v41 = vld [vmem:[#allocation22_spill] sm:$0xff]  ;;  %v6304_v33 = vld [vmem:[#allocation25_spill] sm:$0xff] }
 0x180   : > { %919 = vst.msk [vmem:[%s4948_s21 + $0x18] sm:$0xf] %vm912_vm1, %v3741_v51  ;;  %v3742_v27 = vpack.c.bf16 %v879_v30, %v879_v30  ;;  %v1200_v23 = vpop.permute.xlu1 %1199  ;;  %1474 = vrot.lane.b32.xlu0 %v1454_v32, %s4266_s26  ;;  %v1152_v45 = vmul.f32 %v4656_v8, %v6302_v41  ;;  %v1455_v51 = vmul.f32 %v4622_v55, %v6297_v42 }
 0x181   : > { %v1220_v61 = vsub.f32 %v1148_v52, %v1200_v23  ;;  %v1251_v52 = vmul.f32 %v4642_v1, %v6304_v33  ;;  %v1511_v55 = vmul.f32 %v4761_v49, %v6297_v42 }
 0x182   : > { %920 = vst.msk [vmem:[%s4948_s21 + $0x1c] sm:$0xf] %vm912_vm1, %v3742_v27  ;;  %v1206_v54 = vpop.permute.xlu0 %1205  ;;  %1011 = vrot.lane.b32.xlu1 %v990_v53, %s4262_s1  ;;  %v6305_v27 = vld [vmem:[#allocation26_spill] sm:$0xff] }
 0x183   : > { %v4976_v26 = vpack.i.bf16 %v1220_v61, %v1219_v18  ;;  %v1223_v46 = vsub.f32 %v1151_v56, %v1206_v54  ;;  %v1252_v23 = vmul.f32 %v4652_v6, %v6305_v27  ;;  %v6306_v18 = vld [vmem:[#allocation37_spill] sm:$0xff]  ;;  %v6314_v56 = vld [vmem:[#allocation8_spill] sm:$0xff] }
 0x184   : > { %v1208_v50 = vpop.permute.xlu1 %1207  ;;  %1530 = vrot.lane.b32.xlu0 %v1510_v57, %s4262_s1 }
 0x185   : > { %6300 = vst [vmem:[#allocation14_spill] sm:$0xff] %v4976_v26  ;;  %v1224_v32 = vsub.f32 %v1152_v45, %v1208_v50  ;;  %v6309_v45 = vld [vmem:[#allocation29_spill] sm:$0xff] }
 0x186   : > { %v1302_v30 = vpop.permute.xlu0 %1301  ;;  %1476 = vrot.lane.b32.xlu1 %v1455_v51, %s4266_s26  ;;  %v1255_v50 = vmul.f32 %v4644_v2, %v6309_v45  ;;  %v6310_v51 = vld [vmem:[#allocation30_spill] sm:$0xff] }
 0x187   : > { %v4986_v44 = vpack.i.bf16 %v1224_v32, %v1223_v46  ;;  %v4996_v61 = vadd.f32 %v1302_v30, %v1251_v52  ;;  %v1256_v46 = vmul.f32 %v4656_v8, %v6310_v51 }
 0x188   : > { %v1304_v53 = vpop.permute.xlu1 %1303  ;;  %1675 = vrot.lane.b32.xlu0 %v6306_v18, %s4267_s19  ;;  %v6318_v18 = vld [vmem:[#allocation7_spill] sm:$0xff] }
 0x189   : > { %6303 = vst [vmem:[#allocation35_spill] sm:$0xff] %v4986_v44  ;;  %6307 = vst [vmem:[#allocation17_spill] sm:$0xff] %v4996_v61  ;;  %v4998_v54 = vadd.f32 %v1304_v53, %v1252_v23  ;;  %v6313_v23 = vld [vmem:[#allocation39_spill] sm:$0xff]  ;;  %v696_v35 = vmul.f32 %v6318_v18, %v4663_v62 }
 0x18a   : > { %v1310_v57 = vpop.permute.xlu0 %1309  ;;  %1532 = vrot.lane.b32.xlu1 %v1511_v55, %s4262_s1 }
 0x18b   : > { %6308 = vst [vmem:[#allocation18_spill] sm:$0xff] %v4998_v54  ;;  %v5009_v49 = vadd.f32 %v1310_v57, %v1255_v50  ;;  %v6316_v57 = vld [vmem:[#allocation6_spill] sm:$0xff] }
 0x18c   : > { %v1312_v32 = vpop.permute.xlu1 %1311  ;;  %1704 = vrot.lane.b32.xlu0 %v4482_v20, %s4265_s15  ;;  %v695_v50 = vmul.f32 %v6316_v57, %v4646_v3 }
 0x18d   : > { %6311 = vst [vmem:[#allocation21_spill] sm:$0xff] %v5009_v49  ;;  %v5011_v30 = vadd.f32 %v1312_v32, %v1256_v46  ;;  %v6317_v46 = vld [vmem:[#allocation10_spill] sm:$0xff]  ;;  %v816_v49 = vmul.f32 %v6319_v34, %v4663_v62 }
 0x18e   : > { %v752_v52 = vpop.permute.xlu0 %751  ;;  %1677 = vrot.lane.b32.xlu1 %v6313_v23, %s4267_s19  ;;  %v815_v32 = vmul.f32 %v6317_v46, %v4646_v3 }
 0x18f   : > { %6312 = vst [vmem:[#allocation22_spill] sm:$0xff] %v5011_v30  ;;  %v775_v53 = vsub.f32 %v695_v50, %v752_v52  ;;  %v699_v30 = vmul.f32 %v6314_v56, %v4650_v5  ;;  %v6320_v50 = vld [vmem:[#allocation12_spill] sm:$0xff] }
 0x190   : > { %v754_v55 = vpop.permute.xlu1 %753  ;;  %1708 = vrot.lane.b32.xlu0 %v6314_v56, %s4265_s15  ;;  %v819_v26 = vmul.f32 %v6320_v50, %v4650_v5 }
 0x191   : > { %v776_v54 = vsub.f32 %v696_v35, %v754_v55  ;;  %v6321_v35 = vld [vmem:[#allocation13_spill] sm:$0xff] }
 0x192   : > { %v760_v48 = vpop.permute.xlu0 %759  ;;  %1710 = vrot.lane.b32.xlu1 %v6315_v60, %s4265_s15 }
 0x193   : > { %v779_v56 = vsub.f32 %v699_v30, %v760_v48  ;;  %v6323_v30 = vld [vmem:[#allocation16_spill] sm:$0xff] }
 0x194   : > { %v762_v39 = vpop.permute.xlu1 %761  ;;  %1712 = vrot.lane.b32.xlu0 %v4503_v24, %s4265_s15 }
 0x196   : > { %v840_v23 = vpop.permute.xlu0 %839  ;;  %1714 = vrot.lane.b32.xlu1 %v4506_v25, %s4265_s15 }
 0x197   : > { %v863_v58 = vadd.f32 %v840_v23, %v815_v32  ;;  %v700_v23 = vmul.f32 %v6315_v60, %v4661_v63 }
 0x198   : > { %v842_v61 = vpop.permute.xlu1 %841  ;;  %1732 = vrot.lane.b32.xlu0 %v4414_v9, %s4268_s13 }
 0x199   : > { %v872_v44 = vsel %vm871_vm2, %v775_v53, %v863_v58  ;;  %v864_v52 = vadd.f32 %v842_v61, %v816_v49  ;;  %v820_v58 = vmul.f32 %v6321_v35, %v4661_v63  ;;  %v780_v60 = vsub.f32 %v700_v23, %v762_v39 }
 0x19a   : > { %v3735_v32 = vpack.c.bf16 %v872_v44, %v872_v44  ;;  %v848_v0 = vpop.permute.xlu0 %847  ;;  %1734 = vrot.lane.b32.xlu1 %v4428_v12, %s4268_s13 }
 0x19b   : > { %v873_v4 = vsel %vm871_vm2, %v776_v54, %v864_v52  ;;  %v867_v9 = vadd.f32 %v848_v0, %v819_v26 }
 0x19c   : > { %913 = vst.msk [vmem:[%s4948_s21] sm:$0xf] %vm912_vm1, %v3735_v32  ;;  %v3736_v61 = vpack.c.bf16 %v873_v4, %v873_v4  ;;  %v850_v49 = vpop.permute.xlu1 %849  ;;  %1736 = vrot.lane.b32.xlu0 %v4417_v10, %s4268_s13  ;;  %v6322_v4 = vld [vmem:[#allocation15_spill] sm:$0xff]  ;;  %v1146_v10 = vmul.f32 %v6323_v30, %v4663_v62 }
 0x19d   : > { %v876_v44 = vsel %vm871_vm2, %v779_v56, %v867_v9  ;;  %v868_v12 = vadd.f32 %v850_v49, %v820_v58  ;;  %v1145_v54 = vmul.f32 %v6322_v4, %v4646_v3  ;;  %v6324_v32 = vld [vmem:[#allocation19_spill] sm:$0xff]  ;;  %v6325_v9 = vld [vmem:[#allocation20_spill] sm:$0xff] }
 0x19e   : > { %914 = vst.msk [vmem:[%s4948_s21 + $0x4] sm:$0xf] %vm912_vm1, %v3736_v61  ;;  %v3739_v48 = vpack.c.bf16 %v876_v44, %v876_v44  ;;  %v1194_v0 = vpop.permute.xlu0 %1193  ;;  %1738 = vrot.lane.b32.xlu1 %v4432_v13, %s4268_s13  ;;  %v1149_v56 = vmul.f32 %v6324_v32, %v4650_v5  ;;  %v1150_v58 = vmul.f32 %v6325_v9, %v4661_v63 }
 0x19f   : > { %v877_v26 = vsel %vm871_vm2, %v780_v60, %v868_v12  ;;  %v1217_v55 = vsub.f32 %v1145_v54, %v1194_v0 }
 0x1a0   : > { %917 = vst.msk [vmem:[%s4948_s21 + $0x10] sm:$0xf] %vm912_vm1, %v3739_v48  ;;  %v3740_v39 = vpack.c.bf16 %v877_v26, %v877_v26  ;;  %v1196_v53 = vpop.permute.xlu1 %1195  ;;  %1740 = vrot.lane.b32.xlu0 %v4440_v14, %s4268_s13  ;;  %v6327_v48 = vld [vmem:[#allocation24_spill] sm:$0xff] }
 0x1a1   : > { %v1218_v52 = vsub.f32 %v1146_v10, %v1196_v53  ;;  %v1250_v0 = vmul.f32 %v6327_v48, %v4663_v62  ;;  %v6329_v53 = vld [vmem:[#allocation27_spill] sm:$0xff] }
 0x1a2   : > { %918 = vst.msk [vmem:[%s4948_s21 + $0x14] sm:$0xf] %vm912_vm1, %v3740_v39  ;;  %v1202_v13 = vpop.permute.xlu0 %1201  ;;  %1742 = vrot.lane.b32.xlu1 %v4443_v15, %s4268_s13  ;;  %v6326_v15 = vld [vmem:[#allocation23_spill] sm:$0xff] }
 0x1a3   : > { %v5069_v23 = vpack.i.bf16 %v1218_v52, %v1217_v55  ;;  %v1221_v14 = vsub.f32 %v1149_v56, %v1202_v13  ;;  %v1249_v12 = vmul.f32 %v6326_v15, %v4646_v3  ;;  %v6330_v55 = vld [vmem:[#allocation28_spill] sm:$0xff] }
 0x1a4   : > { %v1204_v61 = vpop.permute.xlu1 %1203  ;;  %1744 = vrot.lane.b32.xlu0 %v4451_v16, %s4268_s13  ;;  %v1254_v52 = vmul.f32 %v6330_v55, %v4661_v63 }
 0x1a5   : > { %v1222_v49 = vsub.f32 %v1150_v58, %v1204_v61 }
 0x1a6   : > { %v1298_v60 = vpop.permute.xlu0 %1297  ;;  %1746 = vrot.lane.b32.xlu1 %v4462_v17, %s4268_s13  ;;  %v1253_v17 = vmul.f32 %v6329_v53, %v4650_v5 }
 0x1a7   : > { %v5079_v44 = vpack.i.bf16 %v1222_v49, %v1221_v14  ;;  %v5085_v54 = vadd.f32 %v1298_v60, %v1249_v12  ;;  %v923_v60 = vmul.f32 %v4676_v47, %v4482_v20  ;;  %v979_v12 = vmul.f32 %v4676_v47, %v4584_v36 }
 0x1a8   : > { %v1300_v26 = vpop.permute.xlu1 %1299  ;;  %v1444_v36 = vmul.f32 %v4676_v47, %v6298_v29  ;;  %v1500_v29 = vmul.f32 %v4676_v47, %v6304_v33  ;;  %v921_v33 = vmul.f32 %v6316_v57, %v4683_v43 }
 0x1a9   : > { %6328 = vst [vmem:[#allocation25_spill] sm:$0xff] %v5085_v54  ;;  %v5087_v10 = vadd.f32 %v1300_v26, %v1250_v0 }
 0x1aa   : > { %v1306_v16 = vpop.permute.xlu0 %1305 }
 0x1ab   : > { %v5095_v56 = vadd.f32 %v1306_v16, %v1253_v17  ;;  %v924_v16 = vmul.f32 %v4685_v59, %v4485_v21 }
 0x1ac   : > { %v1308_v13 = vpop.permute.xlu1 %1307 }
 0x1ad   : > { %6331 = vst [vmem:[#allocation26_spill] sm:$0xff] %v5095_v56  ;;  %v5097_v58 = vadd.f32 %v1308_v13, %v1254_v52  ;;  %v980_v52 = vmul.f32 %v4685_v59, %v4586_v37 }
 0x1ae   : > { %v950_v61 = vpop.permute.xlu0 %949 }
 0x1af   : > { %6332 = vst [vmem:[#allocation29_spill] sm:$0xff] %v5097_v58  ;;  %v971_v26 = vsub.f32 %v923_v60, %v950_v61  ;;  %v1445_v61 = vmul.f32 %v4685_v59, %v6299_v31  ;;  %v1501_v31 = vmul.f32 %v4685_v59, %v6305_v27  ;;  %v977_v27 = vmul.f32 %v6317_v46, %v4683_v43 }
 0x1b0   : > { %v952_v49 = vpop.permute.xlu1 %951  ;;  %v1442_v46 = vmul.f32 %v6322_v4, %v4683_v43  ;;  %v1499_v4 = vmul.f32 %v6327_v48, %v4690_v38  ;;  %v927_v48 = vmul.f32 %v4720_v22, %v4503_v24 }
 0x1b1   : > { %v972_v39 = vsub.f32 %v924_v16, %v952_v49 }
 0x1b2   : > { %v1006_v0 = vpop.permute.xlu0 %1005 }
 0x1b3   : > { %v1027_v17 = vadd.f32 %v1006_v0, %v979_v12  ;;  %v6355_v0 = vld [vmem:[#allocation40_spill] sm:$0xff] }
 0x1b4   : > { %v1008_v13 = vpop.permute.xlu1 %1007 }
 0x1b5   : > { %v1035_v14 = vsel %vm871_vm2, %v971_v26, %v1027_v17  ;;  %v1028_v56 = vadd.f32 %v1008_v13, %v980_v52 }
 0x1b6   : > { %v3745_v58 = vpack.c.bf16 %v1035_v14, %v1035_v14  ;;  %v1471_v20 = vpop.permute.xlu0 %1470 }
 0x1b7   : > { %v1036_v54 = vsel %vm871_vm2, %v972_v39, %v1028_v56  ;;  %v1492_v14 = vsub.f32 %v1444_v36, %v1471_v20  ;;  %v922_v20 = vmul.f32 %v6318_v18, %v4690_v38  ;;  %v1443_v18 = vmul.f32 %v6323_v30, %v4690_v38 }
 0x1b8   : > { %1075 = vst.msk [vmem:[%s5116_s22 + $0x8] sm:$0xf] %vm912_vm1, %v3745_v58  ;;  %v3746_v21 = vpack.c.bf16 %v1036_v54, %v1036_v54  ;;  %v1473_v37 = vpop.permute.xlu1 %1472 }
 0x1b9   : > { %v1493_v49 = vsub.f32 %v1445_v61, %v1473_v37  ;;  %v978_v61 = vmul.f32 %v6319_v34, %v4690_v38 }
 0x1ba   : > { %1076 = vst.msk [vmem:[%s5116_s22 + $0xc] sm:$0xf] %vm912_vm1, %v3746_v21  ;;  %v1527_v39 = vpop.permute.xlu0 %1526 }
 0x1bb   : > { %v5122_v56 = vpack.i.bf16 %v1493_v49, %v1492_v14  ;;  %v5128_v12 = vadd.f32 %v1527_v39, %v1500_v29 }
 0x1bc   : > { %v1529_v60 = vpop.permute.xlu1 %1528 }
 0x1bd   : > { %v5130_v58 = vadd.f32 %v1529_v60, %v1501_v31 }
 0x1be   : > { %v1672_v54 = vpop.permute.xlu0 %1671 }
 0x1bf   : > { %3635 = vst.msk [vmem:[%s4700_s27 + $0x28] sm:$0xf] %vm912_vm1, %v1672_v54 }
 0x1c0   : > { %v1674_v26 = vpop.permute.xlu1 %1673 }
 0x1c1   : > { %3636 = vst.msk [vmem:[%s4700_s27 + $0x2c] sm:$0xf] %vm912_vm1, %v1674_v26 }
 0x1c2   : > { %v946_v16 = vpop.permute.xlu0 %945 }
 0x1c3   : > { %v969_v13 = vsub.f32 %v921_v33, %v946_v16 }
 0x1c4   : > { %v948_v17 = vpop.permute.xlu1 %947 }
 0x1c5   : > { %v970_v37 = vsub.f32 %v922_v20, %v948_v17  ;;  %v1498_v17 = vmul.f32 %v6326_v15, %v4683_v43 }
 0x1c6   : > { %v1002_v52 = vpop.permute.xlu0 %1001 }
 0x1c7   : > { %v1025_v36 = vadd.f32 %v1002_v52, %v977_v27 }
 0x1c8   : > { %v1004_v21 = vpop.permute.xlu1 %1003 }
 0x1c9   : > { %v1033_v14 = vsel %vm871_vm2, %v969_v13, %v1025_v36  ;;  %v1026_v49 = vadd.f32 %v1004_v21, %v978_v61  ;;  %v983_v61 = vmul.f32 %v4720_v22, %v4592_v40  ;;  %v1724_v13 = vmul.f32 %v6355_v0, %v4646_v3 }
 0x1ca   : > { %v3743_v57 = vpack.c.bf16 %v1033_v14, %v1033_v14  ;;  %v1467_v39 = vpop.permute.xlu0 %1466 }
 0x1cb   : > { %v1034_v29 = vsel %vm871_vm2, %v970_v37, %v1026_v49  ;;  %v1490_v60 = vsub.f32 %v1442_v46, %v1467_v39  ;;  %v928_v46 = vmul.f32 %v4732_v7, %v4506_v25 }
 0x1cc   : > { %1073 = vst.msk [vmem:[%s5116_s22] sm:$0xf] %vm912_vm1, %v3743_v57  ;;  %v3744_v31 = vpack.c.bf16 %v1034_v29, %v1034_v29  ;;  %v1469_v34 = vpop.permute.xlu1 %1468 }
 0x1cd   : > { %v1491_v54 = vsub.f32 %v1443_v18, %v1469_v34  ;;  %v984_v18 = vmul.f32 %v4732_v7, %v6296_v19 }
 0x1ce   : > { %1074 = vst.msk [vmem:[%s5116_s22 + $0x4] sm:$0xf] %vm912_vm1, %v3744_v31  ;;  %v1523_v26 = vpop.permute.xlu0 %1522 }
 0x1cf   : > { %v5156_v16 = vpack.i.bf16 %v1491_v54, %v1490_v60  ;;  %v5162_v33 = vadd.f32 %v1523_v26, %v1498_v17  ;;  %v1448_v60 = vmul.f32 %v4720_v22, %v6301_v28  ;;  %v1449_v26 = vmul.f32 %v4732_v7, %v6302_v41 }
 0x1d0   : > { %v1525_v30 = vpop.permute.xlu1 %1524  ;;  %v1505_v28 = vmul.f32 %v4732_v7, %v6310_v51  ;;  %v981_v51 = vmul.f32 %v6320_v50, %v4730_v11 }
 0x1d1   : > { %v5164_v27 = vadd.f32 %v1525_v30, %v1499_v4 }
 0x1d2   : > { %v1668_v52 = vpop.permute.xlu0 %1667 }
 0x1d3   : > { %3633 = vst.msk [vmem:[%s4700_s27 + $0x20] sm:$0xf] %vm912_vm1, %v1668_v52  ;;  %v1504_v52 = vmul.f32 %v4720_v22, %v6309_v45  ;;  %v5207_v45 = vld [vmem:[%s4459_s25 + $0x20] sm:$0xff] }
 0x1d4   : > { %v1670_v20 = vpop.permute.xlu1 %1669  ;;  %6334 = vst [vmem:[#allocation8_spill] sm:$0xff] %v5207_v45 }
 0x1d5   : > { %3634 = vst.msk [vmem:[%s4700_s27 + $0x24] sm:$0xf] %vm912_vm1, %v1670_v20 }
 0x1d6   : > { %v958_v36 = vpop.permute.xlu0 %957 }
 0x1d7   : > { %v975_v37 = vsub.f32 %v927_v48, %v958_v36 }
 0x1d8   : > { %v5172_v15 = vpop.permute.xlu1 %1706 }
 0x1d9   : > { %6333 = vst [vmem:[#allocation30_spill] sm:$0xff] %v5172_v15 }
 0x1da   : > { %v1014_v21 = vpop.permute.xlu0 %1013 }
 0x1db   : > { %v1031_v14 = vadd.f32 %v1014_v21, %v983_v61  ;;  %v5368_v21 = vld [vmem:[%s4405_s29 + $0x38] sm:$0xff] }
 0x1dc   : > { %v960_v49 = vpop.permute.xlu1 %959  ;;  %6354 = vst [vmem:[#allocation46_spill] sm:$0xff] %v5368_v21 }
 0x1dd   : > { %v1039_v57 = vsel %vm871_vm2, %v975_v37, %v1031_v14  ;;  %v976_v40 = vsub.f32 %v928_v46, %v960_v49  ;;  %v925_v14 = vmul.f32 %v5207_v45, %v4730_v11 }
 0x1de   : > { %v3749_v39 = vpack.c.bf16 %v1039_v57, %v1039_v57  ;;  %v1479_v29 = vpop.permute.xlu0 %1478 }
 0x1df   : > { %v1496_v4 = vsub.f32 %v1448_v60, %v1479_v29 }
 0x1e0   : > { %1079 = vst.msk [vmem:[%s5116_s22 + $0x18] sm:$0xf] %vm912_vm1, %v3749_v39  ;;  %v1016_v24 = vpop.permute.xlu1 %1015 }
 0x1e1   : > { %v1032_v31 = vadd.f32 %v1016_v24, %v984_v18 }
 0x1e2   : > { %v1535_v34 = vpop.permute.xlu0 %1534 }
 0x1e3   : > { %v1040_v54 = vsel %vm871_vm2, %v976_v40, %v1032_v31  ;;  %v5200_v36 = vadd.f32 %v1535_v34, %v1504_v52  ;;  %v5217_v40 = vld [vmem:[%s4459_s25 + $0x28] sm:$0xff]  ;;  %v982_v34 = vmul.f32 %v6321_v35, %v6297_v42 }
 0x1e4   : > { %v3750_v17 = vpack.c.bf16 %v1040_v54, %v1040_v54  ;;  %v1481_v25 = vpop.permute.xlu1 %1480  ;;  %6335 = vst [vmem:[#allocation9_spill] sm:$0xff] %v5217_v40  ;;  %v926_v31 = vmul.f32 %v5217_v40, %v6297_v42 }
 0x1e5   : > { %v1497_v19 = vsub.f32 %v1449_v26, %v1481_v25 }
 0x1e6   : > { %1080 = vst.msk [vmem:[%s5116_s22 + $0x1c] sm:$0xf] %vm912_vm1, %v3750_v17  ;;  %v1680_v30 = vpop.permute.xlu0 %1679  ;;  %v1446_v17 = vmul.f32 %v6324_v32, %v4730_v11  ;;  %v1503_v32 = vmul.f32 %v6330_v55, %v6297_v42 }
 0x1e7   : > { %v5194_v20 = vpack.i.bf16 %v1497_v19, %v1496_v4  ;;  %3639 = vst.msk [vmem:[%s4700_s27 + $0x38] sm:$0xf] %vm912_vm1, %v1680_v30  ;;  %v1447_v4 = vmul.f32 %v6325_v9, %v6297_v42 }
 0x1e8   : > { %v1537_v41 = vpop.permute.xlu1 %1536 }
 0x1e9   : > { %v5202_v48 = vadd.f32 %v1537_v41, %v1505_v28  ;;  %v1502_v41 = vmul.f32 %v6329_v53, %v4730_v11 }
 0x1ea   : > { %v954_v61 = vpop.permute.xlu0 %953 }
 0x1eb   : > { %v973_v57 = vsub.f32 %v925_v14, %v954_v61 }
 0x1ec   : > { %v1682_v37 = vpop.permute.xlu1 %1681 }
 0x1ed   : > { %3640 = vst.msk [vmem:[%s4700_s27 + $0x3c] sm:$0xf] %vm912_vm1, %v1682_v37 }
 0x1ee   : > { %v1010_v49 = vpop.permute.xlu0 %1009 }
 0x1ef   : > { %v1029_v39 = vadd.f32 %v1010_v49, %v981_v51 }
 0x1f0   : > { %v956_v29 = vpop.permute.xlu1 %955 }
 0x1f1   : > { %v1037_v46 = vsel %vm871_vm2, %v973_v57, %v1029_v39  ;;  %v974_v60 = vsub.f32 %v926_v31, %v956_v29 }
 0x1f2   : > { %v3747_v18 = vpack.c.bf16 %v1037_v46, %v1037_v46  ;;  %v1475_v24 = vpop.permute.xlu0 %1474 }
 0x1f3   : > { %v1494_v52 = vsub.f32 %v1446_v17, %v1475_v24 }
 0x1f4   : > { %1077 = vst.msk [vmem:[%s5116_s22 + $0x10] sm:$0xf] %vm912_vm1, %v3747_v18  ;;  %v1012_v50 = vpop.permute.xlu1 %1011 }
 0x1f5   : > { %v1030_v54 = vadd.f32 %v1012_v50, %v982_v34 }
 0x1f6   : > { %v1531_v26 = vpop.permute.xlu0 %1530 }
 0x1f7   : > { %v1038_v25 = vsel %vm871_vm2, %v974_v60, %v1030_v54  ;;  %v5240_v9 = vadd.f32 %v1531_v26, %v1502_v41  ;;  %v5304_v41 = vld [vmem:[%s4459_s25 + $0x8] sm:$0xff] }
 0x1f8   : > { %v3748_v19 = vpack.c.bf16 %v1038_v25, %v1038_v25  ;;  %v1477_v30 = vpop.permute.xlu1 %1476  ;;  %6342 = vst [vmem:[#allocation15_spill] sm:$0xff] %v5304_v41 }
 0x1f9   : > { %v1495_v35 = vsub.f32 %v1447_v4, %v1477_v30 }
 0x1fa   : > { %1078 = vst.msk [vmem:[%s5116_s22 + $0x14] sm:$0xf] %vm912_vm1, %v3748_v19  ;;  %v1676_v28 = vpop.permute.xlu0 %1675 }
 0x1fb   : > { %v5234_v61 = vpack.i.bf16 %v1495_v35, %v1494_v52  ;;  %3637 = vst.msk [vmem:[%s4700_s27 + $0x30] sm:$0xf] %vm912_vm1, %v1676_v28  ;;  %v5299_v28 = vld [vmem:[%s4459_s25] sm:$0xff] }
 0x1fc   : > { %v1533_v37 = vpop.permute.xlu1 %1532  ;;  %6341 = vst [vmem:[#allocation13_spill] sm:$0xff] %v5299_v28 }
 0x1fd   : > { %v5242_v14 = vadd.f32 %v1533_v37, %v1503_v32  ;;  %v5309_v32 = vld [vmem:[%s4459_s25 + $0x10] sm:$0xff]  ;;  %v5314_v37 = vld [vmem:[%s4459_s25 + $0x18] sm:$0xff] }
 0x1fe   : > { %v5244_v51 = vpop.permute.xlu0 %1704  ;;  %6343 = vst [vmem:[#allocation16_spill] sm:$0xff] %v5309_v32  ;;  %6344 = vst [vmem:[#allocation19_spill] sm:$0xff] %v5314_v37 }
 0x1ff   : > { %6336 = vst [vmem:[#allocation6_spill] sm:$0xff] %v5244_v51 }
 0x200   : > { %v1678_v57 = vpop.permute.xlu1 %1677 }
 0x201   : > { %3638 = vst.msk [vmem:[%s4700_s27 + $0x34] sm:$0xf] %vm912_vm1, %v1678_v57  ;;  %v5323_v57 = vld [vmem:[%s4459_s25 + $0x30] sm:$0xff] }
 0x202   : > { %v5250_v53 = vpop.permute.xlu0 %1708  ;;  %6345 = vst [vmem:[#allocation20_spill] sm:$0xff] %v5323_v57 }
 0x203   : > { %6337 = vst [vmem:[#allocation10_spill] sm:$0xff] %v5250_v53 }
 0x204   : > { %v5252_v39 = vpop.permute.xlu1 %1710 }
 0x205   : > { %6338 = vst [vmem:[#allocation7_spill] sm:$0xff] %v5252_v39 }
 0x206   : > { %v5254_v29 = vpop.permute.xlu0 %1712 }
 0x207   : > { %6339 = vst [vmem:[#allocation11_spill] sm:$0xff] %v5254_v29 }
 0x208   : > { %v5256_v55 = vpop.permute.xlu1 %1714 }
 0x209   : > { %6340 = vst [vmem:[#allocation12_spill] sm:$0xff] %v5256_v55 }
 0x20a   : > { %v5258_v46 = vpop.permute.xlu0 %1732 }
 0x20b   : > { %v1756_v18 = vmul.f32 %v5258_v46, %v4646_v3 }
 0x20c   : > { %v5262_v24 = vpop.permute.xlu1 %1734 }
 0x20d   : > { %v1757_v31 = vmul.f32 %v5262_v24, %v4663_v62  ;;  %1772 = vrot.lane.b32.xlu0 %v1756_v18, %s4266_s26  ;;  %v5328_v18 = vld [vmem:[%s4459_s25 + $0x38] sm:$0xff] }
 0x20e   : > { %v5267_v34 = vpop.permute.xlu0 %1736  ;;  %6346 = vst [vmem:[#allocation23_spill] sm:$0xff] %v5328_v18 }
 0x20f   : > { %v1758_v50 = vmul.f32 %v4642_v1, %v5267_v34  ;;  %1774 = vrot.lane.b32.xlu1 %v1757_v31, %s4266_s26  ;;  %v5333_v31 = vld [vmem:[%s4405_s29] sm:$0xff] }
 0x210   : > { %v5272_v60 = vpop.permute.xlu1 %1738  ;;  %6347 = vst [vmem:[#allocation24_spill] sm:$0xff] %v5333_v31 }
 0x211   : > { %v1759_v54 = vmul.f32 %v4652_v6, %v5272_v60  ;;  %1776 = vrot.lane.b32.xlu0 %v1758_v50, %s4266_s26  ;;  %v5338_v50 = vld [vmem:[%s4405_s29 + $0x8] sm:$0xff] }
 0x212   : > { %v5277_v26 = vpop.permute.xlu0 %1740  ;;  %6348 = vst [vmem:[#allocation27_spill] sm:$0xff] %v5338_v50 }
 0x213   : > { %v1760_v17 = vmul.f32 %v5277_v26, %v4650_v5  ;;  %1778 = vrot.lane.b32.xlu1 %v1759_v54, %s4266_s26  ;;  %v5343_v54 = vld [vmem:[%s4405_s29 + $0x10] sm:$0xff] }
 0x214   : > { %v5282_v25 = vpop.permute.xlu1 %1742  ;;  %6349 = vst [vmem:[#allocation28_spill] sm:$0xff] %v5343_v54 }
 0x215   : > { %v1761_v4 = vmul.f32 %v5282_v25, %v4661_v63  ;;  %1780 = vrot.lane.b32.xlu0 %v1760_v17, %s4266_s26  ;;  %v5348_v17 = vld [vmem:[%s4405_s29 + $0x18] sm:$0xff] }
 0x216   : > { %v5287_v19 = vpop.permute.xlu0 %1744  ;;  %6350 = vst [vmem:[#allocation42_spill] sm:$0xff] %v5348_v17 }
 0x217   : > { %v1762_v30 = vmul.f32 %v4644_v2, %v5287_v19  ;;  %1782 = vrot.lane.b32.xlu1 %v1761_v4, %s4266_s26  ;;  %v5353_v4 = vld [vmem:[%s4405_s29 + $0x20] sm:$0xff] }
 0x218   : > { %v5292_v52 = vpop.permute.xlu1 %1746  ;;  %6351 = vst [vmem:[#allocation43_spill] sm:$0xff] %v5353_v4 }
 0x219   : > { %v1763_v35 = vmul.f32 %v4656_v8, %v5292_v52  ;;  %1784 = vrot.lane.b32.xlu0 %v1762_v30, %s4266_s26  ;;  %v5358_v30 = vld [vmem:[%s4405_s29 + $0x28] sm:$0xff] }
 0x21a   : > { %6352 = vst [vmem:[#allocation44_spill] sm:$0xff] %v5358_v30 }
 0x21b   : > { %1786 = vrot.lane.b32.xlu1 %v1763_v35, %s4266_s26  ;;  %v5363_v35 = vld [vmem:[%s4405_s29 + $0x30] sm:$0xff]  ;;  %s4269_s29 = smov 112  }
 0x21c   : > { %6353 = vst [vmem:[#allocation45_spill] sm:$0xff] %v5363_v35 }
 0x21d   : > { %1804 = vrot.lane.b32.xlu0 %v5299_v28, %s4268_s13 }
 0x21f   : > { %1806 = vrot.lane.b32.xlu1 %v5304_v41, %s4268_s13  ;;  %v1728_v41 = vmul.f32 %v5250_v53, %v4650_v5 }
 0x221   : > { %1808 = vrot.lane.b32.xlu0 %v5309_v32, %s4268_s13 }
 0x223   : > { %1810 = vrot.lane.b32.xlu1 %v5314_v37, %s4268_s13 }
 0x225   : > { %1812 = vrot.lane.b32.xlu0 %v5207_v45, %s4268_s13 }
 0x227   : > { %1814 = vrot.lane.b32.xlu1 %v5217_v40, %s4268_s13 }
 0x229   : > { %1816 = vrot.lane.b32.xlu0 %v5323_v57, %s4268_s13 }
 0x22b   : > { %1818 = vrot.lane.b32.xlu1 %v5328_v18, %s4268_s13 }
 0x22d   : > { %1836 = vrot.lane.b32.xlu0 %v5333_v31, %s4265_s15  ;;  %v1727_v31 = vmul.f32 %v4652_v6, %v5172_v15 }
 0x22f   : > { %1838 = vrot.lane.b32.xlu1 %v5338_v50, %s4265_s15 }
 0x231   : > { %1840 = vrot.lane.b32.xlu0 %v5343_v54, %s4265_s15 }
 0x233   : > { %1842 = vrot.lane.b32.xlu1 %v5348_v17, %s4265_s15  ;;  %v6356_v17 = vld [vmem:[#allocation41_spill] sm:$0xff] }
 0x235   : > { %1844 = vrot.lane.b32.xlu0 %v5353_v4, %s4265_s15  ;;  %v1725_v4 = vmul.f32 %v6356_v17, %v4663_v62 }
 0x237   : > { %1846 = vrot.lane.b32.xlu1 %v5358_v30, %s4265_s15 }
 0x239   : > { %1848 = vrot.lane.b32.xlu0 %v5363_v35, %s4265_s15  ;;  %v1726_v35 = vmul.f32 %v4642_v1, %v5244_v51  ;;  %v1730_v51 = vmul.f32 %v4644_v2, %v5254_v29 }
 0x23b   : > { %1850 = vrot.lane.b32.xlu1 %v5368_v21, %s4265_s15 }
 0x27f   : > { %v1773_v49 = vpop.permute.xlu0 %1772 }
 0x280   : > { %v1796_v54 = vsub.f32 %v1724_v13, %v1773_v49  ;;  %v1729_v13 = vmul.f32 %v5252_v39, %v4661_v63 }
 0x281   : > { %v1775_v50 = vpop.permute.xlu1 %1774 }
 0x282   : > { %v1797_v30 = vsub.f32 %v1725_v4, %v1775_v50 }
 0x283   : > { %v1777_v18 = vpop.permute.xlu0 %1776 }
 0x284   : > { %v5380_v40 = vpack.i.bf16 %v1797_v30, %v1796_v54  ;;  %v1798_v57 = vsub.f32 %v1726_v35, %v1777_v18  ;;  %v1731_v54 = vmul.f32 %v4656_v8, %v5256_v55 }
 0x285   : > { %v1779_v21 = vpop.permute.xlu1 %1778 }
 0x286   : > { %v1799_v37 = vsub.f32 %v1727_v31, %v1779_v21 }
 0x287   : > { %v1781_v45 = vpop.permute.xlu0 %1780 }
 0x288   : > { %v4017_v49 = vpack.i.bf16 %v1799_v37, %v1798_v57  ;;  %v1800_v4 = vsub.f32 %v1728_v41, %v1781_v45 }
 0x289   : > { %v1783_v50 = vpop.permute.xlu1 %1782 }
 0x28a   : > { %v1801_v32 = vsub.f32 %v1729_v13, %v1783_v50 }
 0x28b   : > { %v1785_v28 = vpop.permute.xlu0 %1784 }
 0x28c   : > { %v4022_v18 = vpack.i.bf16 %v1801_v32, %v1800_v4  ;;  %v1802_v31 = vsub.f32 %v1730_v51, %v1785_v28 }
 0x28d   : > { %v1787_v21 = vpop.permute.xlu1 %1786 }
 0x28e   : > { %v1803_v30 = vsub.f32 %v1731_v54, %v1787_v21 }
 0x28f   : > { %v5390_v35 = vpop.permute.xlu0 %1804 }
 0x290   : > { %v4027_v53 = vpack.i.bf16 %v1803_v30, %v1802_v31 }
 0x291   : > { %v5392_v15 = vpop.permute.xlu1 %1806 }
 0x293   : > { %v5394_v37 = vpop.permute.xlu0 %1808 }
 0x295   : > { %v5396_v45 = vpop.permute.xlu1 %1810 }
 0x297   : > { %v5398_v41 = vpop.permute.xlu0 %1812 }
 0x299   : > { %v5400_v57 = vpop.permute.xlu1 %1814 }
 0x29b   : > { %v5402_v13 = vpop.permute.xlu0 %1816 }
 0x29d   : > { %v5404_v50 = vpop.permute.xlu1 %1818 }
 0x29f   : > { %v5406_v32 = vpop.permute.xlu0 %1836 }
 0x2a0   : > { %v1860_v51 = vmul.f32 %v5406_v32, %v4646_v3 }
 0x2a1   : > { %v5410_v28 = vpop.permute.xlu1 %1838 }
 0x2a2   : > { %6357 = vst [vmem:[#allocation47_spill] sm:$0xff] %v5410_v28  ;;  %v1861_v4 = vmul.f32 %v5410_v28, %v4663_v62  ;;  %1876 = vrot.lane.b32.xlu0 %v1860_v51, %s4262_s1 }
 0x2a3   : > { %v5415_v54 = vpop.permute.xlu0 %1840 }
 0x2a4   : > { %v1862_v21 = vmul.f32 %v4642_v1, %v5415_v54  ;;  %1878 = vrot.lane.b32.xlu1 %v1861_v4, %s4262_s1  ;;  %v6360_v4 = vld [vmem:[#allocation14_spill] sm:$0xff] }
 0x2a5   : > { %v5420_v31 = vpop.permute.xlu1 %1842 }
 0x2a6   : > { %6358 = vst [vmem:[#allocation48_spill] sm:$0xff] %v5420_v31  ;;  %v1863_v30 = vmul.f32 %v4652_v6, %v5420_v31  ;;  %1880 = vrot.lane.b32.xlu0 %v1862_v21, %s4262_s1  ;;  %v6361_v21 = vld [vmem:[#allocation35_spill] sm:$0xff]  ;;  %v6371_v31 = vld [vmem:[#allocation21_spill] sm:$0xff] }
 0x2a7   : > { %v5425_v55 = vpop.permute.xlu0 %1844 }
 0x2a8   : > { %v1864_v29 = vmul.f32 %v5425_v55, %v4650_v5  ;;  %1882 = vrot.lane.b32.xlu1 %v1863_v30, %s4262_s1  ;;  %v6362_v30 = vld [vmem:[#allocation25_spill] sm:$0xff] }
 0x2a9   : > { %v5430_v51 = vpop.permute.xlu1 %1846  ;;  %v6363_v17 = vpack.i.bf16 %v5087_v10, %v6362_v30  ;;  %v6373_v10 = vpack.i.bf16 %v5164_v27, %v5162_v33  ;;  %v1833_v30 = vmul.f32 %v5400_v57, %v4661_v63 }
 0x2aa   : > { %6359 = vst [vmem:[#allocation49_spill] sm:$0xff] %v5430_v51  ;;  %v1865_v39 = vmul.f32 %v5430_v51, %v4661_v63  ;;  %1884 = vrot.lane.b32.xlu0 %v1864_v29, %s4262_s1  ;;  %v6364_v29 = vld [vmem:[#allocation18_spill] sm:$0xff] }
 0x2ab   : > { %v6368_v51 = vld [vmem:[#allocation26_spill] sm:$0xff] }
 0x2ac   : > { %1886 = vrot.lane.b32.xlu1 %v1865_v39, %s4262_s1  ;;  %v6365_v39 = vld [vmem:[#allocation17_spill] sm:$0xff] }
 0x2ad   : > { %v6366_v0 = vpack.i.bf16 %v6364_v29, %v6365_v39  ;;  %v5482_v33 = vpop.permute.xlu1 %1850 }
 0x2ae   : > { %3953 = vrot.lane.b32.xlu0 %v5069_v23, %s4267_s19  ;;  %v6367_v23 = vld [vmem:[#allocation29_spill] sm:$0xff] }
 0x2b0   : > { %3933 = vrot.lane.b32.xlu1 %v6360_v4, %s4267_s19  ;;  %v6369_v4 = vpack.i.bf16 %v6367_v23, %v6368_v51 }
 0x2b2   : > { %3958 = vrot.lane.b32.xlu0 %v5079_v44, %s4267_s19  ;;  %v6370_v44 = vld [vmem:[#allocation22_spill] sm:$0xff] }
 0x2b3   : > { %v6372_v28 = vpack.i.bf16 %v6370_v44, %v6371_v31 }
 0x2b4   : > { %3938 = vrot.lane.b32.xlu1 %v6361_v21, %s4267_s19  ;;  %v1832_v21 = vmul.f32 %v5398_v41, %v4650_v5 }
 0x2b6   : > { %3963 = vrot.lane.b32.xlu0 %v6363_v17, %s4267_s19 }
 0x2b8   : > { %3943 = vrot.lane.b32.xlu1 %v6366_v0, %s4267_s19  ;;  %v6374_v0 = vpack.i.bf16 %v5130_v58, %v5128_v12  ;;  %v6376_v12 = vpack.i.bf16 %v5202_v48, %v5200_v36  ;;  %v1867_v58 = vmul.f32 %v4656_v8, %v5482_v33  ;;  %v1828_v36 = vmul.f32 %v5390_v35, %v4646_v3 }
 0x2b9   : > { %v1829_v48 = vmul.f32 %v5392_v15, %v4663_v62 }
 0x2ba   : > { %3968 = vrot.lane.b32.xlu0 %v6369_v4, %s4267_s19 }
 0x2bc   : > { %3948 = vrot.lane.b32.xlu1 %v6372_v28, %s4267_s19 }
 0x2be   : > { %3983 = vrot.lane.b32.xlu0 %v5156_v16, %s4267_s19  ;;  %v5476_v16 = vpop.permute.xlu0 %1848 }
 0x2bf   : > { %v1866_v27 = vmul.f32 %v4644_v2, %v5476_v16 }
 0x2c0   : > { %3973 = vrot.lane.b32.xlu1 %v5122_v56, %s4267_s19  ;;  %v6375_v56 = vpack.i.bf16 %v5242_v14, %v5240_v9 }
 0x2c2   : > { %3988 = vrot.lane.b32.xlu0 %v6373_v10, %s4267_s19 }
 0x2c4   : > { %3978 = vrot.lane.b32.xlu1 %v6374_v0, %s4267_s19 }
 0x2c6   : > { %4003 = vrot.lane.b32.xlu0 %v5234_v61, %s4267_s19 }
 0x2c8   : > { %3993 = vrot.lane.b32.xlu1 %v5194_v20, %s4267_s19 }
 0x2ca   : > { %4008 = vrot.lane.b32.xlu0 %v6375_v56, %s4267_s19 }
 0x2cc   : > { %3998 = vrot.lane.b32.xlu1 %v6376_v12, %s4267_s19 }
 0x2ce   : > { %1888 = vrot.lane.b32.xlu0 %v1866_v27, %s4262_s1  ;;  %v2029_v27 = vmul.f32 %v5258_v46, %v4683_v43 }
 0x2d0   : > { %1890 = vrot.lane.b32.xlu1 %v1867_v58, %s4262_s1  ;;  %v2031_v58 = vmul.f32 %v4676_v47, %v5267_v34 }
 0x2d2   : > { %4013 = vrot.lane.b32.xlu0 %v5380_v40, %s4269_s29  ;;  %v1830_v40 = vmul.f32 %v4642_v1, %v5394_v37 }
 0x2d4   : > { %4018 = vrot.lane.b32.xlu1 %v4017_v49, %s4269_s29  ;;  %v1831_v49 = vmul.f32 %v4652_v6, %v5396_v45 }
 0x2d6   : > { %4023 = vrot.lane.b32.xlu0 %v4022_v18, %s4269_s29 }
 0x2d8   : > { %4028 = vrot.lane.b32.xlu1 %v4027_v53, %s4269_s29 }
 0x314   : > { %v1877_v20 = vpop.permute.xlu0 %1876 }
 0x315   : > { %v1900_v9 = vadd.f32 %v1877_v20, %v1828_v36 }
 0x316   : > { %v1879_v61 = vpop.permute.xlu1 %1878 }
 0x317   : > { %v1901_v14 = vadd.f32 %v1879_v61, %v1829_v48 }
 0x318   : > { %v1881_v17 = vpop.permute.xlu0 %1880 }
 0x319   : > { %v4032_v18 = vpack.i.bf16 %v1901_v14, %v1900_v9  ;;  %v1902_v53 = vadd.f32 %v1881_v17, %v1830_v40  ;;  %v2033_v14 = vmul.f32 %v5277_v26, %v4730_v11 }
 0x31a   : > { %v1883_v28 = vpop.permute.xlu1 %1882 }
 0x31b   : > { %v1903_v31 = vadd.f32 %v1883_v28, %v1831_v49  ;;  %4033 = vrot.lane.b32.xlu0 %v4032_v18, %s4269_s29 }
 0x31c   : > { %v1885_v51 = vpop.permute.xlu0 %1884 }
 0x31d   : > { %v4037_v29 = vpack.i.bf16 %v1903_v31, %v1902_v53  ;;  %v1904_v23 = vadd.f32 %v1885_v51, %v1832_v21 }
 0x31e   : > { %v1887_v39 = vpop.permute.xlu1 %1886 }
 0x31f   : > { %v1905_v4 = vadd.f32 %v1887_v39, %v1833_v30  ;;  %4038 = vrot.lane.b32.xlu1 %v4037_v29, %s4269_s29 }
 0x320   : > { %v3954_v44 = vpop.permute.xlu0 %3953 }
 0x321   : > { %v4042_v10 = vpack.i.bf16 %v1905_v4, %v1904_v23  ;;  %v3956_v36 = vunpack.i.h.bf16 %v3954_v44  ;;  %v3955_v48 = vunpack.i.l.bf16 %v3954_v44 }
 0x322   : > { %v3934_v0 = vpop.permute.xlu1 %3933 }
 0x323   : > { %4043 = vrot.lane.b32.xlu0 %v4042_v10, %s4269_s29  ;;  %v3936_v17 = vunpack.i.h.bf16 %v3934_v0  ;;  %v3935_v40 = vunpack.i.l.bf16 %v3934_v0 }
 0x324   : > { %v3959_v56 = vpop.permute.xlu0 %3958 }
 0x325   : > { %v3961_v34 = vunpack.i.h.bf16 %v3959_v56  ;;  %v3960_v31 = vunpack.i.l.bf16 %v3959_v56 }
 0x326   : > { %v3939_v12 = vpop.permute.xlu1 %3938 }
 0x327   : > { %2045 = vrot.lane.b32.xlu0 %v2029_v27, %s4266_s26  ;;  %v3941_v4 = vunpack.i.h.bf16 %v3939_v12  ;;  %v3940_v44 = vunpack.i.l.bf16 %v3939_v12 }
 0x328   : > { %v3964_v20 = vpop.permute.xlu0 %3963 }
 0x329   : > { %v3966_v61 = vunpack.i.h.bf16 %v3964_v20  ;;  %v3965_v9 = vunpack.i.l.bf16 %v3964_v20 }
 0x32a   : > { %v3944_v49 = vpop.permute.xlu1 %3943 }
 0x32b   : > { %v1393_v18 = vsel %vm871_vm2, %v3955_v48, %v3965_v9  ;;  %v1394_v46 = vsel %vm871_vm2, %v3956_v36, %v3966_v61  ;;  %v3946_v28 = vunpack.i.h.bf16 %v3944_v49  ;;  %v3945_v53 = vunpack.i.l.bf16 %v3944_v49  ;;  %2049 = vrot.lane.b32.xlu0 %v2031_v58, %s4266_s26 }
 0x32c   : > { %v3759_v51 = vpack.c.bf16 %v1393_v18, %v1393_v18  ;;  %v3760_v21 = vpack.c.bf16 %v1394_v46, %v1394_v46  ;;  %v3969_v30 = vpop.permute.xlu0 %3968  ;;  %v2035_v9 = vmul.f32 %v4720_v22, %v5287_v19  ;;  %v2085_v46 = vmul.f32 %v5406_v32, %v4683_v43 }
 0x32d   : > { %v1395_v26 = vsel %vm871_vm2, %v3935_v40, %v3945_v53  ;;  %v1396_v29 = vsel %vm871_vm2, %v3936_v17, %v3946_v28  ;;  %v3971_v39 = vunpack.i.h.bf16 %v3969_v30  ;;  %v3970_v23 = vunpack.i.l.bf16 %v3969_v30 }
 0x32e   : > { %3609 = vst.msk [vmem:[%s4948_s21 + $0x20] sm:$0xf] %vm912_vm1, %v3759_v51  ;;  %3610 = vst.msk [vmem:[%s4948_s21 + $0x24] sm:$0xf] %vm912_vm1, %v3760_v21  ;;  %v3761_v10 = vpack.c.bf16 %v1395_v26, %v1395_v26  ;;  %v3762_v0 = vpack.c.bf16 %v1396_v29, %v1396_v29  ;;  %v3949_v56 = vpop.permute.xlu1 %3948 }
 0x32f   : > { %v1397_v27 = vsel %vm871_vm2, %v3960_v31, %v3970_v23  ;;  %v1398_v58 = vsel %vm871_vm2, %v3961_v34, %v3971_v39  ;;  %v3951_v20 = vunpack.i.h.bf16 %v3949_v56  ;;  %v3950_v36 = vunpack.i.l.bf16 %v3949_v56  ;;  %2053 = vrot.lane.b32.xlu0 %v2033_v14, %s4266_s26 }
 0x330   : > { %3611 = vst.msk [vmem:[%s4948_s21 + $0x28] sm:$0xf] %vm912_vm1, %v3761_v10  ;;  %3612 = vst.msk [vmem:[%s4948_s21 + $0x2c] sm:$0xf] %vm912_vm1, %v3762_v0  ;;  %v3763_v12 = vpack.c.bf16 %v1397_v27, %v1397_v27  ;;  %v3764_v48 = vpack.c.bf16 %v1398_v58, %v1398_v58  ;;  %v3984_v61 = vpop.permute.xlu0 %3983  ;;  %v2087_v10 = vmul.f32 %v4676_v47, %v5415_v54 }
 0x331   : > { %v1399_v17 = vsel %vm871_vm2, %v3940_v44, %v3950_v36  ;;  %v1400_v40 = vsel %vm871_vm2, %v3941_v4, %v3951_v20  ;;  %v3986_v28 = vunpack.i.h.bf16 %v3984_v61  ;;  %v3985_v53 = vunpack.i.l.bf16 %v3984_v61 }
 0x332   : > { %3613 = vst.msk [vmem:[%s4948_s21 + $0x30] sm:$0xf] %vm912_vm1, %v3763_v12  ;;  %3614 = vst.msk [vmem:[%s4948_s21 + $0x34] sm:$0xf] %vm912_vm1, %v3764_v48  ;;  %v3765_v14 = vpack.c.bf16 %v1399_v17, %v1399_v17  ;;  %v3766_v49 = vpack.c.bf16 %v1400_v40, %v1400_v40  ;;  %v3974_v18 = vpop.permute.xlu1 %3973  ;;  %v2089_v36 = vmul.f32 %v5425_v55, %v4730_v11 }
 0x333   : > { %2057 = vrot.lane.b32.xlu0 %v2035_v9, %s4266_s26  ;;  %v3976_v51 = vunpack.i.h.bf16 %v3974_v18  ;;  %v3975_v21 = vunpack.i.l.bf16 %v3974_v18 }
 0x334   : > { %3615 = vst.msk [vmem:[%s4948_s21 + $0x38] sm:$0xf] %vm912_vm1, %v3765_v14  ;;  %3616 = vst.msk [vmem:[%s4948_s21 + $0x3c] sm:$0xf] %vm912_vm1, %v3766_v49  ;;  %v3989_v19 = vpop.permute.xlu0 %3988 }
 0x335   : > { %v3991_v34 = vunpack.i.h.bf16 %v3989_v19  ;;  %v3990_v31 = vunpack.i.l.bf16 %v3989_v19  ;;  %v1834_v19 = vmul.f32 %v4644_v2, %v5402_v13 }
 0x336   : > { %v3979_v30 = vpop.permute.xlu1 %3978 }
 0x337   : > { %v1618_v26 = vsel %vm871_vm2, %v3985_v53, %v3990_v31  ;;  %v1619_v29 = vsel %vm871_vm2, %v3986_v28, %v3991_v34  ;;  %v3981_v39 = vunpack.i.h.bf16 %v3979_v30  ;;  %v3980_v32 = vunpack.i.l.bf16 %v3979_v30  ;;  %2101 = vrot.lane.b32.xlu0 %v2085_v46, %s4262_s1 }
 0x338   : > { %v3767_v23 = vpack.c.bf16 %v1618_v26, %v1618_v26  ;;  %v3768_v4 = vpack.c.bf16 %v1619_v29, %v1619_v29  ;;  %v4004_v44 = vpop.permute.xlu0 %4003  ;;  %v1835_v31 = vmul.f32 %v4656_v8, %v5404_v50 }
 0x339   : > { %v1620_v0 = vsel %vm871_vm2, %v3975_v21, %v3980_v32  ;;  %v1621_v56 = vsel %vm871_vm2, %v3976_v51, %v3981_v39  ;;  %v4006_v12 = vunpack.i.h.bf16 %v4004_v44  ;;  %v4005_v48 = vunpack.i.l.bf16 %v4004_v44 }
 0x33a   : > { %3625 = vst.msk [vmem:[%s5116_s22 + $0x20] sm:$0xf] %vm912_vm1, %v3767_v23  ;;  %3626 = vst.msk [vmem:[%s5116_s22 + $0x24] sm:$0xf] %vm912_vm1, %v3768_v4  ;;  %v3769_v27 = vpack.c.bf16 %v1620_v0, %v1620_v0  ;;  %v3770_v58 = vpack.c.bf16 %v1621_v56, %v1621_v56  ;;  %v3994_v20 = vpop.permute.xlu1 %3993  ;;  %v2091_v51 = vmul.f32 %v4720_v22, %v5476_v16  ;;  %v6377_v56 = vld [vmem:[#allocation47_spill] sm:$0xff] }
 0x33b   : > { %2105 = vrot.lane.b32.xlu0 %v2087_v10, %s4262_s1  ;;  %v3996_v17 = vunpack.i.h.bf16 %v3994_v20  ;;  %v3995_v40 = vunpack.i.l.bf16 %v3994_v20  ;;  %v2030_v4 = vmul.f32 %v5262_v24, %v4690_v38  ;;  %v2032_v44 = vmul.f32 %v4685_v59, %v5272_v60 }
 0x33c   : > { %3627 = vst.msk [vmem:[%s5116_s22 + $0x28] sm:$0xf] %vm912_vm1, %v3769_v27  ;;  %3628 = vst.msk [vmem:[%s5116_s22 + $0x2c] sm:$0xf] %vm912_vm1, %v3770_v58  ;;  %v4009_v54 = vpop.permute.xlu0 %4008  ;;  %v2034_v10 = vmul.f32 %v5282_v25, %v6297_v42  ;;  %v2036_v0 = vmul.f32 %v4732_v7, %v5292_v52  ;;  %v2086_v24 = vmul.f32 %v6377_v56, %v4690_v38  ;;  %v6378_v27 = vld [vmem:[#allocation48_spill] sm:$0xff]  ;;  %v6379_v58 = vld [vmem:[#allocation49_spill] sm:$0xff] }
 0x33d   : > { %v4011_v61 = vunpack.i.h.bf16 %v4009_v54  ;;  %v4010_v9 = vunpack.i.l.bf16 %v4009_v54  ;;  %v2088_v60 = vmul.f32 %v4685_v59, %v6378_v27  ;;  %v2090_v25 = vmul.f32 %v6379_v58, %v6297_v42 }
 0x33e   : > { %v3999_v14 = vpop.permute.xlu1 %3998  ;;  %v2092_v52 = vmul.f32 %v4732_v7, %v5482_v33 }
 0x33f   : > { %v1623_v49 = vsel %vm871_vm2, %v4006_v12, %v4011_v61  ;;  %v1622_v18 = vsel %vm871_vm2, %v4005_v48, %v4010_v9  ;;  %v4001_v46 = vunpack.i.h.bf16 %v3999_v14  ;;  %v4000_v55 = vunpack.i.l.bf16 %v3999_v14  ;;  %2109 = vrot.lane.b32.xlu0 %v2089_v36, %s4262_s1 }
 0x340   : > { %v3772_v28 = vpack.c.bf16 %v1623_v49, %v1623_v49  ;;  %v3771_v53 = vpack.c.bf16 %v1622_v18, %v1622_v18  ;;  %v1889_v34 = vpop.permute.xlu0 %1888 }
 0x341   : > { %v1624_v21 = vsel %vm871_vm2, %v3995_v40, %v4000_v55  ;;  %v1625_v30 = vsel %vm871_vm2, %v3996_v17, %v4001_v46  ;;  %v1906_v32 = vadd.f32 %v1889_v34, %v1834_v19 }
 0x342   : > { %3629 = vst.msk [vmem:[%s5116_s22 + $0x30] sm:$0xf] %vm912_vm1, %v3771_v53  ;;  %3630 = vst.msk [vmem:[%s5116_s22 + $0x34] sm:$0xf] %vm912_vm1, %v3772_v28  ;;  %v3773_v26 = vpack.c.bf16 %v1624_v21, %v1624_v21  ;;  %v3774_v29 = vpack.c.bf16 %v1625_v30, %v1625_v30  ;;  %v1891_v39 = vpop.permute.xlu1 %1890 }
 0x343   : > { %v1907_v23 = vadd.f32 %v1891_v39, %v1835_v31  ;;  %2113 = vrot.lane.b32.xlu0 %v2091_v51, %s4262_s1 }
 0x344   : > { %3631 = vst.msk [vmem:[%s5116_s22 + $0x38] sm:$0xf] %vm912_vm1, %v3773_v26  ;;  %3632 = vst.msk [vmem:[%s5116_s22 + $0x3c] sm:$0xf] %vm912_vm1, %v3774_v29  ;;  %v4014_v20 = vpop.permute.xlu0 %4013 }
 0x345   : > { %v4047_v16 = vpack.i.bf16 %v1907_v23, %v1906_v32  ;;  %v4016_v61 = vunpack.i.h.bf16 %v4014_v20  ;;  %v4015_v9 = vunpack.i.l.bf16 %v4014_v20 }
 0x346   : > { %v4019_v36 = vpop.permute.xlu1 %4018 }
 0x347   : > { %4048 = vrot.lane.b32.xlu1 %v4047_v16, %s4269_s29  ;;  %v4021_v55 = vunpack.i.h.bf16 %v4019_v36  ;;  %v4020_v19 = vunpack.i.l.bf16 %v4019_v36 }
 0x348   : > { %v4024_v54 = vpop.permute.xlu0 %4023 }
 0x349   : > { %v4026_v26 = vunpack.i.h.bf16 %v4024_v54  ;;  %v4025_v29 = vunpack.i.l.bf16 %v4024_v54 }
 0x34a   : > { %v4029_v12 = vpop.permute.xlu1 %4028 }
 0x34b   : > { %2047 = vrot.lane.b32.xlu1 %v2030_v4, %s4266_s26  ;;  %v4031_v27 = vunpack.i.h.bf16 %v4029_v12 }
 0x34f   : > { %2051 = vrot.lane.b32.xlu1 %v2032_v44, %s4266_s26 }
 0x353   : > { %2055 = vrot.lane.b32.xlu1 %v2034_v10, %s4266_s26 }
 0x357   : > { %2059 = vrot.lane.b32.xlu1 %v2036_v0, %s4266_s26 }
 0x35b   : > { %2103 = vrot.lane.b32.xlu1 %v2086_v24, %s4262_s1 }
 0x35f   : > { %2107 = vrot.lane.b32.xlu1 %v2088_v60, %s4262_s1  ;;  %v4030_v60 = vunpack.i.l.bf16 %v4029_v12  ;;  %v6382_v12 = vld [vmem:[#allocation30_spill] sm:$0xff] }
 0x363   : > { %2111 = vrot.lane.b32.xlu1 %v2090_v25, %s4262_s1 }
 0x367   : > { %2115 = vrot.lane.b32.xlu1 %v2092_v52, %s4262_s1  ;;  %v6380_v52 = vld [vmem:[#allocation40_spill] sm:$0xff] }
 0x368   : > { %v2021_v20 = vmul.f32 %v6380_v52, %v4683_v43 }
 0x38d   : > { %v4034_v48 = vpop.permute.xlu0 %4033 }
 0x38e   : > { %v4036_v17 = vunpack.i.h.bf16 %v4034_v48  ;;  %v4035_v40 = vunpack.i.l.bf16 %v4034_v48  ;;  %v6381_v48 = vld [vmem:[#allocation41_spill] sm:$0xff] }
 0x390   : > { %v1973_v14 = vsel %vm871_vm2, %v4016_v61, %v4036_v17  ;;  %v1972_v49 = vsel %vm871_vm2, %v4015_v9, %v4035_v40  ;;  %v2022_v61 = vmul.f32 %v6381_v48, %v4690_v38  ;;  %v2079_v48 = vmul.f32 %v4676_v47, %v5394_v37 }
 0x391   : > { %v3776_v18 = vpack.c.bf16 %v1973_v14, %v1973_v14  ;;  %v3775_v46 = vpack.c.bf16 %v1972_v49, %v1972_v49  ;;  %v4039_v33 = vpop.permute.xlu1 %4038 }
 0x392   : > { %v4041_v28 = vunpack.i.h.bf16 %v4039_v33  ;;  %v4040_v53 = vunpack.i.l.bf16 %v4039_v33  ;;  %v6383_v33 = vld [vmem:[#allocation6_spill] sm:$0xff] }
 0x393   : > { %3649 = vst.msk [vmem:[%s4948_s21 + $0x40] sm:$0xf] %vm912_vm1, %v3775_v46  ;;  %3650 = vst.msk [vmem:[%s4948_s21 + $0x44] sm:$0xf] %vm912_vm1, %v3776_v18  ;;  %v2024_v46 = vmul.f32 %v4685_v59, %v6382_v12 }
 0x394   : > { %v1974_v34 = vsel %vm871_vm2, %v4020_v19, %v4040_v53  ;;  %v1975_v31 = vsel %vm871_vm2, %v4021_v55, %v4041_v28  ;;  %v2023_v55 = vmul.f32 %v4676_v47, %v6383_v33  ;;  %v2083_v33 = vmul.f32 %v4720_v22, %v5402_v13  ;;  %v6390_v13 = vld [vmem:[#allocation34_spill] sm:$0xff] }
 0x395   : > { %v3777_v51 = vpack.c.bf16 %v1974_v34, %v1974_v34  ;;  %v3778_v21 = vpack.c.bf16 %v1975_v31, %v1975_v31  ;;  %v4044_v30 = vpop.permute.xlu0 %4043  ;;  %v6384_v31 = vld [vmem:[#allocation10_spill] sm:$0xff] }
 0x396   : > { %v4046_v39 = vunpack.i.h.bf16 %v4044_v30  ;;  %v4045_v32 = vunpack.i.l.bf16 %v4044_v30 }
 0x397   : > { %3651 = vst.msk [vmem:[%s4948_s21 + $0x48] sm:$0xf] %vm912_vm1, %v3777_v51  ;;  %3652 = vst.msk [vmem:[%s4948_s21 + $0x4c] sm:$0xf] %vm912_vm1, %v3778_v21  ;;  %v2025_v51 = vmul.f32 %v6384_v31, %v4730_v11  ;;  %v6385_v21 = vld [vmem:[#allocation7_spill] sm:$0xff] }
 0x398   : > { %v1977_v23 = vsel %vm871_vm2, %v4026_v26, %v4046_v39  ;;  %v1976_v16 = vsel %vm871_vm2, %v4025_v29, %v4045_v32  ;;  %v2026_v30 = vmul.f32 %v6385_v21, %v6297_v42  ;;  %v6389_v31 = vld [vmem:[#allocation31_spill] sm:$0xff]  ;;  %v6393_v21 = vld [vmem:[#allocation36_spill] sm:$0xff] }
 0x399   : > { %v3780_v4 = vpack.c.bf16 %v1977_v23, %v1977_v23  ;;  %v3779_v44 = vpack.c.bf16 %v1976_v16, %v1976_v16  ;;  %v2046_v10 = vpop.permute.xlu0 %2045  ;;  %v6386_v16 = vld [vmem:[#allocation11_spill] sm:$0xff] }
 0x39a   : > { %v2069_v14 = vsub.f32 %v2021_v20, %v2046_v10 }
 0x39b   : > { %3653 = vst.msk [vmem:[%s4948_s21 + $0x50] sm:$0xf] %vm912_vm1, %v3779_v44  ;;  %3654 = vst.msk [vmem:[%s4948_s21 + $0x54] sm:$0xf] %vm912_vm1, %v3780_v4  ;;  %v2027_v4 = vmul.f32 %v4720_v22, %v6386_v16  ;;  %v6387_v44 = vld [vmem:[#allocation12_spill] sm:$0xff]  ;;  %v6400_v16 = vld [vmem:[#allocation19_spill] sm:$0xff] }
 0x39c   : > { %v2028_v10 = vmul.f32 %v4732_v7, %v6387_v44  ;;  %v6402_v44 = vld [vmem:[#allocation9_spill] sm:$0xff] }
 0x39d   : > { %v2050_v0 = vpop.permute.xlu0 %2049 }
 0x39e   : > { %v2071_v53 = vsub.f32 %v2023_v55, %v2050_v0  ;;  %v2084_v55 = vmul.f32 %v4732_v7, %v5404_v50  ;;  %v6391_v50 = vld [vmem:[#allocation37_spill] sm:$0xff] }
 0x3a1   : > { %v2054_v56 = vpop.permute.xlu0 %2053 }
 0x3a2   : > { %v2073_v32 = vsub.f32 %v2025_v51, %v2054_v56  ;;  %v2078_v56 = vmul.f32 %v5392_v15, %v4690_v38  ;;  %v2081_v15 = vmul.f32 %v5398_v41, %v4730_v11  ;;  %v6392_v51 = vld [vmem:[#allocation33_spill] sm:$0xff] }
 0x3a5   : > { %v2058_v18 = vpop.permute.xlu0 %2057 }
 0x3a9   : > { %v2102_v29 = vpop.permute.xlu0 %2101 }
 0x3b9   : > { %v4049_v24 = vpop.permute.xlu1 %4048 }
 0x3ba   : > { %v4051_v58 = vunpack.i.h.bf16 %v4049_v24  ;;  %v4050_v25 = vunpack.i.l.bf16 %v4049_v24 }
 0x3bc   : > { %v1978_v36 = vsel %vm871_vm2, %v4030_v60, %v4050_v25  ;;  %v1979_v54 = vsel %vm871_vm2, %v4031_v27, %v4051_v58  ;;  %v2075_v27 = vsub.f32 %v2027_v4, %v2058_v18  ;;  %v2106_v58 = vpop.permute.xlu0 %2105  ;;  %v2077_v25 = vmul.f32 %v5390_v35, %v4683_v43  ;;  %v6401_v4 = vld [vmem:[#allocation20_spill] sm:$0xff] }
 0x3bd   : > { %v3781_v9 = vpack.c.bf16 %v1978_v36, %v1978_v36  ;;  %v3782_v17 = vpack.c.bf16 %v1979_v54, %v1979_v54  ;;  %v2048_v40 = vpop.permute.xlu1 %2047 }
 0x3be   : > { %v2070_v49 = vsub.f32 %v2022_v61, %v2048_v40  ;;  %v2125_v36 = vadd.f32 %v2102_v29, %v2077_v25  ;;  %v2080_v61 = vmul.f32 %v4685_v59, %v5396_v45  ;;  %v6396_v29 = vld [vmem:[#allocation38_spill] sm:$0xff]  ;;  %v6409_v25 = vld [vmem:[#allocation45_spill] sm:$0xff] }
 0x3bf   : > { %3655 = vst.msk [vmem:[%s4948_s21 + $0x58] sm:$0xf] %vm912_vm1, %v3781_v9  ;;  %3656 = vst.msk [vmem:[%s4948_s21 + $0x5c] sm:$0xf] %vm912_vm1, %v3782_v17 }
 0x3c0   : > { %v4052_v19 = vpack.i.bf16 %v2070_v49, %v2069_v14  ;;  %v2110_v17 = vpop.permute.xlu0 %2109  ;;  %v2127_v14 = vadd.f32 %v2106_v58, %v2079_v48  ;;  %v2082_v49 = vmul.f32 %v5400_v57, %v6297_v42  ;;  %v6408_v58 = vld [vmem:[#allocation42_spill] sm:$0xff] }
 0x3c1   : > { %v2052_v28 = vpop.permute.xlu1 %2051 }
 0x3c2   : > { %v2072_v34 = vsub.f32 %v2024_v46, %v2052_v28  ;;  %4053 = vrot.lane.b32.xlu0 %v4052_v19, %s4269_s29  ;;  %v2129_v46 = vadd.f32 %v2110_v17, %v2081_v15 }
 0x3c4   : > { %v4057_v26 = vpack.i.bf16 %v2072_v34, %v2071_v53  ;;  %v2114_v45 = vpop.permute.xlu0 %2113  ;;  %v6388_v34 = vld [vmem:[#allocation32_spill] sm:$0xff] }
 0x3c5   : > { %v2056_v39 = vpop.permute.xlu1 %2055  ;;  %v2131_v53 = vadd.f32 %v2114_v45, %v2083_v33 }
 0x3c6   : > { %v2074_v23 = vsub.f32 %v2026_v30, %v2056_v39  ;;  %4058 = vrot.lane.b32.xlu1 %v4057_v26, %s4269_s29  ;;  %v6394_v30 = vld [vmem:[#allocation39_spill] sm:$0xff]  ;;  %v6395_v26 = vld [vmem:[#allocation13_spill] sm:$0xff]  ;;  %v6397_v39 = vld [vmem:[#allocation16_spill] sm:$0xff] }
 0x3c8   : > { %v4062_v0 = vpack.i.bf16 %v2074_v23, %v2073_v32  ;;  %v6398_v32 = vld [vmem:[#allocation15_spill] sm:$0xff]  ;;  %v6399_v23 = vld [vmem:[#allocation8_spill] sm:$0xff] }
 0x3c9   : > { %v2060_v24 = vpop.permute.xlu1 %2059 }
 0x3ca   : > { %v2076_v60 = vsub.f32 %v2028_v10, %v2060_v24  ;;  %4063 = vrot.lane.b32.xlu0 %v4062_v0, %s4269_s29  ;;  %v6403_v10 = vld [vmem:[#allocation24_spill] sm:$0xff]  ;;  %v6404_v0 = vld [vmem:[#allocation23_spill] sm:$0xff] }
 0x3cb   : > { %v6405_v24 = vld [vmem:[#allocation28_spill] sm:$0xff] }
 0x3cc   : > { %v4067_v52 = vpack.i.bf16 %v2076_v60, %v2075_v27  ;;  %v6406_v27 = vld [vmem:[#allocation27_spill] sm:$0xff] }
 0x3cd   : > { %v2104_v20 = vpop.permute.xlu1 %2103  ;;  %v6407_v60 = vld [vmem:[#allocation43_spill] sm:$0xff] }
 0x3ce   : > { %v2126_v54 = vadd.f32 %v2104_v20, %v2078_v56  ;;  %4068 = vrot.lane.b32.xlu1 %v4067_v52, %s4269_s29  ;;  %v6410_v56 = vld [vmem:[#allocation44_spill] sm:$0xff]  ;;  %v6411_v52 = vld [vmem:[#allocation46_spill] sm:$0xff] }
 0x3d0   : > { %v4072_v9 = vpack.i.bf16 %v2126_v54, %v2125_v36 }
 0x3d1   : > { %v2108_v40 = vpop.permute.xlu1 %2107 }
 0x3d2   : > { %v2128_v35 = vadd.f32 %v2108_v40, %v2080_v61  ;;  %4073 = vrot.lane.b32.xlu0 %v4072_v9, %s4269_s29 }
 0x3d4   : > { %v4077_v18 = vpack.i.bf16 %v2128_v35, %v2127_v14 }
 0x3d5   : > { %v2112_v12 = vpop.permute.xlu1 %2111 }
 0x3d6   : > { %v2130_v37 = vadd.f32 %v2112_v12, %v2082_v49  ;;  %4078 = vrot.lane.b32.xlu1 %v4077_v18, %s4269_s29 }
 0x3d8   : > { %v4082_v19 = vpack.i.bf16 %v2130_v37, %v2129_v46 }
 0x3d9   : > { %v2116_v28 = vpop.permute.xlu1 %2115 }
 0x3da   : > { %v2132_v41 = vadd.f32 %v2116_v28, %v2084_v55  ;;  %4083 = vrot.lane.b32.xlu0 %v4082_v19, %s4269_s29 }
 0x3dc   : > { %v4087_v57 = vpack.i.bf16 %v2132_v41, %v2131_v53 }
 0x3de   : > { %2246 = vrot.lane.b32.xlu0 %v6388_v34, %s4269_s29  ;;  %4088 = vrot.lane.b32.xlu1 %v4087_v57, %s4269_s29 }
 0x3e2   : > { %2250 = vrot.lane.b32.xlu0 %v6389_v31, %s4269_s29  ;;  %2248 = vrot.lane.b32.xlu1 %v6390_v13, %s4269_s29 }
 0x3e6   : > { %2254 = vrot.lane.b32.xlu0 %v6391_v50, %s4269_s29  ;;  %2252 = vrot.lane.b32.xlu1 %v6392_v51, %s4269_s29 }
 0x3ea   : > { %2258 = vrot.lane.b32.xlu0 %v6393_v21, %s4269_s29  ;;  %2256 = vrot.lane.b32.xlu1 %v6394_v30, %s4269_s29 }
 0x3ee   : > { %2279 = vrot.lane.b32.xlu0 %v6395_v26, %s4270_s14  ;;  %2260 = vrot.lane.b32.xlu1 %v6396_v29, %s4269_s29 }
 0x3f2   : > { %2283 = vrot.lane.b32.xlu0 %v6397_v39, %s4270_s14  ;;  %2281 = vrot.lane.b32.xlu1 %v6398_v32, %s4270_s14 }
 0x3f6   : > { %2287 = vrot.lane.b32.xlu0 %v6399_v23, %s4270_s14  ;;  %2285 = vrot.lane.b32.xlu1 %v6400_v16, %s4270_s14 }
 0x3fa   : > { %2291 = vrot.lane.b32.xlu0 %v6401_v4, %s4270_s14  ;;  %2289 = vrot.lane.b32.xlu1 %v6402_v44, %s4270_s14 }
 0x3fe   : > { %2311 = vrot.lane.b32.xlu0 %v6403_v10, %s4271_s24  ;;  %2293 = vrot.lane.b32.xlu1 %v6404_v0, %s4270_s14 }
 0x402   : > { %2315 = vrot.lane.b32.xlu0 %v6405_v24, %s4271_s24  ;;  %2313 = vrot.lane.b32.xlu1 %v6406_v27, %s4271_s24 }
 0x406   : > { %2319 = vrot.lane.b32.xlu0 %v6407_v60, %s4271_s24  ;;  %2317 = vrot.lane.b32.xlu1 %v6408_v58, %s4271_s24 }
 0x40a   : > { %2323 = vrot.lane.b32.xlu0 %v6409_v25, %s4271_s24  ;;  %2321 = vrot.lane.b32.xlu1 %v6410_v56, %s4271_s24 }
 0x40e   : > { %2415 = vrot.lane.b32.xlu0 %v6403_v10, %s4270_s14  ;;  %2325 = vrot.lane.b32.xlu1 %v6411_v52, %s4271_s24 }
 0x412   : > { %2419 = vrot.lane.b32.xlu0 %v6405_v24, %s4270_s14  ;;  %2417 = vrot.lane.b32.xlu1 %v6406_v27, %s4270_s14 }
 0x416   : > { %2423 = vrot.lane.b32.xlu0 %v6407_v60, %s4270_s14  ;;  %2421 = vrot.lane.b32.xlu1 %v6408_v58, %s4270_s14 }
 0x41a   : > { %2427 = vrot.lane.b32.xlu0 %v6409_v25, %s4270_s14  ;;  %2425 = vrot.lane.b32.xlu1 %v6410_v56, %s4270_s14 }
 0x41e   : > { %2429 = vrot.lane.b32.xlu1 %v6411_v52, %s4270_s14 }
 0x434   : > { %v4054_v20 = vpop.permute.xlu0 %4053 }
 0x435   : > { %v4056_v9 = vunpack.i.h.bf16 %v4054_v20  ;;  %v4055_v17 = vunpack.i.l.bf16 %v4054_v20 }
 0x438   : > { %v4059_v36 = vpop.permute.xlu1 %4058 }
 0x439   : > { %v4061_v46 = vunpack.i.h.bf16 %v4059_v36  ;;  %v4060_v37 = vunpack.i.l.bf16 %v4059_v36 }
 0x43c   : > { %v4064_v54 = vpop.permute.xlu0 %4063 }
 0x43d   : > { %v4066_v57 = vunpack.i.h.bf16 %v4064_v54  ;;  %v4065_v26 = vunpack.i.l.bf16 %v4064_v54 }
 0x440   : > { %v4069_v48 = vpop.permute.xlu1 %4068 }
 0x441   : > { %v4071_v24 = vunpack.i.h.bf16 %v4069_v48  ;;  %v4070_v27 = vunpack.i.l.bf16 %v4069_v48 }
 0x444   : > { %v4074_v61 = vpop.permute.xlu0 %4073 }
 0x445   : > { %v4076_v40 = vunpack.i.h.bf16 %v4074_v61  ;;  %v4075_v14 = vunpack.i.l.bf16 %v4074_v61 }
 0x447   : > { %v2198_v35 = vsel %vm871_vm2, %v4056_v9, %v4076_v40  ;;  %v2197_v15 = vsel %vm871_vm2, %v4055_v17, %v4075_v14 }
 0x448   : > { %v3784_v49 = vpack.c.bf16 %v2198_v35, %v2198_v35  ;;  %v3783_v18 = vpack.c.bf16 %v2197_v15, %v2197_v15  ;;  %v4079_v12 = vpop.permute.xlu1 %4078 }
 0x449   : > { %v4081_v45 = vunpack.i.h.bf16 %v4079_v12  ;;  %v4080_v33 = vunpack.i.l.bf16 %v4079_v12 }
 0x44a   : > { %3665 = vst.msk [vmem:[%s5116_s22 + $0x40] sm:$0xf] %vm912_vm1, %v3783_v18  ;;  %3666 = vst.msk [vmem:[%s5116_s22 + $0x44] sm:$0xf] %vm912_vm1, %v3784_v49 }
 0x44b   : > { %v2199_v55 = vsel %vm871_vm2, %v4060_v37, %v4080_v33  ;;  %v2200_v19 = vsel %vm871_vm2, %v4061_v46, %v4081_v45 }
 0x44c   : > { %v3785_v28 = vpack.c.bf16 %v2199_v55, %v2199_v55  ;;  %v3786_v53 = vpack.c.bf16 %v2200_v19, %v2200_v19  ;;  %v4084_v41 = vpop.permute.xlu0 %4083 }
 0x44d   : > { %v4086_v39 = vunpack.i.h.bf16 %v4084_v41  ;;  %v4085_v32 = vunpack.i.l.bf16 %v4084_v41 }
 0x44e   : > { %3667 = vst.msk [vmem:[%s5116_s22 + $0x48] sm:$0xf] %vm912_vm1, %v3785_v28  ;;  %3668 = vst.msk [vmem:[%s5116_s22 + $0x4c] sm:$0xf] %vm912_vm1, %v3786_v53 }
 0x44f   : > { %v2202_v23 = vsel %vm871_vm2, %v4066_v57, %v4086_v39  ;;  %v2201_v16 = vsel %vm871_vm2, %v4065_v26, %v4085_v32 }
 0x450   : > { %v3788_v4 = vpack.c.bf16 %v2202_v23, %v2202_v23  ;;  %v3787_v44 = vpack.c.bf16 %v2201_v16, %v2201_v16  ;;  %v2247_v10 = vpop.permute.xlu0 %2246  ;;  %v4089_v0 = vpop.permute.xlu1 %4088 }
 0x451   : > { %3673 = vst.msk [vmem:[%s4700_s27 + $0x40] sm:$0xf] %vm912_vm1, %v2247_v10  ;;  %v4091_v60 = vunpack.i.h.bf16 %v4089_v0  ;;  %v4090_v58 = vunpack.i.l.bf16 %v4089_v0 }
 0x452   : > { %3669 = vst.msk [vmem:[%s5116_s22 + $0x50] sm:$0xf] %vm912_vm1, %v3787_v44  ;;  %3670 = vst.msk [vmem:[%s5116_s22 + $0x54] sm:$0xf] %vm912_vm1, %v3788_v4 }
 0x453   : > { %v2203_v25 = vsel %vm871_vm2, %v4070_v27, %v4090_v58  ;;  %v2204_v56 = vsel %vm871_vm2, %v4071_v24, %v4091_v60 }
 0x454   : > { %v3789_v52 = vpack.c.bf16 %v2203_v25, %v2203_v25  ;;  %v3790_v20 = vpack.c.bf16 %v2204_v56, %v2204_v56  ;;  %v2251_v36 = vpop.permute.xlu0 %2250  ;;  %v2249_v54 = vpop.permute.xlu1 %2248 }
 0x455   : > { %3675 = vst.msk [vmem:[%s4700_s27 + $0x48] sm:$0xf] %vm912_vm1, %v2251_v36  ;;  %3674 = vst.msk [vmem:[%s4700_s27 + $0x44] sm:$0xf] %vm912_vm1, %v2249_v54 }
 0x456   : > { %3671 = vst.msk [vmem:[%s5116_s22 + $0x58] sm:$0xf] %vm912_vm1, %v3789_v52  ;;  %3672 = vst.msk [vmem:[%s5116_s22 + $0x5c] sm:$0xf] %vm912_vm1, %v3790_v20 }
 0x458   : > { %v2255_v48 = vpop.permute.xlu0 %2254  ;;  %v2253_v61 = vpop.permute.xlu1 %2252 }
 0x459   : > { %3677 = vst.msk [vmem:[%s4700_s27 + $0x50] sm:$0xf] %vm912_vm1, %v2255_v48  ;;  %3676 = vst.msk [vmem:[%s4700_s27 + $0x4c] sm:$0xf] %vm912_vm1, %v2253_v61 }
 0x45c   : > { %v2259_v9 = vpop.permute.xlu0 %2258  ;;  %v2257_v17 = vpop.permute.xlu1 %2256 }
 0x45d   : > { %3679 = vst.msk [vmem:[%s4700_s27 + $0x58] sm:$0xf] %vm912_vm1, %v2259_v9  ;;  %3678 = vst.msk [vmem:[%s4700_s27 + $0x54] sm:$0xf] %vm912_vm1, %v2257_v17 }
 0x460   : > { %v2280_v40 = vpop.permute.xlu0 %2279  ;;  %v2261_v14 = vpop.permute.xlu1 %2260 }
 0x461   : > { %v5766_v35 = vmul.f32 %v2280_v40, %v4646_v3  ;;  %v5769_v15 = vmul.f32 %v2280_v40, %v4683_v43  ;;  %3680 = vst.msk [vmem:[%s4700_s27 + $0x5c] sm:$0xf] %vm912_vm1, %v2261_v14  ;;  %v4198_v14 = vld [vmem:[%s4459_s25] sm:$0xff] }
 0x464   : > { %v2284_v49 = vpop.permute.xlu0 %2283  ;;  %v2282_v18 = vpop.permute.xlu1 %2281 }
 0x465   : > { %v5774_v12 = vmul.f32 %v4642_v1, %v2284_v49  ;;  %v5777_v46 = vmul.f32 %v4676_v47, %v2284_v49  ;;  %v5780_v37 = vmul.f32 %v2282_v18, %v4663_v62  ;;  %v5783_v45 = vmul.f32 %v2282_v18, %v4690_v38  ;;  %v4199_v49 = vld [vmem:[%s4459_s25 + $0x10] sm:$0xff]  ;;  %v4200_v18 = vld [vmem:[%s4459_s25 + $0x8] sm:$0xff] }
 0x468   : > { %v2288_v33 = vpop.permute.xlu0 %2287  ;;  %v2286_v55 = vpop.permute.xlu1 %2285 }
 0x469   : > { %v5786_v19 = vmul.f32 %v2288_v33, %v4650_v5  ;;  %v5789_v28 = vmul.f32 %v2288_v33, %v4730_v11  ;;  %v5792_v53 = vmul.f32 %v4652_v6, %v2286_v55  ;;  %v5795_v41 = vmul.f32 %v4685_v59, %v2286_v55  ;;  %v4201_v55 = vld [vmem:[%s4459_s25 + $0x20] sm:$0xff] }
 0x46c   : > { %v2292_v57 = vpop.permute.xlu0 %2291  ;;  %v2290_v26 = vpop.permute.xlu1 %2289 }
 0x46d   : > { %v5798_v39 = vmul.f32 %v4644_v2, %v2292_v57  ;;  %v5801_v32 = vmul.f32 %v4720_v22, %v2292_v57  ;;  %v5804_v23 = vmul.f32 %v2290_v26, %v4661_v63  ;;  %v5807_v16 = vmul.f32 %v2290_v26, %v6297_v42  ;;  %v4202_v57 = vld [vmem:[%s4459_s25 + $0x18] sm:$0xff] }
 0x470   : > { %v5809_v4 = vpop.permute.xlu0 %2311  ;;  %v2294_v44 = vpop.permute.xlu1 %2293 }
 0x471   : > { %v2335_v10 = vmul.f32 %v5809_v4, %v4646_v3  ;;  %v5814_v0 = vmul.f32 %v4656_v8, %v2294_v44  ;;  %v5817_v24 = vmul.f32 %v4732_v7, %v2294_v44 }
 0x473   : > { %2351 = vrot.lane.b32.xlu0 %v2335_v10, %s4266_s26  ;;  %v4203_v10 = vld [vmem:[%s4459_s25 + $0x30] sm:$0xff] }
 0x474   : > { %v5820_v27 = vpop.permute.xlu0 %2315  ;;  %v5822_v60 = vpop.permute.xlu1 %2313 }
 0x475   : > { %v2337_v58 = vmul.f32 %v4642_v1, %v5820_v27  ;;  %v2336_v25 = vmul.f32 %v5822_v60, %v4663_v62 }
 0x477   : > { %2355 = vrot.lane.b32.xlu0 %v2337_v58, %s4266_s26  ;;  %2353 = vrot.lane.b32.xlu1 %v2336_v25, %s4266_s26  ;;  %v4204_v58 = vld [vmem:[%s4459_s25 + $0x28] sm:$0xff] }
 0x478   : > { %v2320_v56 = vpop.permute.xlu0 %2319  ;;  %v2318_v52 = vpop.permute.xlu1 %2317 }
 0x479   : > { %v2339_v20 = vmul.f32 %v2320_v56, %v4650_v5  ;;  %v2338_v36 = vmul.f32 %v4652_v6, %v2318_v52 }
 0x47b   : > { %2359 = vrot.lane.b32.xlu0 %v2339_v20, %s4266_s26  ;;  %2357 = vrot.lane.b32.xlu1 %v2338_v36, %s4266_s26  ;;  %v4205_v36 = vld [vmem:[%s4459_s25 + $0x38] sm:$0xff]  ;;  %s4272_s25 = smov 104  }
 0x47c   : > { %v2324_v54 = vpop.permute.xlu0 %2323  ;;  %v2322_v48 = vpop.permute.xlu1 %2321 }
 0x47d   : > { %v2341_v61 = vmul.f32 %v4644_v2, %v2324_v54  ;;  %v2340_v9 = vmul.f32 %v2322_v48, %v4661_v63 }
 0x47f   : > { %2363 = vrot.lane.b32.xlu0 %v2341_v61, %s4266_s26  ;;  %2361 = vrot.lane.b32.xlu1 %v2340_v9, %s4266_s26 }
 0x480   : > { %v2326_v17 = vpop.permute.xlu1 %2325  ;;  %v2416_v33 = vpop.permute.xlu0 %2415 }
 0x481   : > { %v2342_v40 = vmul.f32 %v4656_v8, %v2326_v17  ;;  %v2439_v25 = vmul.f32 %v2416_v33, %v4646_v3 }
 0x483   : > { %2383 = vrot.lane.b32.xlu0 %v4198_v14, %s4271_s24  ;;  %2365 = vrot.lane.b32.xlu1 %v2342_v40, %s4266_s26 }
 0x484   : > { %v2418_v26 = vpop.permute.xlu1 %2417  ;;  %v2420_v44 = vpop.permute.xlu0 %2419 }
 0x485   : > { %v2441_v9 = vmul.f32 %v4642_v1, %v2420_v44  ;;  %v2440_v40 = vmul.f32 %v2418_v26, %v4663_v62 }
 0x487   : > { %2387 = vrot.lane.b32.xlu0 %v4199_v49, %s4271_s24  ;;  %2385 = vrot.lane.b32.xlu1 %v4200_v18, %s4271_s24 }
 0x488   : > { %v2422_v20 = vpop.permute.xlu1 %2421  ;;  %v2424_v61 = vpop.permute.xlu0 %2423 }
 0x489   : > { %v2443_v49 = vmul.f32 %v2424_v61, %v4650_v5  ;;  %v2442_v18 = vmul.f32 %v4652_v6, %v2422_v20 }
 0x48b   : > { %2391 = vrot.lane.b32.xlu0 %v4201_v55, %s4271_s24  ;;  %2389 = vrot.lane.b32.xlu1 %v4202_v57, %s4271_s24 }
 0x48c   : > { %v2426_v14 = vpop.permute.xlu1 %2425  ;;  %v2428_v55 = vpop.permute.xlu0 %2427 }
 0x48d   : > { %v2445_v57 = vmul.f32 %v4644_v2, %v2428_v55 }
 0x48f   : > { %2395 = vrot.lane.b32.xlu0 %v4203_v10, %s4271_s24  ;;  %2393 = vrot.lane.b32.xlu1 %v4204_v58, %s4271_s24  ;;  %v2444_v10 = vmul.f32 %v2426_v14, %v4661_v63 }
 0x490   : > { %v2430_v58 = vpop.permute.xlu1 %2429 }
 0x493   : > { %2455 = vrot.lane.b32.xlu0 %v2439_v25, %s4262_s1  ;;  %2397 = vrot.lane.b32.xlu1 %v4205_v36, %s4271_s24  ;;  %v2608_v25 = vmul.f32 %v5809_v4, %v4683_v43  ;;  %v2446_v36 = vmul.f32 %v4656_v8, %v2430_v58  ;;  %v2611_v4 = vmul.f32 %v4685_v59, %v2318_v52 }
 0x494   : > { %v2665_v52 = vmul.f32 %v2418_v26, %v4690_v38  ;;  %v2671_v26 = vmul.f32 %v4732_v7, %v2430_v58 }
 0x497   : > { %2459 = vrot.lane.b32.xlu0 %v2441_v9, %s4262_s1  ;;  %2457 = vrot.lane.b32.xlu1 %v2440_v40, %s4262_s1  ;;  %v2610_v9 = vmul.f32 %v4676_v47, %v5820_v27  ;;  %v2609_v40 = vmul.f32 %v5822_v60, %v4690_v38  ;;  %v2664_v27 = vmul.f32 %v2416_v33, %v4683_v43 }
 0x498   : > { %v2615_v60 = vmul.f32 %v4732_v7, %v2326_v17  ;;  %v2670_v17 = vmul.f32 %v4720_v22, %v2428_v55  ;;  %v2669_v33 = vmul.f32 %v2426_v14, %v6297_v42 }
 0x49b   : > { %2463 = vrot.lane.b32.xlu0 %v2443_v49, %s4262_s1  ;;  %2461 = vrot.lane.b32.xlu1 %v2442_v18, %s4262_s1  ;;  %v2612_v49 = vmul.f32 %v2320_v56, %v4730_v11  ;;  %v2614_v18 = vmul.f32 %v4720_v22, %v2324_v54  ;;  %v2666_v56 = vmul.f32 %v4676_v47, %v2420_v44 }
 0x49c   : > { %v2668_v54 = vmul.f32 %v2424_v61, %v4730_v11 }
 0x49f   : > { %2467 = vrot.lane.b32.xlu0 %v2445_v57, %s4262_s1  ;;  %2465 = vrot.lane.b32.xlu1 %v2444_v10, %s4262_s1  ;;  %v2613_v57 = vmul.f32 %v2322_v48, %v6297_v42  ;;  %v2667_v48 = vmul.f32 %v4685_v59, %v2422_v20 }
 0x4a3   : > { %2624 = vrot.lane.b32.xlu0 %v2608_v25, %s4266_s26  ;;  %2469 = vrot.lane.b32.xlu1 %v2446_v36, %s4262_s1 }
 0x4a7   : > { %2628 = vrot.lane.b32.xlu0 %v2610_v9, %s4266_s26  ;;  %2626 = vrot.lane.b32.xlu1 %v2609_v40, %s4266_s26 }
 0x4ab   : > { %2632 = vrot.lane.b32.xlu0 %v2612_v49, %s4266_s26  ;;  %2630 = vrot.lane.b32.xlu1 %v2611_v4, %s4266_s26 }
 0x4af   : > { %2636 = vrot.lane.b32.xlu0 %v2614_v18, %s4266_s26  ;;  %2634 = vrot.lane.b32.xlu1 %v2613_v57, %s4266_s26 }
 0x4b3   : > { %2680 = vrot.lane.b32.xlu0 %v2664_v27, %s4262_s1  ;;  %2638 = vrot.lane.b32.xlu1 %v2615_v60, %s4266_s26 }
 0x4b7   : > { %2684 = vrot.lane.b32.xlu0 %v2666_v56, %s4262_s1  ;;  %2682 = vrot.lane.b32.xlu1 %v2665_v52, %s4262_s1 }
 0x4bb   : > { %2688 = vrot.lane.b32.xlu0 %v2668_v54, %s4262_s1  ;;  %2686 = vrot.lane.b32.xlu1 %v2667_v48, %s4262_s1 }
 0x4bf   : > { %2692 = vrot.lane.b32.xlu0 %v2670_v17, %s4262_s1  ;;  %2690 = vrot.lane.b32.xlu1 %v2669_v33, %s4262_s1 }
 0x4c3   : > { %2694 = vrot.lane.b32.xlu1 %v2671_v26, %s4262_s1  ;;  %s3725_s1 = sshll.u32 (%p4362_p5), %s4248_s30, 6 }
 0x4c4   : > { %s2875_s15 = sadd.s32 (%p4362_p5), %s3725_s1, %s4378_s23 }
 0x4c5   : > { %s3726_s26 = sshll.u32 (%p4362_p5), %s2875_s15, 2 }
 0x4c6   : > { %s2877_s19 = scalar_lea.vmem (%p4362_p5), %s6163_s6, %s3726_s26 }
 0x4e5   : > { %v2352_v44 = vpop.permute.xlu0 %2351 }
 0x4e6   : > { %v2375_v20 = vsub.f32 %v5766_v35, %v2352_v44 }
 0x4e9   : > { %v2356_v61 = vpop.permute.xlu0 %2355  ;;  %v2354_v10 = vpop.permute.xlu1 %2353 }
 0x4ea   : > { %v2376_v25 = vsub.f32 %v5780_v37, %v2354_v10  ;;  %v2377_v14 = vsub.f32 %v5774_v12, %v2356_v61 }
 0x4ec   : > { %v4092_v36 = vpack.i.bf16 %v2376_v25, %v2375_v20 }
 0x4ed   : > { %v2360_v9 = vpop.permute.xlu0 %2359  ;;  %v2358_v55 = vpop.permute.xlu1 %2357 }
 0x4ee   : > { %v2378_v40 = vsub.f32 %v5792_v53, %v2358_v55  ;;  %4093 = vrot.lane.b32.xlu0 %v4092_v36, %s4272_s25  ;;  %v2379_v18 = vsub.f32 %v5786_v19, %v2360_v9 }
 0x4f0   : > { %v4097_v58 = vpack.i.bf16 %v2378_v40, %v2377_v14 }
 0x4f1   : > { %v2364_v49 = vpop.permute.xlu0 %2363  ;;  %v2362_v4 = vpop.permute.xlu1 %2361 }
 0x4f2   : > { %v2380_v57 = vsub.f32 %v5804_v23, %v2362_v4  ;;  %4098 = vrot.lane.b32.xlu1 %v4097_v58, %s4272_s25  ;;  %v2381_v12 = vsub.f32 %v5798_v39, %v2364_v49 }
 0x4f4   : > { %v4102_v35 = vpack.i.bf16 %v2380_v57, %v2379_v18 }
 0x4f5   : > { %v5915_v37 = vpop.permute.xlu0 %2383  ;;  %v2366_v27 = vpop.permute.xlu1 %2365 }
 0x4f6   : > { %v2382_v53 = vsub.f32 %v5814_v0, %v2366_v27  ;;  %4103 = vrot.lane.b32.xlu0 %v4102_v35, %s4272_s25  ;;  %v2407_v0 = vmul.f32 %v5915_v37, %v4646_v3 }
 0x4f8   : > { %v4107_v60 = vpack.i.bf16 %v2382_v53, %v2381_v12 }
 0x4f9   : > { %v5920_v56 = vpop.permute.xlu0 %2387  ;;  %v5922_v52 = vpop.permute.xlu1 %2385 }
 0x4fa   : > { %4108 = vrot.lane.b32.xlu1 %v4107_v60, %s4272_s25  ;;  %v2408_v33 = vmul.f32 %v5922_v52, %v4663_v62  ;;  %v2409_v20 = vmul.f32 %v4642_v1, %v5920_v56 }
 0x4fd   : > { %v5925_v19 = vpop.permute.xlu0 %2391  ;;  %v5927_v23 = vpop.permute.xlu1 %2389 }
 0x4fe   : > { %v2410_v25 = vmul.f32 %v4652_v6, %v5927_v23  ;;  %v2411_v62 = vmul.f32 %v5925_v19, %v4650_v5 }
 0x501   : > { %v5929_v54 = vpop.permute.xlu0 %2395  ;;  %v5931_v48 = vpop.permute.xlu1 %2393 }
 0x502   : > { %v2412_v3 = vmul.f32 %v5931_v48, %v4661_v63  ;;  %v2413_v6 = vmul.f32 %v4644_v2, %v5929_v54 }
 0x505   : > { %v2456_v39 = vpop.permute.xlu0 %2455  ;;  %v5933_v17 = vpop.permute.xlu1 %2397 }
 0x506   : > { %v2479_v61 = vadd.f32 %v2456_v39, %v2407_v0  ;;  %v2414_v57 = vmul.f32 %v4656_v8, %v5933_v17 }
 0x509   : > { %v2460_v26 = vpop.permute.xlu0 %2459  ;;  %v2458_v44 = vpop.permute.xlu1 %2457 }
 0x50a   : > { %v2480_v10 = vadd.f32 %v2458_v44, %v2408_v33  ;;  %v2481_v14 = vadd.f32 %v2460_v26, %v2409_v20 }
 0x50c   : > { %v4112_v36 = vpack.i.bf16 %v2480_v10, %v2479_v61 }
 0x50d   : > { %v2464_v9 = vpop.permute.xlu0 %2463  ;;  %v2462_v55 = vpop.permute.xlu1 %2461 }
 0x50e   : > { %v2482_v40 = vadd.f32 %v2462_v55, %v2410_v25  ;;  %4113 = vrot.lane.b32.xlu0 %v4112_v36, %s4272_s25  ;;  %v2483_v1 = vadd.f32 %v2464_v9, %v2411_v62 }
 0x510   : > { %v4117_v58 = vpack.i.bf16 %v2482_v40, %v2481_v14  ;;  %v2657_v40 = vmul.f32 %v5922_v52, %v4690_v38  ;;  %v2660_v38 = vmul.f32 %v5925_v19, %v4730_v11  ;;  %v2661_v52 = vmul.f32 %v5931_v48, %v6297_v42 }
 0x511   : > { %v2468_v49 = vpop.permute.xlu0 %2467  ;;  %v2466_v4 = vpop.permute.xlu1 %2465 }
 0x512   : > { %v2484_v18 = vadd.f32 %v2466_v4, %v2412_v3  ;;  %4118 = vrot.lane.b32.xlu1 %v4117_v58, %s4272_s25  ;;  %v2485_v5 = vadd.f32 %v2468_v49, %v2413_v6 }
 0x514   : > { %v4122_v35 = vpack.i.bf16 %v2484_v18, %v2483_v1 }
 0x515   : > { %v2625_v27 = vpop.permute.xlu0 %2624  ;;  %v2470_v12 = vpop.permute.xlu1 %2469 }
 0x516   : > { %v2486_v53 = vadd.f32 %v2470_v12, %v2414_v57  ;;  %4123 = vrot.lane.b32.xlu0 %v4122_v35, %s4272_s25  ;;  %v2648_v0 = vsub.f32 %v5769_v15, %v2625_v27 }
 0x518   : > { %v4127_v63 = vpack.i.bf16 %v2486_v53, %v2485_v5 }
 0x519   : > { %v2629_v60 = vpop.permute.xlu0 %2628  ;;  %v2627_v39 = vpop.permute.xlu1 %2626 }
 0x51a   : > { %v2649_v33 = vsub.f32 %v5783_v45, %v2627_v39  ;;  %4128 = vrot.lane.b32.xlu1 %v4127_v63, %s4272_s25  ;;  %v2650_v8 = vsub.f32 %v5777_v46, %v2629_v60 }
 0x51c   : > { %v4132_v2 = vpack.i.bf16 %v2649_v33, %v2648_v0 }
 0x51d   : > { %v2633_v26 = vpop.permute.xlu0 %2632  ;;  %v2631_v44 = vpop.permute.xlu1 %2630 }
 0x51e   : > { %v2651_v61 = vsub.f32 %v5795_v41, %v2631_v44  ;;  %4133 = vrot.lane.b32.xlu0 %v4132_v2, %s4272_s25  ;;  %v2652_v36 = vsub.f32 %v5789_v28, %v2633_v26  ;;  %v2656_v41 = vmul.f32 %v5915_v37, %v4683_v43 }
 0x520   : > { %v4137_v10 = vpack.i.bf16 %v2651_v61, %v2650_v8 }
 0x521   : > { %v2637_v20 = vpop.permute.xlu0 %2636  ;;  %v2635_v25 = vpop.permute.xlu1 %2634 }
 0x522   : > { %v2653_v15 = vsub.f32 %v5807_v16, %v2635_v25  ;;  %4138 = vrot.lane.b32.xlu1 %v4137_v10, %s4272_s25  ;;  %v2654_v14 = vsub.f32 %v5801_v32, %v2637_v20  ;;  %v2658_v32 = vmul.f32 %v4676_v47, %v5920_v56  ;;  %v2662_v56 = vmul.f32 %v4720_v22, %v5929_v54 }
 0x524   : > { %v4142_v45 = vpack.i.bf16 %v2653_v15, %v2652_v36 }
 0x525   : > { %v2681_v9 = vpop.permute.xlu0 %2680  ;;  %v2639_v55 = vpop.permute.xlu1 %2638 }
 0x526   : > { %v2655_v46 = vsub.f32 %v5817_v24, %v2639_v55  ;;  %4143 = vrot.lane.b32.xlu0 %v4142_v45, %s4272_s25  ;;  %v2704_v3 = vadd.f32 %v2681_v9, %v2656_v41  ;;  %v2659_v24 = vmul.f32 %v4685_v59, %v5927_v23  ;;  %v2663_v23 = vmul.f32 %v4732_v7, %v5933_v17 }
 0x528   : > { %v4147_v28 = vpack.i.bf16 %v2655_v46, %v2654_v14 }
 0x529   : > { %v2685_v62 = vpop.permute.xlu0 %2684  ;;  %v2683_v16 = vpop.permute.xlu1 %2682 }
 0x52a   : > { %v2705_v58 = vadd.f32 %v2683_v16, %v2657_v40  ;;  %4148 = vrot.lane.b32.xlu1 %v4147_v28, %s4272_s25  ;;  %v2706_v43 = vadd.f32 %v2685_v62, %v2658_v32 }
 0x52c   : > { %v4152_v49 = vpack.i.bf16 %v2705_v58, %v2704_v3 }
 0x52d   : > { %v2689_v4 = vpop.permute.xlu0 %2688  ;;  %v2687_v1 = vpop.permute.xlu1 %2686 }
 0x52e   : > { %v2707_v37 = vadd.f32 %v2687_v1, %v2659_v24  ;;  %4153 = vrot.lane.b32.xlu0 %v4152_v49, %s4272_s25  ;;  %v2708_v57 = vadd.f32 %v2689_v4, %v2660_v38 }
 0x530   : > { %v4157_v18 = vpack.i.bf16 %v2707_v37, %v2706_v43 }
 0x531   : > { %v2691_v6 = vpop.permute.xlu1 %2690  ;;  %v2693_v59 = vpop.permute.xlu0 %2692 }
 0x532   : > { %v2709_v47 = vadd.f32 %v2691_v6, %v2661_v52  ;;  %4158 = vrot.lane.b32.xlu1 %v4157_v18, %s4272_s25  ;;  %v2710_v12 = vadd.f32 %v2693_v59, %v2662_v56 }
 0x534   : > { %v4162_v35 = vpack.i.bf16 %v2709_v47, %v2708_v57 }
 0x535   : > { %v2695_v27 = vpop.permute.xlu1 %2694 }
 0x536   : > { %v2711_v11 = vadd.f32 %v2695_v27, %v2663_v23  ;;  %4163 = vrot.lane.b32.xlu0 %v4162_v35, %s4272_s25 }
 0x538   : > { %v4167_v42 = vpack.i.bf16 %v2711_v11, %v2710_v12 }
 0x53a   : > { %2825 = vrot.lane.b32.xlu0 %v6388_v34, %s4272_s25  ;;  %4168 = vrot.lane.b32.xlu1 %v4167_v42, %s4272_s25 }
 0x53e   : > { %2829 = vrot.lane.b32.xlu0 %v6389_v31, %s4272_s25  ;;  %2827 = vrot.lane.b32.xlu1 %v6390_v13, %s4272_s25 }
 0x542   : > { %2833 = vrot.lane.b32.xlu0 %v6391_v50, %s4272_s25  ;;  %2831 = vrot.lane.b32.xlu1 %v6392_v51, %s4272_s25 }
 0x546   : > { %2837 = vrot.lane.b32.xlu0 %v6393_v21, %s4272_s25  ;;  %2835 = vrot.lane.b32.xlu1 %v6394_v30, %s4272_s25 }
 0x54a   : > { %2839 = vrot.lane.b32.xlu1 %v6396_v29, %s4272_s25 }
 0x560   : > { %v4094_v22 = vpop.permute.xlu0 %4093 }
 0x561   : > { %v4096_v50 = vunpack.i.h.bf16 %v4094_v22  ;;  %v4095_v19 = vunpack.i.l.bf16 %v4094_v22 }
 0x564   : > { %v4099_v7 = vpop.permute.xlu1 %4098 }
 0x565   : > { %v4101_v29 = vunpack.i.h.bf16 %v4099_v7  ;;  %v4100_v53 = vunpack.i.l.bf16 %v4099_v7 }
 0x568   : > { %v4104_v34 = vpop.permute.xlu0 %4103 }
 0x569   : > { %v4106_v44 = vunpack.i.h.bf16 %v4104_v34  ;;  %v4105_v8 = vunpack.i.l.bf16 %v4104_v34 }
 0x56c   : > { %v4109_v31 = vpop.permute.xlu1 %4108 }
 0x56d   : > { %v4111_v9 = vunpack.i.h.bf16 %v4109_v31  ;;  %v4110_v55 = vunpack.i.l.bf16 %v4109_v31 }
 0x580   : > { %v4114_v13 = vpop.permute.xlu0 %4113 }
 0x581   : > { %v4116_v54 = vunpack.i.h.bf16 %v4114_v13  ;;  %v4115_v51 = vunpack.i.l.bf16 %v4114_v13 }
 0x583   : > { %v2552_v48 = vsel %vm871_vm2, %v4096_v50, %v4116_v54  ;;  %v2551_v21 = vsel %vm871_vm2, %v4095_v19, %v4115_v51 }
 0x584   : > { %v3792_v17 = vpack.c.bf16 %v2552_v48, %v2552_v48  ;;  %v3791_v30 = vpack.c.bf16 %v2551_v21, %v2551_v21  ;;  %v4119_v5 = vpop.permute.xlu1 %4118 }
 0x585   : > { %v4121_v63 = vunpack.i.h.bf16 %v4119_v5  ;;  %v4120_v60 = vunpack.i.l.bf16 %v4119_v5 }
 0x586   : > { %3689 = vst.msk [vmem:[%s4948_s21 + $0x60] sm:$0xf] %vm912_vm1, %v3791_v30  ;;  %3690 = vst.msk [vmem:[%s4948_s21 + $0x64] sm:$0xf] %vm912_vm1, %v3792_v17 }
 0x587   : > { %v2553_v39 = vsel %vm871_vm2, %v4100_v53, %v4120_v60  ;;  %v2554_v0 = vsel %vm871_vm2, %v4101_v29, %v4121_v63 }
 0x588   : > { %v3793_v33 = vpack.c.bf16 %v2553_v39, %v2553_v39  ;;  %v3794_v2 = vpack.c.bf16 %v2554_v0, %v2554_v0  ;;  %v4124_v26 = vpop.permute.xlu0 %4123 }
 0x589   : > { %v4126_v61 = vunpack.i.h.bf16 %v4124_v26  ;;  %v4125_v10 = vunpack.i.l.bf16 %v4124_v26 }
 0x58a   : > { %3691 = vst.msk [vmem:[%s4948_s21 + $0x68] sm:$0xf] %vm912_vm1, %v3793_v33  ;;  %3692 = vst.msk [vmem:[%s4948_s21 + $0x6c] sm:$0xf] %vm912_vm1, %v3794_v2 }
 0x58b   : > { %v2556_v20 = vsel %vm871_vm2, %v4106_v44, %v4126_v61  ;;  %v2555_v25 = vsel %vm871_vm2, %v4105_v8, %v4125_v10  ;;  %v2893_v8 = vld [vmem:[%s4948_s21] sm:$0xff] (%p4362_p5)   ;;  %v2897_v61 = vld [vmem:[%s4948_s21 + $0x8] sm:$0xff] (%p4362_p5)   ;;  %v2901_v10 = vld [vmem:[%s4948_s21 + $0x10] sm:$0xff] (%p4362_p5)  }
 0x58c   : > { %v3796_v36 = vpack.c.bf16 %v2556_v20, %v2556_v20  ;;  %v3795_v15 = vpack.c.bf16 %v2555_v25, %v2555_v25  ;;  %v4129_v45 = vpop.permute.xlu1 %4128  ;;  %v2905_v20 = vld [vmem:[%s4948_s21 + $0x18] sm:$0xff] (%p4362_p5)   ;;  %v2909_v25 = vld [vmem:[%s4948_s21 + $0x20] sm:$0xff] (%p4362_p5)   ;;  %2894 = vst [vmem:[%s2877_s19] sm:$0xff] (%p4362_p5), %v2893_v8   ;;  %2898 = vst [vmem:[%s2877_s19 + $0x8] sm:$0xff] (%p4362_p5), %v2897_v61  }
 0x58d   : > { %v4131_v14 = vunpack.i.h.bf16 %v4129_v45  ;;  %v4130_v46 = vunpack.i.l.bf16 %v4129_v45  ;;  %v2921_v45 = vld [vmem:[%s4948_s21 + $0x38] sm:$0xff] (%p4362_p5)   ;;  %2902 = vst [vmem:[%s2877_s19 + $0x10] sm:$0xff] (%p4362_p5), %v2901_v10   ;;  %2906 = vst [vmem:[%s2877_s19 + $0x18] sm:$0xff] (%p4362_p5), %v2905_v20  }
 0x58e   : > { %3693 = vst.msk [vmem:[%s4948_s21 + $0x70] sm:$0xf] %vm912_vm1, %v3795_v15  ;;  %3694 = vst.msk [vmem:[%s4948_s21 + $0x74] sm:$0xf] %vm912_vm1, %v3796_v36  ;;  %v2913_v36 = vld [vmem:[%s4948_s21 + $0x28] sm:$0xff] (%p4362_p5)   ;;  %v2917_v15 = vld [vmem:[%s4948_s21 + $0x30] sm:$0xff] (%p4362_p5)  }
 0x58f   : > { %v2557_v41 = vsel %vm871_vm2, %v4110_v55, %v4130_v46  ;;  %v2558_v40 = vsel %vm871_vm2, %v4111_v9, %v4131_v14  ;;  %v2925_v9 = vld [vmem:[%s4948_s21 + $0x40] sm:$0xff] (%p4362_p5)   ;;  %v2929_v55 = vld [vmem:[%s4948_s21 + $0x48] sm:$0xff] (%p4362_p5)   ;;  %v2933_v14 = vld [vmem:[%s4948_s21 + $0x50] sm:$0xff] (%p4362_p5)   ;;  %2910 = vst [vmem:[%s2877_s19 + $0x40] sm:$0xff] (%p4362_p5), %v2909_v25  }
 0x590   : > { %v3797_v28 = vpack.c.bf16 %v2557_v41, %v2557_v41  ;;  %v3798_v62 = vpack.c.bf16 %v2558_v40, %v2558_v40  ;;  %v4134_v16 = vpop.permute.xlu0 %4133  ;;  %v2937_v46 = vld [vmem:[%s4948_s21 + $0x58] sm:$0xff] (%p4362_p5)   ;;  %2914 = vst [vmem:[%s2877_s19 + $0x48] sm:$0xff] (%p4362_p5), %v2913_v36   ;;  %2918 = vst [vmem:[%s2877_s19 + $0x50] sm:$0xff] (%p4362_p5), %v2917_v15   ;;  %v2941_v41 = vld [vmem:[%s4948_s21 + $0x60] sm:$0xff] (%p4362_p5)  }
 0x591   : > { %v4136_v49 = vunpack.i.h.bf16 %v4134_v16  ;;  %v4135_v4 = vunpack.i.l.bf16 %v4134_v16  ;;  %2922 = vst [vmem:[%s2877_s19 + $0x58] sm:$0xff] (%p4362_p5), %v2921_v45   ;;  %2926 = vst [vmem:[%s2877_s19 + $0x80] sm:$0xff] (%p4362_p5), %v2925_v9   ;;  %v2945_v40 = vld [vmem:[%s4948_s21 + $0x68] sm:$0xff] (%p4362_p5)  }
 0x592   : > { %3695 = vst.msk [vmem:[%s4948_s21 + $0x78] sm:$0xf] %vm912_vm1, %v3797_v28  ;;  %3696 = vst.msk [vmem:[%s4948_s21 + $0x7c] sm:$0xf] %vm912_vm1, %v3798_v62 }
 0x593   : > { %2930 = vst [vmem:[%s2877_s19 + $0x88] sm:$0xff] (%p4362_p5), %v2929_v55   ;;  %2934 = vst [vmem:[%s2877_s19 + $0x90] sm:$0xff] (%p4362_p5), %v2933_v14  }
 0x594   : > { %v4139_v3 = vpop.permute.xlu1 %4138  ;;  %2938 = vst [vmem:[%s2877_s19 + $0x98] sm:$0xff] (%p4362_p5), %v2937_v46   ;;  %2942 = vst [vmem:[%s2877_s19 + $0xc0] sm:$0xff] (%p4362_p5), %v2941_v41  }
 0x595   : > { %v4141_v57 = vunpack.i.h.bf16 %v4139_v3  ;;  %v4140_v47 = vunpack.i.l.bf16 %v4139_v3  ;;  %v2949_v28 = vld [vmem:[%s4948_s21 + $0x70] sm:$0xff] (%p4362_p5)   ;;  %2946 = vst [vmem:[%s2877_s19 + $0xc8] sm:$0xff] (%p4362_p5), %v2945_v40  }
 0x596   : > { %2950 = vst [vmem:[%s2877_s19 + $0xd0] sm:$0xff] (%p4362_p5), %v2949_v28  }
 0x598   : > { %v4144_v58 = vpop.permute.xlu0 %4143 }
 0x599   : > { %v4146_v42 = vunpack.i.h.bf16 %v4144_v58  ;;  %v4145_v22 = vunpack.i.l.bf16 %v4144_v58  ;;  %v2953_v62 = vld [vmem:[%s4948_s21 + $0x78] sm:$0xff] (%p4362_p5)  }
 0x59a   : > { %2954 = vst [vmem:[%s2877_s19 + $0xd8] sm:$0xff] (%p4362_p5), %v2953_v62  }
 0x59c   : > { %v4149_v32 = vpop.permute.xlu1 %4148 }
 0x59d   : > { %v4151_v48 = vunpack.i.h.bf16 %v4149_v32  ;;  %v4150_v21 = vunpack.i.l.bf16 %v4149_v32 }
 0x5a0   : > { %v4154_v24 = vpop.permute.xlu0 %4153 }
 0x5a1   : > { %v4156_v1 = vunpack.i.h.bf16 %v4154_v24  ;;  %v4155_v43 = vunpack.i.l.bf16 %v4154_v24 }
 0x5a3   : > { %v2777_v37 = vsel %vm871_vm2, %v4136_v49, %v4156_v1  ;;  %v2776_v38 = vsel %vm871_vm2, %v4135_v4, %v4155_v43 }
 0x5a4   : > { %v3800_v52 = vpack.c.bf16 %v2777_v37, %v2777_v37  ;;  %v3799_v18 = vpack.c.bf16 %v2776_v38, %v2776_v38  ;;  %v4159_v6 = vpop.permute.xlu1 %4158 }
 0x5a5   : > { %v4161_v59 = vunpack.i.h.bf16 %v4159_v6  ;;  %v4160_v56 = vunpack.i.l.bf16 %v4159_v6 }
 0x5a6   : > { %3705 = vst.msk [vmem:[%s5116_s22 + $0x60] sm:$0xf] %vm912_vm1, %v3799_v18  ;;  %3706 = vst.msk [vmem:[%s5116_s22 + $0x64] sm:$0xf] %vm912_vm1, %v3800_v52 }
 0x5a7   : > { %v2778_v23 = vsel %vm871_vm2, %v4140_v47, %v4160_v56  ;;  %v2779_v35 = vsel %vm871_vm2, %v4141_v57, %v4161_v59 }
 0x5a8   : > { %v3801_v27 = vpack.c.bf16 %v2778_v23, %v2778_v23  ;;  %v3802_v12 = vpack.c.bf16 %v2779_v35, %v2779_v35  ;;  %v4164_v11 = vpop.permute.xlu0 %4163 }
 0x5a9   : > { %v4166_v7 = vunpack.i.h.bf16 %v4164_v11  ;;  %v4165_v34 = vunpack.i.l.bf16 %v4164_v11 }
 0x5aa   : > { %3707 = vst.msk [vmem:[%s5116_s22 + $0x68] sm:$0xf] %vm912_vm1, %v3801_v27  ;;  %3708 = vst.msk [vmem:[%s5116_s22 + $0x6c] sm:$0xf] %vm912_vm1, %v3802_v12 }
 0x5ab   : > { %v2781_v31 = vsel %vm871_vm2, %v4146_v42, %v4166_v7  ;;  %v2780_v13 = vsel %vm871_vm2, %v4145_v22, %v4165_v34 }
 0x5ac   : > { %v3804_v50 = vpack.c.bf16 %v2781_v31, %v2781_v31  ;;  %v3803_v19 = vpack.c.bf16 %v2780_v13, %v2780_v13  ;;  %v2826_v54 = vpop.permute.xlu0 %2825  ;;  %v4169_v51 = vpop.permute.xlu1 %4168 }
 0x5ad   : > { %3713 = vst.msk [vmem:[%s4700_s27 + $0x60] sm:$0xf] %vm912_vm1, %v2826_v54  ;;  %v4171_v17 = vunpack.i.h.bf16 %v4169_v51  ;;  %v4170_v30 = vunpack.i.l.bf16 %v4169_v51 }
 0x5ae   : > { %3709 = vst.msk [vmem:[%s5116_s22 + $0x70] sm:$0xf] %vm912_vm1, %v3803_v19  ;;  %3710 = vst.msk [vmem:[%s5116_s22 + $0x74] sm:$0xf] %vm912_vm1, %v3804_v50 }
 0x5af   : > { %v2782_v5 = vsel %vm871_vm2, %v4150_v21, %v4170_v30  ;;  %v2783_v29 = vsel %vm871_vm2, %v4151_v48, %v4171_v17 }
 0x5b0   : > { %v3805_v53 = vpack.c.bf16 %v2782_v5, %v2782_v5  ;;  %v3806_v63 = vpack.c.bf16 %v2783_v29, %v2783_v29  ;;  %v2830_v60 = vpop.permute.xlu0 %2829  ;;  %v2828_v39 = vpop.permute.xlu1 %2827 }
 0x5b1   : > { %3715 = vst.msk [vmem:[%s4700_s27 + $0x68] sm:$0xf] %vm912_vm1, %v2830_v60  ;;  %3714 = vst.msk [vmem:[%s4700_s27 + $0x64] sm:$0xf] %vm912_vm1, %v2828_v39 }
 0x5b2   : > { %3711 = vst.msk [vmem:[%s5116_s22 + $0x78] sm:$0xf] %vm912_vm1, %v3805_v53  ;;  %3712 = vst.msk [vmem:[%s5116_s22 + $0x7c] sm:$0xf] %vm912_vm1, %v3806_v63 }
 0x5b4   : > { %v2834_v0 = vpop.permute.xlu0 %2833  ;;  %v2832_v33 = vpop.permute.xlu1 %2831 }
 0x5b5   : > { %3717 = vst.msk [vmem:[%s4700_s27 + $0x70] sm:$0xf] %vm912_vm1, %v2834_v0  ;;  %3716 = vst.msk [vmem:[%s4700_s27 + $0x6c] sm:$0xf] %vm912_vm1, %v2832_v33 }
 0x5b7   : > { %2872 = sbr.rel (!%p4362_p5) target bundleno = 1470 (0x5be), region = 48 }
 0x5b8   : > { %v2838_v2 = vpop.permute.xlu0 %2837  ;;  %v2836_v26 = vpop.permute.xlu1 %2835 }
 0x5b9   : > { %3719 = vst.msk [vmem:[%s4700_s27 + $0x78] sm:$0xf] %vm912_vm1, %v2838_v2  ;;  %3718 = vst.msk [vmem:[%s4700_s27 + $0x74] sm:$0xf] %vm912_vm1, %v2836_v26 }
 0x5bc   : > { %v2840_v44 = vpop.permute.xlu1 %2839 }
 0x5bd   : > { %3720 = vst.msk [vmem:[%s4700_s27 + $0x7c] sm:$0xf] %vm912_vm1, %v2840_v44 }
 0x5be PF: > { %3043 = sbr.rel (!%p4362_p5) target bundleno = 1482 (0x5ca), region = 89  ;;  %s3728_s21 = sshll.u32 (%p4362_p5), %s4248_s30, 6  ;;  %v3064_v16 = vld [vmem:[%s5116_s22] sm:$0xff] (%p4362_p5)   ;;  %v3068_v3 = vld [vmem:[%s5116_s22 + $0x8] sm:$0xff] (%p4362_p5)   ;;  %v3072_v58 = vld [vmem:[%s5116_s22 + $0x10] sm:$0xff] (%p4362_p5)  }
 0x5bf   : > { %s3046_s13 = sadd.s32 (%p4362_p5), %s3728_s21, %s4378_s23  ;;  %v3076_v32 = vld [vmem:[%s5116_s22 + $0x18] sm:$0xff] (%p4362_p5)   ;;  %v3080_v24 = vld [vmem:[%s5116_s22 + $0x20] sm:$0xff] (%p4362_p5)   ;;  %v3084_v49 = vld [vmem:[%s5116_s22 + $0x28] sm:$0xff] (%p4362_p5)  }
 0x5c0   : > { %s3729_s29 = sshll.u32 (%p4362_p5), %s3046_s13, 2  ;;  %v3088_v4 = vld [vmem:[%s5116_s22 + $0x30] sm:$0xff] (%p4362_p5)   ;;  %v3092_v1 = vld [vmem:[%s5116_s22 + $0x38] sm:$0xff] (%p4362_p5)   ;;  %v3096_v43 = vld [vmem:[%s5116_s22 + $0x40] sm:$0xff] (%p4362_p5)  }
 0x5c1   : > { %s3048_s25 = scalar_lea.vmem (%p4362_p5), %s6164_s7, %s3729_s29  ;;  %v3100_v37 = vld [vmem:[%s5116_s22 + $0x48] sm:$0xff] (%p4362_p5)   ;;  %v3104_v38 = vld [vmem:[%s5116_s22 + $0x50] sm:$0xff] (%p4362_p5)   ;;  %v3108_v52 = vld [vmem:[%s5116_s22 + $0x58] sm:$0xff] (%p4362_p5)  }
 0x5c2   : > { %3065 = vst [vmem:[%s3048_s25] sm:$0xff] (%p4362_p5), %v3064_v16   ;;  %3069 = vst [vmem:[%s3048_s25 + $0x8] sm:$0xff] (%p4362_p5), %v3068_v3   ;;  %v3112_v18 = vld [vmem:[%s5116_s22 + $0x60] sm:$0xff] (%p4362_p5)   ;;  %v3116_v6 = vld [vmem:[%s5116_s22 + $0x68] sm:$0xff] (%p4362_p5)  }
 0x5c3   : > { %3073 = vst [vmem:[%s3048_s25 + $0x10] sm:$0xff] (%p4362_p5), %v3072_v58   ;;  %3077 = vst [vmem:[%s3048_s25 + $0x18] sm:$0xff] (%p4362_p5), %v3076_v32   ;;  %v3120_v57 = vld [vmem:[%s5116_s22 + $0x70] sm:$0xff] (%p4362_p5)   ;;  %v3124_v47 = vld [vmem:[%s5116_s22 + $0x78] sm:$0xff] (%p4362_p5)  }
 0x5c4   : > { %3081 = vst [vmem:[%s3048_s25 + $0x40] sm:$0xff] (%p4362_p5), %v3080_v24   ;;  %3085 = vst [vmem:[%s3048_s25 + $0x48] sm:$0xff] (%p4362_p5), %v3084_v49  }
 0x5c5   : > { %3089 = vst [vmem:[%s3048_s25 + $0x50] sm:$0xff] %v3088_v4   ;;  %3093 = vst [vmem:[%s3048_s25 + $0x58] sm:$0xff] %v3092_v1  }
 0x5c6   : > { %3097 = vst [vmem:[%s3048_s25 + $0x80] sm:$0xff] %v3096_v43   ;;  %3101 = vst [vmem:[%s3048_s25 + $0x88] sm:$0xff] %v3100_v37  }
 0x5c7   : > { %3105 = vst [vmem:[%s3048_s25 + $0x90] sm:$0xff] %v3104_v38   ;;  %3109 = vst [vmem:[%s3048_s25 + $0x98] sm:$0xff] %v3108_v52  }
 0x5c8   : > { %3113 = vst [vmem:[%s3048_s25 + $0xc0] sm:$0xff] %v3112_v18   ;;  %3117 = vst [vmem:[%s3048_s25 + $0xc8] sm:$0xff] %v3116_v6  }
 0x5c9   : > { %3121 = vst [vmem:[%s3048_s25 + $0xd0] sm:$0xff] %v3120_v57   ;;  %3125 = vst [vmem:[%s3048_s25 + $0xd8] sm:$0xff] %v3124_v47  }
 0x5ca PF: > { %3214 = sbr.rel (!%p4362_p5) target bundleno = 1494 (0x5d6), region = 130  ;;  %s3731_s22 = sshll.u32 (%p4362_p5), %s4248_s30, 6  ;;  %v3235_v59 = vld [vmem:[%s4700_s27] sm:$0xff] (%p4362_p5)   ;;  %v3239_v56 = vld [vmem:[%s4700_s27 + $0x8] sm:$0xff] (%p4362_p5)   ;;  %v3243_v23 = vld [vmem:[%s4700_s27 + $0x10] sm:$0xff] (%p4362_p5)  }
 0x5cb   : > { %s3217_s16 = sadd.s32 (%p4362_p5), %s3731_s22, %s4378_s23  ;;  %v3247_v35 = vld [vmem:[%s4700_s27 + $0x18] sm:$0xff] (%p4362_p5)   ;;  %v3251_v27 = vld [vmem:[%s4700_s27 + $0x20] sm:$0xff] (%p4362_p5)   ;;  %v3255_v12 = vld [vmem:[%s4700_s27 + $0x28] sm:$0xff] (%p4362_p5)  }
 0x5cc   : > { %s3732_s1 = sshll.u32 (%p4362_p5), %s3217_s16, 2  ;;  %v3259_v11 = vld [vmem:[%s4700_s27 + $0x30] sm:$0xff] (%p4362_p5)   ;;  %v3263_v42 = vld [vmem:[%s4700_s27 + $0x38] sm:$0xff] (%p4362_p5)   ;;  %v3267_v22 = vld [vmem:[%s4700_s27 + $0x40] sm:$0xff] (%p4362_p5)  }
 0x5cd   : > { %s3219_s17 = scalar_lea.vmem (%p4362_p5), %s6165_s8, %s3732_s1  ;;  %v3271_v7 = vld [vmem:[%s4700_s27 + $0x48] sm:$0xff] (%p4362_p5)   ;;  %v3275_v34 = vld [vmem:[%s4700_s27 + $0x50] sm:$0xff] (%p4362_p5)   ;;  %v3279_v31 = vld [vmem:[%s4700_s27 + $0x58] sm:$0xff] (%p4362_p5)  }
 0x5ce   : > { %3236 = vst [vmem:[%s3219_s17] sm:$0xff] (%p4362_p5), %v3235_v59   ;;  %3240 = vst [vmem:[%s3219_s17 + $0x8] sm:$0xff] (%p4362_p5), %v3239_v56   ;;  %v3283_v13 = vld [vmem:[%s4700_s27 + $0x60] sm:$0xff] (%p4362_p5)   ;;  %v3287_v50 = vld [vmem:[%s4700_s27 + $0x68] sm:$0xff] (%p4362_p5)  }
 0x5cf   : > { %3244 = vst [vmem:[%s3219_s17 + $0x10] sm:$0xff] (%p4362_p5), %v3243_v23   ;;  %3248 = vst [vmem:[%s3219_s17 + $0x18] sm:$0xff] (%p4362_p5), %v3247_v35   ;;  %v3291_v19 = vld [vmem:[%s4700_s27 + $0x70] sm:$0xff] (%p4362_p5)   ;;  %v3295_v54 = vld [vmem:[%s4700_s27 + $0x78] sm:$0xff] (%p4362_p5)  }
 0x5d0   : > { %3252 = vst [vmem:[%s3219_s17 + $0x40] sm:$0xff] (%p4362_p5), %v3251_v27   ;;  %3256 = vst [vmem:[%s3219_s17 + $0x48] sm:$0xff] (%p4362_p5), %v3255_v12  }
 0x5d1   : > { %3260 = vst [vmem:[%s3219_s17 + $0x50] sm:$0xff] %v3259_v11   ;;  %3264 = vst [vmem:[%s3219_s17 + $0x58] sm:$0xff] %v3263_v42  }
 0x5d2   : > { %3268 = vst [vmem:[%s3219_s17 + $0x80] sm:$0xff] %v3267_v22   ;;  %3272 = vst [vmem:[%s3219_s17 + $0x88] sm:$0xff] %v3271_v7  }
 0x5d3   : > { %3276 = vst [vmem:[%s3219_s17 + $0x90] sm:$0xff] %v3275_v34   ;;  %3280 = vst [vmem:[%s3219_s17 + $0x98] sm:$0xff] %v3279_v31  }
 0x5d4   : > { %3284 = vst [vmem:[%s3219_s17 + $0xc0] sm:$0xff] %v3283_v13   ;;  %3288 = vst [vmem:[%s3219_s17 + $0xc8] sm:$0xff] %v3287_v50  }
 0x5d5   : > { %3292 = vst [vmem:[%s3219_s17 + $0xd0] sm:$0xff] %v3291_v19   ;;  %3296 = vst [vmem:[%s3219_s17 + $0xd8] sm:$0xff] %v3295_v54  }
 0x5d6 PF: > { %s19_s11 = sadd.s32 1, %s4260_s11   ;;  %s6412_s23 = sld [smem:[#allocation5_spill]] }
 0x5d7   : > { %p16_p11 = scmp.ge.s32.totalorder %s19_s11, 6   ;;  %s6413_s27 = smov %s4240_s28 }
 0x5d8   : > { %s6414_s28 = smov %s4373_s20  ;;  %s6415_s29 = smov %s4252_s9 }
 0x5d9   : > { %s6416_s30 = smov %s4256_s10  ;;  %s6417_s9 = smov %s6420_s12 }
 0x5da   :  { %18 = sbr.rel (!%p16_p11) target bundleno = 6 (0x6), region = 236 }
 0x5dc   : > { %s6418_s10 = smov %s6412_s23 }

</bundles_post_ra>
